<compile_context>
chip_gen: v7x
topology: tpu7x:2x2x1
jax: 0.10.0
libtpu: 0.0.40
codegen_flags: <defaults>
</compile_context>

<pallas_src>
import functools

import jax
import jax.numpy as jnp
from jax.experimental import pallas as pl
from jax.experimental.pallas import tpu as pltpu

EPS = 1e-5  # nn.BatchNorm2d default eps


def _round_up(x, m):
    return ((x + m - 1) // m) * m


def _vmem_limit_bytes():
    try:
        cap = int(getattr(pltpu.get_tpu_info(), "vmem_capacity_bytes",
                          128 * 1024 * 1024))
    except Exception:
        cap = 64 * 1024 * 1024
    return (cap * 3) // 4


_VMEM_LIMIT = _vmem_limit_bytes()


def _cparams():
    return pltpu.CompilerParams(dimension_semantics=("parallel",),
                                vmem_limit_bytes=_VMEM_LIMIT)


# ---------------------------------------------------------------------------
# In-kernel helpers (flat-padded per-image layout, Rimg = (h+4)*q rows).
#   rows [0, 2q)           : guard + top pad   (always zero)
#   rows [2q, (h+2)q)      : "core" = h image rows incl. their L/R pad columns
#   rows [(h+2)q, (h+4)q)  : bottom pad + guard (always zero)
# ---------------------------------------------------------------------------
def _col_mask(q, w):
    ci = jax.lax.broadcasted_iota(jnp.int32, (1, q, 1), 1)
    return (ci >= 1) & (ci <= w)


def _conv3x3(srcs, wts, *, q, h):
    """Fused-im2col 3x3 conv over the core rows; returns f32 (h*q, cout)."""
    core = h * q
    acc = None
    for src, wt in zip(srcs, wts):
        for dy in range(3):
            for dx in range(3):
                lhs = src[pl.ds((q - 1) + dy * q + dx, core), :]   # bf16 (core, cin)
                d = jnp.dot(lhs, wt[dy * 3 + dx],
                            preferred_element_type=jnp.float32)
                acc = d if acc is None else acc + d
    return acc


def _store_raw_and_stats(acc, col_ok, raw_ref, st_ref, *, q, h):
    core = h * q
    cout = acc.shape[-1]
    m1 = jnp.where(col_ok, acc.reshape(h, q, cout), 0.0)  # interior pixels only
    s1 = jnp.sum(jnp.sum(m1, axis=0), axis=0, keepdims=True)        # (1, cout)
    s2 = jnp.sum(jnp.sum(m1 * m1, axis=0), axis=0, keepdims=True)   # (1, cout)
    st_ref[pl.ds(0, 1), :] = s1
    st_ref[pl.ds(1, 1), :] = s2
    raw_ref[pl.ds(2 * q, core), :] = acc.astype(raw_ref.dtype)      # aligned store


def _bn_relu_core(raw_ref, st_ref, g_ref, b_ref, col_ok, *, q, h, inv_count):
    """Finalize batch stats, normalize + ReLU the core rows, zero pad columns."""
    core = h * q
    c = raw_ref.shape[-1]
    s = jnp.sum(st_ref[...], axis=0)                     # (2, c): sum over images
    mean = s[0:1, :] * inv_count
    var = jnp.maximum(s[1:2, :] * inv_count - mean * mean, 0.0)
    scale = jax.lax.rsqrt(var + EPS) * g_ref[...]
    shift = b_ref[...] - mean * scale
    raw = raw_ref[pl.ds(2 * q, core), :].astype(jnp.float32)
    y = jnp.maximum(raw * scale + shift, 0.0)
    a = jnp.where(col_ok, y.reshape(h, q, c), 0.0)
    return a.reshape(core, c)


# ---------------------------------------------------------------------------
# Block kernels (grid over batch).
# ---------------------------------------------------------------------------
def _conv_stats_kernel(*refs, q, h, w, n_in):
    xs = refs[:n_in]
    wts = refs[n_in:2 * n_in]
    raw_ref, st_ref = refs[2 * n_in], refs[2 * n_in + 1]
    acc = _conv3x3(xs, wts, q=q, h=h)
    _store_raw_and_stats(acc, _col_mask(q, w), raw_ref, st_ref, q=q, h=h)


def _bn_conv_stats_kernel(raw_ref, st_ref, g_ref, b_ref, w2_ref,
                          raw2_ref, st2_ref, mid_ref, *, q, h, w, inv_count):
    col_ok = _col_mask(q, w)
    a1 = _bn_relu_core(raw_ref, st_ref, g_ref, b_ref, col_ok,
                       q=q, h=h, inv_count=inv_count)
    c1 = mid_ref.shape[-1]
    zero = jnp.zeros((2 * q, c1), mid_ref.dtype)
    mid_ref[pl.ds(0, 2 * q), :] = zero                    # guard/pad rows only
    mid_ref[pl.ds((h + 2) * q, 2 * q), :] = zero
    mid_ref[pl.ds(2 * q, h * q), :] = a1.astype(mid_ref.dtype)
    acc = _conv3x3([mid_ref], [w2_ref], q=q, h=h)
    _store_raw_and_stats(acc, col_ok, raw2_ref, st2_ref, q=q, h=h)


def _bn_relu_kernel(raw_ref, st_ref, g_ref, b_ref, out_ref, *, q, h, w, inv_count):
    a = _bn_relu_core(raw_ref, st_ref, g_ref, b_ref, _col_mask(q, w),
                      q=q, h=h, inv_count=inv_count)
    c = out_ref.shape[-1]
    zero = jnp.zeros((2 * q, c), out_ref.dtype)
    out_ref[pl.ds(0, 2 * q), :] = zero
    out_ref[pl.ds((h + 2) * q, 2 * q), :] = zero
    out_ref[pl.ds(2 * q, h * q), :] = a.astype(out_ref.dtype)


def _bn_relu_conv1x1_kernel(raw_ref, st_ref, g_ref, b_ref, cw_ref, cb_ref,
                            out_ref, *, q, h, w, inv_count):
    a = _bn_relu_core(raw_ref, st_ref, g_ref, b_ref, _col_mask(q, w),
                      q=q, h=h, inv_count=inv_count)
    y = jnp.dot(a.astype(jnp.bfloat16), cw_ref[...],
                preferred_element_type=jnp.float32) + cb_ref[...]
    c = out_ref.shape[-1]
    zero = jnp.zeros((2 * q, c), out_ref.dtype)
    out_ref[pl.ds(0, 2 * q), :] = zero
    out_ref[pl.ds((h + 2) * q, 2 * q), :] = zero
    out_ref[pl.ds(2 * q, h * q), :] = y.astype(out_ref.dtype)


def _full_spec(arr):
    nd = arr.ndim
    return pl.BlockSpec(tuple(arr.shape), lambda i: (0,) * nd)


def conv_block(xs, n, h, w, p, *, final_conv=None):
    """(conv3x3 -> BN(batch stats) -> ReLU) x 2 on flat-padded bf16 inputs."""
    q = _round_up(w + 2, 8)
    rimg = (h + 4) * q
    cins = [x.shape[-1] for x in xs]
    c1 = p["g1"].shape[1]
    c2 = p["g2"].shape[1]
    inv_count = 1.0 / float(n * h * w)

    def act_spec(c):
        return pl.BlockSpec((None, rimg, c), lambda i: (i, 0, 0))

    def stats_spec(c):
        return pl.BlockSpec((None, 2, c), lambda i: (i, 0, 0))

    # 1) conv1 + per-image partial statistics
    raw1, st1 = pl.pallas_call(
        functools.partial(_conv_stats_kernel, q=q, h=h, w=w, n_in=len(xs)),
        grid=(n,),
        in_specs=[act_spec(c) for c in cins] + [_full_spec(wt) for wt in p["w1"]],
        out_specs=[act_spec(c1), stats_spec(c1)],
        out_shape=[jax.ShapeDtypeStruct((n, rimg, c1), jnp.bfloat16),
                   jax.ShapeDtypeStruct((n, 2, c1), jnp.float32)],
        compiler_params=_cparams(),
    )(*xs, *p["w1"])

    # 2) BN1 + ReLU (kept in VMEM) -> conv2 + per-image partial statistics
    raw2, st2 = pl.pallas_call(
        functools.partial(_bn_conv_stats_kernel, q=q, h=h, w=w, inv_count=inv_count),
        grid=(n,),
        in_specs=[act_spec(c1), _full_spec(st1), _full_spec(p["g1"]),
                  _full_spec(p["b1"]), _full_spec(p["w2"])],
        out_specs=[act_spec(c2), stats_spec(c2)],
        out_shape=[jax.ShapeDtypeStruct((n, rimg, c2), jnp.bfloat16),
                   jax.ShapeDtypeStruct((n, 2, c2), jnp.float32)],
        scratch_shapes=[pltpu.VMEM((rimg, c1), jnp.bfloat16)],
        compiler_params=_cparams(),
    )(raw1, st1, p["g1"], p["b1"], p["w2"])

    # 3) BN2 + ReLU (optionally fused with the final 1x1 conv for dec1)
    if final_conv is None:
        return pl.pallas_call(
            functools.partial(_bn_relu_kernel, q=q, h=h, w=w, inv_count=inv_count),
            grid=(n,),
            in_specs=[act_spec(c2), _full_spec(st2), _full_spec(p["g2"]),
                      _full_spec(p["b2"])],
            out_specs=act_spec(c2),
            out_shape=jax.ShapeDtypeStruct((n, rimg, c2), jnp.bfloat16),
            compiler_params=_cparams(),
        )(raw2, st2, p["g2"], p["b2"])

    cw, cb = final_conv
    cf = cw.shape[1]
    return pl.pallas_call(
        functools.partial(_bn_relu_conv1x1_kernel, q=q, h=h, w=w,
                          inv_count=inv_count),
        grid=(n,),
        in_specs=[act_spec(c2), _full_spec(st2), _full_spec(p["g2"]),
                  _full_spec(p["b2"]), _full_spec(cw), _full_spec(cb)],
        out_specs=act_spec(cf),
        out_shape=jax.ShapeDtypeStruct((n, rimg, cf), jnp.float32),
        compiler_params=_cparams(),
    )(raw2, st2, p["g2"], p["b2"], cw, cb)


# ---------------------------------------------------------------------------
# MaxPool 2x2 (gridded per image, strided in-kernel reads, padded output).
# ---------------------------------------------------------------------------
def _maxpool_kernel(x_ref, o_ref, *, hh, wh, q_out):
    c = o_ref.shape[-1]
    t00 = x_ref[pl.ds(2, hh, 2), pl.ds(1, wh, 2), :]
    t01 = x_ref[pl.ds(2, hh, 2), pl.ds(2, wh, 2), :]
    t10 = x_ref[pl.ds(3, hh, 2), pl.ds(1, wh, 2), :]
    t11 = x_ref[pl.ds(3, hh, 2), pl.ds(2, wh, 2), :]
    m = jnp.maximum(jnp.maximum(t00, t01), jnp.maximum(t10, t11))
    # zero only the guard/pad border, then store the dense interior
    o_ref[pl.ds(0, 2), :, :] = jnp.zeros((2, q_out, c), o_ref.dtype)
    o_ref[pl.ds(hh + 2, 2), :, :] = jnp.zeros((2, q_out, c), o_ref.dtype)
    o_ref[pl.ds(2, hh), pl.ds(0, 1), :] = jnp.zeros((hh, 1, c), o_ref.dtype)
    o_ref[pl.ds(2, hh), pl.ds(wh + 1, q_out - wh - 1), :] = jnp.zeros(
        (hh, q_out - wh - 1, c), o_ref.dtype)
    o_ref[pl.ds(2, hh), pl.ds(1, wh), :] = m


def maxpool2x2(x_flat, n, h, w):
    c = x_flat.shape[-1]
    q_in = _round_up(w + 2, 8)
    hh, wh = h // 2, w // 2
    q_out = _round_up(wh + 2, 8)
    x4 = x_flat.reshape(n, h + 4, q_in, c)
    out = pl.pallas_call(
        functools.partial(_maxpool_kernel, hh=hh, wh=wh, q_out=q_out),
        grid=(n,),
        in_specs=[pl.BlockSpec((None, h + 4, q_in, c), lambda i: (i, 0, 0, 0))],
        out_specs=pl.BlockSpec((None, hh + 4, q_out, c), lambda i: (i, 0, 0, 0)),
        out_shape=jax.ShapeDtypeStruct((n, hh + 4, q_out, c), jnp.bfloat16),
        compiler_params=_cparams(),
    )(x4)
    return out.reshape(n, (hh + 4) * q_out, c)


# ---------------------------------------------------------------------------
# ConvTranspose2d (k=2, s=2): per-image MXU-shaped dots, padded output written
# directly (no wrapper jnp.pad).
# ---------------------------------------------------------------------------
def _upconv_kernel(x_ref, w_ref, b_ref, o_ref, *, h, w, q_out):
    cin = x_ref.shape[-1]
    cout = o_ref.shape[-1]
    ho, wo = 2 * h, 2 * w
    x2 = x_ref[pl.ds(2, h), pl.ds(1, w), :].reshape(h * w, cin)   # (h*w, cin)
    rows = []
    for dy in range(2):
        cols = []
        for dx in range(2):
            y = jnp.dot(x2, w_ref[2 * dy + dx],
                        preferred_element_type=jnp.float32) + b_ref[...]
            cols.append(y.reshape(h, w, 1, cout))
        rows.append(jnp.concatenate(cols, axis=2).reshape(h, 1, wo, cout))
    y_full = jnp.concatenate(rows, axis=1).reshape(ho, wo, cout)
    zr = jnp.zeros((2, q_out, cout), o_ref.dtype)
    o_ref[pl.ds(0, 2), :, :] = zr
    o_ref[pl.ds(ho + 2, 2), :, :] = zr
    o_ref[pl.ds(2, ho), pl.ds(0, 1), :] = jnp.zeros((ho, 1, cout), o_ref.dtype)
    o_ref[pl.ds(2, ho), pl.ds(wo + 1, q_out - wo - 1), :] = jnp.zeros(
        (ho, q_out - wo - 1, cout), o_ref.dtype)
    o_ref[pl.ds(2, ho), pl.ds(1, wo), :] = y_full.astype(o_ref.dtype)


def upconv2x2(x_flat, n, h, w, p):
    cin = x_flat.shape[-1]
    cout = p["b"].shape[-1]
    q_in = _round_up(w + 2, 8)
    ho, wo = 2 * h, 2 * w
    q_out = _round_up(wo + 2, 8)
    x4 = x_flat.reshape(n, h + 4, q_in, cin)
    out = pl.pallas_call(
        functools.partial(_upconv_kernel, h=h, w=w, q_out=q_out),
        grid=(n,),
        in_specs=[pl.BlockSpec((None, h + 4, q_in, cin), lambda i: (i, 0, 0, 0)),
                  pl.BlockSpec((4, cin, cout), lambda i: (0, 0, 0)),
                  pl.BlockSpec((1, cout), lambda i: (0, 0))],
        out_specs=pl.BlockSpec((None, ho + 4, q_out, cout), lambda i: (i, 0, 0, 0)),
        out_shape=jax.ShapeDtypeStruct((n, ho + 4, q_out, cout), jnp.bfloat16),
        compiler_params=_cparams(),
    )(x4, p["w"], p["b"])
    return out.reshape(n, (ho + 4) * q_out, cout)


# ---------------------------------------------------------------------------
# Parameters (deterministic, in-script).
# ---------------------------------------------------------------------------
def make_params(key, in_ch=2, out_ch=2, f=32):
    keys = iter(jax.random.split(key, 128))

    def conv3(cin, cout):
        wt = jax.random.normal(next(keys), (cout, cin, 3, 3), jnp.float32) * 0.1
        # (Cout,Cin,3,3) -> (3,3,Cin,Cout) -> (9,Cin,Cout), tap index = dy*3+dx
        return jnp.transpose(wt, (2, 3, 1, 0)).reshape(9, cin, cout).astype(jnp.bfloat16)

    def bn(c):
        g = 1.0 + 0.1 * jax.random.normal(next(keys), (1, c), jnp.float32)
        b = 0.1 * jax.random.normal(next(keys), (1, c), jnp.float32)
        return g, b

    def block_p(cins, cout):
        w_full = conv3(sum(cins), cout)    # conv1 built over concatenated channels
        w1, off = [], 0
        for c in cins:
            w1.append(w_full[:, off:off + c, :])
            off += c
        g1, b1 = bn(cout)
        w2 = conv3(cout, cout)
        g2, b2 = bn(cout)
        return dict(w1=tuple(w1), g1=g1, b1=b1, w2=w2, g2=g2, b2=b2)

    def up_p(cin, cout):
        wt = jax.random.normal(next(keys), (cin, cout, 2, 2), jnp.float32) * 0.1
        b = 0.1 * jax.random.normal(next(keys), (1, cout), jnp.float32)
        # (Cin,Cout,2,2) -> (2,2,Cin,Cout) -> (4,Cin,Cout), tap index = dy*2+dx
        wt = jnp.transpose(wt, (2, 3, 0, 1)).reshape(4, cin, cout).astype(jnp.bfloat16)
        return dict(w=wt, b=b)

    p = {}
    p["enc1"] = block_p((in_ch,), f)
    p["enc2"] = block_p((f,), 2 * f)
    p["enc3"] = block_p((2 * f,), 4 * f)
    p["enc4"] = block_p((4 * f,), 8 * f)
    p["bottleneck"] = block_p((8 * f,), 16 * f)
    p["up4"] = up_p(16 * f, 8 * f)
    p["dec4"] = block_p((8 * f, 8 * f), 8 * f)   # cat(up4, enc4)
    p["up3"] = up_p(8 * f, 4 * f)
    p["dec3"] = block_p((4 * f, 4 * f), 4 * f)
    p["up2"] = up_p(4 * f, 2 * f)
    p["dec2"] = block_p((2 * f, 2 * f), 2 * f)
    p["up1"] = up_p(2 * f, f)
    p["dec1"] = block_p((f, f), f)
    wc = jax.random.normal(next(keys), (out_ch, f, 1, 1), jnp.float32) * 0.1
    bc = 0.1 * jax.random.normal(next(keys), (1, out_ch), jnp.float32)
    p["conv_w"] = jnp.transpose(wc.reshape(out_ch, f), (1, 0)).astype(jnp.bfloat16)
    p["conv_b"] = bc
    return p


# ---------------------------------------------------------------------------
# Forward pass (UNetCamBottle.forward: returns (conv(dec1), bottleneck)).
# ---------------------------------------------------------------------------
def unet_cam_bottle(x_nchw, params):
    n, _, h, w = x_nchw.shape
    q0 = _round_up(w + 2, 8)

    x = jnp.transpose(x_nchw, (0, 2, 3, 1)).astype(jnp.bfloat16)   # NCHW -> NHWC
    x = jnp.pad(x, ((0, 0), (2, 2), (1, q0 - w - 1), (0, 0)))      # guard+pad rows
    x = x.reshape(n, (h + 4) * q0, x.shape[-1])                    # flat padded

    enc1 = conv_block([x], n, h, w, params["enc1"])
    enc2 = conv_block([maxpool2x2(enc1, n, h, w)], n, h // 2, w // 2, params["enc2"])
    enc3 = conv_block([maxpool2x2(enc2, n, h // 2, w // 2)], n, h // 4, w // 4,
                      params["enc3"])
    enc4 = conv_block([maxpool2x2(enc3, n, h // 4, w // 4)], n, h // 8, w // 8,
                      params["enc4"])
    bott = conv_block([maxpool2x2(enc4, n, h // 8, w // 8)], n, h // 16, w // 16,
                      params["bottleneck"])

    up4 = upconv2x2(bott, n, h // 16, w // 16, params["up4"])
    dec4 = conv_block([up4, enc4], n, h // 8, w // 8, params["dec4"])
    up3 = upconv2x2(dec4, n, h // 8, w // 8, params["up3"])
    dec3 = conv_block([up3, enc3], n, h // 4, w // 4, params["dec3"])
    up2 = upconv2x2(dec3, n, h // 4, w // 4, params["up2"])
    dec2 = conv_block([up2, enc2], n, h // 2, w // 2, params["dec2"])
    up1 = upconv2x2(dec2, n, h // 2, w // 2, params["up1"])
    # dec1 block with the final 1x1 conv fused into its epilogue.
    out_flat = conv_block([up1, enc1], n, h, w, params["dec1"],
                          final_conv=(params["conv_w"], params["conv_b"]))

    out = out_flat.reshape(n, h + 4, q0, -1)[:, 2:h + 2, 1:w + 1, :]
    out = jnp.transpose(out, (0, 3, 1, 2))                         # back to NCHW

    hb, wb = h // 16, w // 16
    qb = _round_up(wb + 2, 8)
    cb_ch = params["bottleneck"]["g2"].shape[1]
    bott4 = bott.reshape(n, hb + 4, qb, cb_ch)[:, 2:hb + 2, 1:wb + 1, :]
    bott_out = jnp.transpose(bott4, (0, 3, 1, 2)).astype(jnp.float32)
    return out, bott_out


if __name__ == "__main__":
    key = jax.random.PRNGKey(0)
    k_x, k_p = jax.random.split(key)

    N, C_IN, H, W = 2, 2, 16, 16   # 4 pools => H, W multiples of 16
    F = 32                         # init_features (module default)
    C_OUT = 2

    x = jax.random.normal(k_x, (N, C_IN, H, W), jnp.float32)
    params = make_params(k_p, in_ch=C_IN, out_ch=C_OUT, f=F)

    y, bottleneck = unet_cam_bottle(x, params)
    jax.block_until_ready(y)
    jax.block_until_ready(bottleneck)

    assert y.shape == (N, C_OUT, H, W), y.shape
    assert bottleneck.shape == (N, 16 * F, H // 16, W // 16), bottleneck.shape
    assert bool(jnp.all(jnp.isfinite(y))) and bool(jnp.all(jnp.isfinite(bottleneck)))
    print("KERNEL_OK")
</pallas_src>

<mosaic_0001>
module attributes {stable_mosaic.version = 11 : i64} {
  func.func @_conv_stats_kernel(%arg0: i32, %arg1: memref<1x480x2xbf16, #tpu.memory_space<vmem>>, %arg2: memref<9x2x32xbf16, #tpu.memory_space<vmem>>, %arg3: memref<1x480x32xbf16, #tpu.memory_space<vmem>>, %arg4: memref<1x2x32xf32, #tpu.memory_space<vmem>>) attributes {dimension_semantics = [#tpu.dimension_semantics<parallel>], iteration_bounds = array<i64: 2>, scalar_prefetch = 0 : i64, scratch_operands = 0 : i64, tpu.core_type = #tpu.core_type<tc>, window_params = [{transform_indices = @transform_0, window_bounds = array<i64: 1, 480, 2>}, {pipeline_mode = #tpu.pipeline_mode<synchronous>, transform_indices = @transform_1, window_bounds = array<i64: 9, 2, 32>}, {transform_indices = @transform_2, window_bounds = array<i64: 1, 480, 32>}, {transform_indices = @transform_3, window_bounds = array<i64: 1, 2, 32>}]} {
    %c0 = arith.constant 0 : index
    %c23 = arith.constant 23 : index
    %c0_0 = arith.constant 0 : index
    %0 = vector.load %arg1[%c0, %c23, %c0_0] : memref<1x480x2xbf16, #tpu.memory_space<vmem>>, vector<1x384x2xbf16>
    %1 = vector.shape_cast %0 : vector<1x384x2xbf16> to vector<384x2xbf16>
    %c0_1 = arith.constant 0 : index
    %c0_2 = arith.constant 0 : index
    %c0_3 = arith.constant 0 : index
    %2 = vector.load %arg2[%c0_1, %c0_2, %c0_3] : memref<9x2x32xbf16, #tpu.memory_space<vmem>>, vector<1x2x32xbf16>
    %3 = vector.shape_cast %2 : vector<1x2x32xbf16> to vector<2x32xbf16>
    %cst = arith.constant dense<0.000000e+00> : vector<384x32xf32>
    %4 = tpu.matmul %1, %3, %cst {dimension_numbers = #tpu.dot_dimension_numbers<[1], [0], [0], [1], [0, 0, 1, 1], [], []>} : vector<384x2xbf16>, vector<2x32xbf16>, vector<384x32xf32> -> vector<384x32xf32>
    %c0_4 = arith.constant 0 : index
    %c24 = arith.constant 24 : index
    %c0_5 = arith.constant 0 : index
    %5 = vector.load %arg1[%c0_4, %c24, %c0_5] : memref<1x480x2xbf16, #tpu.memory_space<vmem>>, vector<1x384x2xbf16>
    %6 = vector.shape_cast %5 : vector<1x384x2xbf16> to vector<384x2xbf16>
    %c1 = arith.constant 1 : index
    %c0_6 = arith.constant 0 : index
    %c0_7 = arith.constant 0 : index
    %7 = vector.load %arg2[%c1, %c0_6, %c0_7] : memref<9x2x32xbf16, #tpu.memory_space<vmem>>, vector<1x2x32xbf16>
    %8 = vector.shape_cast %7 : vector<1x2x32xbf16> to vector<2x32xbf16>
    %cst_8 = arith.constant dense<0.000000e+00> : vector<384x32xf32>
    %9 = tpu.matmul %6, %8, %cst_8 {dimension_numbers = #tpu.dot_dimension_numbers<[1], [0], [0], [1], [0, 0, 1, 1], [], []>} : vector<384x2xbf16>, vector<2x32xbf16>, vector<384x32xf32> -> vector<384x32xf32>
    %10 = arith.addf %4, %9 : vector<384x32xf32>
    %c0_9 = arith.constant 0 : index
    %c25 = arith.constant 25 : index
    %c0_10 = arith.constant 0 : index
    %11 = vector.load %arg1[%c0_9, %c25, %c0_10] : memref<1x480x2xbf16, #tpu.memory_space<vmem>>, vector<1x384x2xbf16>
    %12 = vector.shape_cast %11 : vector<1x384x2xbf16> to vector<384x2xbf16>
    %c2 = arith.constant 2 : index
    %c0_11 = arith.constant 0 : index
    %c0_12 = arith.constant 0 : index
    %13 = vector.load %arg2[%c2, %c0_11, %c0_12] : memref<9x2x32xbf16, #tpu.memory_space<vmem>>, vector<1x2x32xbf16>
    %14 = vector.shape_cast %13 : vector<1x2x32xbf16> to vector<2x32xbf16>
    %cst_13 = arith.constant dense<0.000000e+00> : vector<384x32xf32>
    %15 = tpu.matmul %12, %14, %cst_13 {dimension_numbers = #tpu.dot_dimension_numbers<[1], [0], [0], [1], [0, 0, 1, 1], [], []>} : vector<384x2xbf16>, vector<2x32xbf16>, vector<384x32xf32> -> vector<384x32xf32>
    %16 = arith.addf %10, %15 : vector<384x32xf32>
    %c0_14 = arith.constant 0 : index
    %c47 = arith.constant 47 : index
    %c0_15 = arith.constant 0 : index
    %17 = vector.load %arg1[%c0_14, %c47, %c0_15] : memref<1x480x2xbf16, #tpu.memory_space<vmem>>, vector<1x384x2xbf16>
    %18 = vector.shape_cast %17 : vector<1x384x2xbf16> to vector<384x2xbf16>
    %c3 = arith.constant 3 : index
    %c0_16 = arith.constant 0 : index
    %c0_17 = arith.constant 0 : index
    %19 = vector.load %arg2[%c3, %c0_16, %c0_17] : memref<9x2x32xbf16, #tpu.memory_space<vmem>>, vector<1x2x32xbf16>
    %20 = vector.shape_cast %19 : vector<1x2x32xbf16> to vector<2x32xbf16>
    %cst_18 = arith.constant dense<0.000000e+00> : vector<384x32xf32>
    %21 = tpu.matmul %18, %20, %cst_18 {dimension_numbers = #tpu.dot_dimension_numbers<[1], [0], [0], [1], [0, 0, 1, 1], [], []>} : vector<384x2xbf16>, vector<2x32xbf16>, vector<384x32xf32> -> vector<384x32xf32>
    %22 = arith.addf %16, %21 : vector<384x32xf32>
    %c0_19 = arith.constant 0 : index
    %c48 = arith.constant 48 : index
    %c0_20 = arith.constant 0 : index
    %23 = vector.load %arg1[%c0_19, %c48, %c0_20] : memref<1x480x2xbf16, #tpu.memory_space<vmem>>, vector<1x384x2xbf16>
    %24 = vector.shape_cast %23 : vector<1x384x2xbf16> to vector<384x2xbf16>
    %c4 = arith.constant 4 : index
    %c0_21 = arith.constant 0 : index
    %c0_22 = arith.constant 0 : index
    %25 = vector.load %arg2[%c4, %c0_21, %c0_22] : memref<9x2x32xbf16, #tpu.memory_space<vmem>>, vector<1x2x32xbf16>
    %26 = vector.shape_cast %25 : vector<1x2x32xbf16> to vector<2x32xbf16>
    %cst_23 = arith.constant dense<0.000000e+00> : vector<384x32xf32>
    %27 = tpu.matmul %24, %26, %cst_23 {dimension_numbers = #tpu.dot_dimension_numbers<[1], [0], [0], [1], [0, 0, 1, 1], [], []>} : vector<384x2xbf16>, vector<2x32xbf16>, vector<384x32xf32> -> vector<384x32xf32>
    %28 = arith.addf %22, %27 : vector<384x32xf32>
    %c0_24 = arith.constant 0 : index
    %c49 = arith.constant 49 : index
    %c0_25 = arith.constant 0 : index
    %29 = vector.load %arg1[%c0_24, %c49, %c0_25] : memref<1x480x2xbf16, #tpu.memory_space<vmem>>, vector<1x384x2xbf16>
    %30 = vector.shape_cast %29 : vector<1x384x2xbf16> to vector<384x2xbf16>
    %c5 = arith.constant 5 : index
    %c0_26 = arith.constant 0 : index
    %c0_27 = arith.constant 0 : index
    %31 = vector.load %arg2[%c5, %c0_26, %c0_27] : memref<9x2x32xbf16, #tpu.memory_space<vmem>>, vector<1x2x32xbf16>
    %32 = vector.shape_cast %31 : vector<1x2x32xbf16> to vector<2x32xbf16>
    %cst_28 = arith.constant dense<0.000000e+00> : vector<384x32xf32>
    %33 = tpu.matmul %30, %32, %cst_28 {dimension_numbers = #tpu.dot_dimension_numbers<[1], [0], [0], [1], [0, 0, 1, 1], [], []>} : vector<384x2xbf16>, vector<2x32xbf16>, vector<384x32xf32> -> vector<384x32xf32>
    %34 = arith.addf %28, %33 : vector<384x32xf32>
    %c0_29 = arith.constant 0 : index
    %c71 = arith.constant 71 : index
    %c0_30 = arith.constant 0 : index
    %35 = vector.load %arg1[%c0_29, %c71, %c0_30] : memref<1x480x2xbf16, #tpu.memory_space<vmem>>, vector<1x384x2xbf16>
    %36 = vector.shape_cast %35 : vector<1x384x2xbf16> to vector<384x2xbf16>
    %c6 = arith.constant 6 : index
    %c0_31 = arith.constant 0 : index
    %c0_32 = arith.constant 0 : index
    %37 = vector.load %arg2[%c6, %c0_31, %c0_32] : memref<9x2x32xbf16, #tpu.memory_space<vmem>>, vector<1x2x32xbf16>
    %38 = vector.shape_cast %37 : vector<1x2x32xbf16> to vector<2x32xbf16>
    %cst_33 = arith.constant dense<0.000000e+00> : vector<384x32xf32>
    %39 = tpu.matmul %36, %38, %cst_33 {dimension_numbers = #tpu.dot_dimension_numbers<[1], [0], [0], [1], [0, 0, 1, 1], [], []>} : vector<384x2xbf16>, vector<2x32xbf16>, vector<384x32xf32> -> vector<384x32xf32>
    %40 = arith.addf %34, %39 : vector<384x32xf32>
    %c0_34 = arith.constant 0 : index
    %c72 = arith.constant 72 : index
    %c0_35 = arith.constant 0 : index
    %41 = vector.load %arg1[%c0_34, %c72, %c0_35] : memref<1x480x2xbf16, #tpu.memory_space<vmem>>, vector<1x384x2xbf16>
    %42 = vector.shape_cast %41 : vector<1x384x2xbf16> to vector<384x2xbf16>
    %c7 = arith.constant 7 : index
    %c0_36 = arith.constant 0 : index
    %c0_37 = arith.constant 0 : index
    %43 = vector.load %arg2[%c7, %c0_36, %c0_37] : memref<9x2x32xbf16, #tpu.memory_space<vmem>>, vector<1x2x32xbf16>
    %44 = vector.shape_cast %43 : vector<1x2x32xbf16> to vector<2x32xbf16>
    %cst_38 = arith.constant dense<0.000000e+00> : vector<384x32xf32>
    %45 = tpu.matmul %42, %44, %cst_38 {dimension_numbers = #tpu.dot_dimension_numbers<[1], [0], [0], [1], [0, 0, 1, 1], [], []>} : vector<384x2xbf16>, vector<2x32xbf16>, vector<384x32xf32> -> vector<384x32xf32>
    %46 = arith.addf %40, %45 : vector<384x32xf32>
    %c0_39 = arith.constant 0 : index
    %c73 = arith.constant 73 : index
    %c0_40 = arith.constant 0 : index
    %47 = vector.load %arg1[%c0_39, %c73, %c0_40] : memref<1x480x2xbf16, #tpu.memory_space<vmem>>, vector<1x384x2xbf16>
    %48 = vector.shape_cast %47 : vector<1x384x2xbf16> to vector<384x2xbf16>
    %c8 = arith.constant 8 : index
    %c0_41 = arith.constant 0 : index
    %c0_42 = arith.constant 0 : index
    %49 = vector.load %arg2[%c8, %c0_41, %c0_42] : memref<9x2x32xbf16, #tpu.memory_space<vmem>>, vector<1x2x32xbf16>
    %50 = vector.shape_cast %49 : vector<1x2x32xbf16> to vector<2x32xbf16>
    %cst_43 = arith.constant dense<0.000000e+00> : vector<384x32xf32>
    %51 = tpu.matmul %48, %50, %cst_43 {dimension_numbers = #tpu.dot_dimension_numbers<[1], [0], [0], [1], [0, 0, 1, 1], [], []>} : vector<384x2xbf16>, vector<2x32xbf16>, vector<384x32xf32> -> vector<384x32xf32>
    %52 = arith.addf %46, %51 : vector<384x32xf32>
    %53 = tpu.iota {dimensions = array<i32: 1>} : vector<1x24x1xi32>
    %c1_i32 = arith.constant 1 : i32
    %54 = vector.broadcast %c1_i32 : i32 to vector<1x24x1xi32>
    %55 = arith.cmpi sge, %53, %54 : vector<1x24x1xi32>
    %c16_i32 = arith.constant 16 : i32
    %56 = vector.broadcast %c16_i32 : i32 to vector<1x24x1xi32>
    %57 = arith.cmpi sle, %53, %56 : vector<1x24x1xi32>
    %58 = arith.andi %55, %57 : vector<1x24x1xi1>
    %59 = vector.shape_cast %52 : vector<384x32xf32> to vector<16x24x32xf32>
    %cst_44 = arith.constant 0.000000e+00 : f32
    %60 = vector.shape_cast %58 : vector<1x24x1xi1> to vector<1x24x1xi1>
    %61 = vector.broadcast %60 : vector<1x24x1xi1> to vector<16x24x32xi1>
    %62 = vector.broadcast %cst_44 : f32 to vector<16x24x32xf32>
    %63 = arith.select %61, %59, %62 : vector<16x24x32xi1>, vector<16x24x32xf32>
    %cst_45 = arith.constant dense<0.000000e+00> : vector<24x32xf32>
    %64 = vector.multi_reduction <add>, %63, %cst_45 [0] : vector<16x24x32xf32> to vector<24x32xf32>
    %cst_46 = arith.constant dense<0.000000e+00> : vector<32xf32>
    %65 = vector.multi_reduction <add>, %64, %cst_46 [0] : vector<24x32xf32> to vector<32xf32>
    %66 = vector.shape_cast %65 : vector<32xf32> to vector<1x32xf32>
    %67 = arith.mulf %63, %63 : vector<16x24x32xf32>
    %cst_47 = arith.constant dense<0.000000e+00> : vector<24x32xf32>
    %68 = vector.multi_reduction <add>, %67, %cst_47 [0] : vector<16x24x32xf32> to vector<24x32xf32>
    %cst_48 = arith.constant dense<0.000000e+00> : vector<32xf32>
    %69 = vector.multi_reduction <add>, %68, %cst_48 [0] : vector<24x32xf32> to vector<32xf32>
    %70 = vector.shape_cast %69 : vector<32xf32> to vector<1x32xf32>
    %c0_49 = arith.constant 0 : index
    %c0_50 = arith.constant 0 : index
    %c0_51 = arith.constant 0 : index
    %71 = vector.load %arg4[%c0_49, %c0_50, %c0_51] : memref<1x2x32xf32, #tpu.memory_space<vmem>>, vector<1x1x32xf32>
    %72 = vector.shape_cast %71 : vector<1x1x32xf32> to vector<1x32xf32>
    %73 = vector.shape_cast %66 : vector<1x32xf32> to vector<1x1x32xf32>
    tpu.vector_store %arg4[%c0_49, %c0_50, %c0_51], %73 {strides = array<i32>} : memref<1x2x32xf32, #tpu.memory_space<vmem>>, vector<1x1x32xf32>,
    %c0_52 = arith.constant 0 : index
    %c1_53 = arith.constant 1 : index
    %c0_54 = arith.constant 0 : index
    %74 = vector.load %arg4[%c0_52, %c1_53, %c0_54] : memref<1x2x32xf32, #tpu.memory_space<vmem>>, vector<1x1x32xf32>
    %75 = vector.shape_cast %74 : vector<1x1x32xf32> to vector<1x32xf32>
    %76 = vector.shape_cast %70 : vector<1x32xf32> to vector<1x1x32xf32>
    tpu.vector_store %arg4[%c0_52, %c1_53, %c0_54], %76 {strides = array<i32>} : memref<1x2x32xf32, #tpu.memory_space<vmem>>, vector<1x1x32xf32>,
    %77 = arith.truncf %52 : vector<384x32xf32> to vector<384x32xbf16>
    %c0_55 = arith.constant 0 : index
    %c48_56 = arith.constant 48 : index
    %c0_57 = arith.constant 0 : index
    %78 = vector.load %arg3[%c0_55, %c48_56, %c0_57] : memref<1x480x32xbf16, #tpu.memory_space<vmem>>, vector<1x384x32xbf16>
    %79 = vector.shape_cast %78 : vector<1x384x32xbf16> to vector<384x32xbf16>
    %80 = vector.shape_cast %77 : vector<384x32xbf16> to vector<1x384x32xbf16>
    tpu.vector_store %arg3[%c0_55, %c48_56, %c0_57], %80 {strides = array<i32>} : memref<1x480x32xbf16, #tpu.memory_space<vmem>>, vector<1x384x32xbf16>,
    return
  }
  func.func @transform_0(%arg0: i32) -> (i32, i32, i32) {
    %c0_i32 = arith.constant 0 : i32
    %c0_i32_0 = arith.constant 0 : i32
    %c0_i32_1 = arith.constant 0 : i32
    return %arg0, %c0_i32, %c0_i32_0 : i32, i32, i32
  }
  func.func @transform_1(%arg0: i32) -> (i32, i32, i32) {
    %c0_i32 = arith.constant 0 : i32
    %c0_i32_0 = arith.constant 0 : i32
    %c0_i32_1 = arith.constant 0 : i32
    %c0_i32_2 = arith.constant 0 : i32
    return %c0_i32, %c0_i32_0, %c0_i32_1 : i32, i32, i32
  }
  func.func @transform_2(%arg0: i32) -> (i32, i32, i32) {
    %c0_i32 = arith.constant 0 : i32
    %c0_i32_0 = arith.constant 0 : i32
    %c0_i32_1 = arith.constant 0 : i32
    return %arg0, %c0_i32, %c0_i32_0 : i32, i32, i32
  }
  func.func @transform_3(%arg0: i32) -> (i32, i32, i32) {
    %c0_i32 = arith.constant 0 : i32
    %c0_i32_0 = arith.constant 0 : i32
    %c0_i32_1 = arith.constant 0 : i32
    return %arg0, %c0_i32, %c0_i32_0 : i32, i32, i32
  }
}

</mosaic_0001>

<bundles_post_ra>
// kernel: tpu_custom_call.1
= control target key start
LH: loop header
LB: loop body
LE: loop exit
PB: predicated region body
PF: predicated region fallthrough
CT: control target
= control target key end

     0   :  { %9 = vsyncpa [#allocation3], 0  ;;  %s10227_s0 = inlined_call_operand.vmem [shape: bf16[2,480,2], index: 0, kind: input, shape index: {}]   ;;  %s10228_s1 = inlined_call_operand.vmem [shape: bf16[9,2,32], index: 1, kind: input, shape index: {}]   ;;  %s10229_s2 = inlined_call_operand.vmem [shape: bf16[2,480,32], index: 2, kind: output, shape index: {0}]   ;;  %s10230_s3 = inlined_call_operand.hbm [shape: f32[2,2,32], index: 3, kind: output, shape index: {1}]  }
   0x1   :  { %11 = vsyncpa [#allocation3 + $0x1], 0  ;;  %s8266_s12 = smov 0   ;;  %s8268_s13 = smov 0  }
   0x2   :  { %s8270_s14 = smov 0   ;;  %s8272_s15 = smov 0  }
   0x3 LB: > { %s8287_s16 = sadd.s32 4294967295, %s8243_s15   ;;  %s6278_s17 = sadd.s32 4294967294, %s8243_s15   ;;  %s8243_s15 = sphi %s8272_s15, %s10334_s15   ;;  %s8239_s14 = sphi %s8270_s14, %s10333_s14   ;;  %s8235_s13 = sphi %s8268_s13, %s10332_s13   ;;  %s8231_s12 = sphi %s8266_s12, %s10331_s12  }
   0x4   : > { %s8291_s18 = sadd.s32 1, %s8243_s15   ;;  %s97_s19 = sadd.s32 1, %s8239_s14 }
   0x5   : > { %s94_s20 = ssub.s32 %s8243_s15, %s8291_s18  ;;  %p107_p0 = scmp.ne.s32.totalorder %s8239_s14, %s8235_s13 }
   0x6   : > { %p95_p1 = scmp.eq.s32.totalorder %s94_s20, 0  ;;  %p108_p2 = scmp.eq.s32.totalorder %s8287_s16, 1 }
   0x7   : > { %p113_p3 = scmp.ne.s32.totalorder %s8235_s13, %s8231_s12  ;;  %p114_p4 = scmp.eq.s32.totalorder %s6278_s17, 1 }
   0x8   : > { %s8302_s21 = scalar_select %p95_p1, %s8239_s14, %s97_s19  }
   0x9   : > { %p8304_p5 = por %p108_p2, %p107_p0  ;;  %p8308_p6 = por %p114_p4, %p113_p3 }
   0xa   : > { %p6281_p7 = scmp.ge.s32.totalorder %s8243_s15, 1  ;;  %p143_p8 = scmp.lt.s32.totalorder %s8243_s15, 3 }
   0xc   : > { %p144_p9 = pnand %p6281_p7, %p143_p8 }
   0xe   : > { %147 = sbr.rel (%p144_p9) target bundleno = 717 (0x2cd), region = 28 }
  0x15   : > { %v6285_v0 = vld [vmem:[%s10228_s1 + $0x1] sm:$0x1]  ;;  %vm428_vm0 = vcmask 1040384   ;;  %v6483_v1 = vld [vmem:[%s10228_s1 + $0x4] sm:$0x1]  ;;  %p172_p10 = scmp.lt.s32.totalorder %s8287_s16, 1 }
  0x16   : > { %7892 = vmatprep.subr.msk.bf16.mxu1 %vm428_vm0, %v6285_v0  ;;  %7896 = vmatprep.subr.msk.bf16.mxu0 %vm428_vm0, %v6483_v1  ;;  %v430_v2 = vsel %vm428_vm0, %v6285_v0, 0  ;;  %v8325_v3 = vsel %vm428_vm0, %v6483_v1, 0  ;;  %v232_v4 = vld [vmem:[%s10228_s1] sm:$0x1]  ;;  %v6532_v5 = vld [vmem:[%s10228_s1 + $0x5] sm:$0x1] }
  0x17   : > { %10257 = vst [vmem:[#allocation5_spill] sm:$0xff] %v8325_v3  ;;  %7057 = vmatpush3.bf16.msra.mxu1 %v430_v2  ;;  %7257 = vmatpush3.bf16.msra.mxu0 %v8325_v3  ;;  %s8332_s30 = scalar_select %p172_p10, %s8287_s16, 1  ;;  %vm355_vm1 = vcmask 15360   ;;  %v982_v19 = vsel %vm428_vm0, %v232_v4, 0  ;;  %v8361_v24 = vld [vmem:[%s10228_s1 + $0x2] sm:$0x1] }
  0x18   : > { %7893 = vmatprep.subr.msk.bf16.mxu1 %vm428_vm0, %v232_v4  ;;  %7898 = vmatprep.subr.msk.bf16.mxu0 %vm428_vm0, %v6532_v5  ;;  %v3491_v33 = vsel %vm428_vm0, %v6532_v5, 0  ;;  %vm684_vm2 = vsmask.f32 4352  ;;  %v8394_v51 = vld [vmem:[%s10228_s1 + $0x6] sm:$0x1]  ;;  %vm5671_vm5 = vcmask 261120  }
  0x19   : > { %s7902_s6 = smul.u32 240, %s8332_s30  ;;  %vm1383_vm3 = vsmask.f32 7424  ;;  %vm6123_vm6 = vcmask 257024   ;;  %s169_s30 = sand.u32 1, %s8235_s13   ;;  %vm5928_vm8 = vcmask 253952  }
  0x1a   : > { %s6178_s24 = scalar_lea.sflag [#allocation3], %s169_s30 }
  0x1b   : > { %s8345_s9 = scalar_lea.vmem %s10227_s0, %s7902_s6  ;;  %s9849_s8 = scalar_lea.vmem %s10229_s2, %s7902_s6 }
  0x1c   : > { %v183_v6 = vld [vmem:[%s8345_s9 + $0x8] sm:$0x8]  ;;  %v184_v7 = vld [vmem:[%s8345_s9 + $0xc] sm:$0xf]  ;;  %v185_v8 = vld [vmem:[%s8345_s9 + $0x10] sm:$0xf] }
  0x1d   : > { %v186_v9 = vld [vmem:[%s8345_s9 + $0x14] sm:$0xf]  ;;  %v187_v10 = vld [vmem:[%s8345_s9 + $0x18] sm:$0xf]  ;;  %v188_v11 = vld [vmem:[%s8345_s9 + $0x1c] sm:$0xf]  ;;  %v6286_v12 = vcombine.low %v184_v7, %v185_v8  ;;  %v6334_v13 = vcombine.low %v183_v6, %v184_v7 }
  0x1e   : > { %v6287_v14 = vcombine.low %v186_v9, %v187_v10  ;;  %v6335_v15 = vcombine.low %v185_v8, %v186_v9  ;;  %v6336_v16 = vcombine.low %v187_v10, %v188_v11  ;;  %v1929_v17 = vld [vmem:[%s8345_s9 + $0x18] sm:$0xf]  ;;  %v1930_v18 = vld [vmem:[%s8345_s9 + $0x1c] sm:$0xf]  ;;  %v1931_v22 = vld [vmem:[%s8345_s9 + $0x20] sm:$0xf] }
  0x1f   : > { %7058 = vmatprep.mubr.msk.bf16.mxu1 %vm355_vm1, %v6286_v12  ;;  %v686_v20 = vshrl.u32 %v6334_v13, 16  ;;  %v689_v21 = vshll.u32 %v6334_v13, 16  ;;  %v6484_v23 = vcombine.low %v1929_v17, %v1930_v18  ;;  %v1932_v27 = vld [vmem:[%s8345_s9 + $0x24] sm:$0xf]  ;;  %v1933_v28 = vld [vmem:[%s8345_s9 + $0x28] sm:$0xf]  ;;  %v8366_v31 = vcombine.low %v1930_v18, %v1931_v22 }
  0x20   : > { %v694_v25 = vshrl.u32 %v6335_v15, 16  ;;  %v697_v26 = vshll.u32 %v6335_v15, 16  ;;  %7059 = vmatmul.mubr.msk.bf16.vlgmr.msra.gmra.mrb[0].mxu1 %vm355_vm1, %v6287_v14  ;;  %v703_v29 = vshrl.u32 %v6336_v16, 16  ;;  %v706_v30 = vshll.u32 %v6336_v16, 16  ;;  %v189_v34 = vld [vmem:[%s8345_s9 + $0x20] sm:$0xf] }
  0x21   : > { %10258 = vst [vmem:[#allocation6_spill] sm:$0xff] %v8366_v31  ;;  %v8368_v32 = vcombine.low %v1932_v27, %v1933_v28  ;;  %7258 = vmatprep.mubr.msk.bf16.mxu0 %vm355_vm1, %v6484_v23  ;;  %7107 = vmatpush3.bf16.msra.mxu1 %v982_v19  ;;  %v1934_v35 = vld [vmem:[%s8345_s9 + $0x2c] sm:$0xf]  ;;  %v8376_v36 = vrot.slane %v686_v20, 3  ;;  %v8378_v37 = vrot.slane %v689_v21, 4  ;;  %v6485_v38 = vcombine.low %v1931_v22, %v1932_v27  ;;  %s6282_s6 = sshll.u32 %s169_s30, 1 }
  0x22   : > { %7894 = vmatprep.subr.msk.bf16.mxu1 %vm428_vm0, %v8361_v24  ;;  %v190_v39 = vld [vmem:[%s8345_s9 + $0x24] sm:$0xf]  ;;  %v191_v40 = vld [vmem:[%s8345_s9 + $0x28] sm:$0xf]  ;;  %v8382_v41 = vrot.slane %v694_v25, 3  ;;  %v8384_v42 = vrot.slane %v697_v26, 4  ;;  %v6288_v46 = vcombine.low %v188_v11, %v189_v34  ;;  %v6486_v47 = vcombine.low %v1933_v28, %v1934_v35 }
  0x23   : > { %10259 = vst [vmem:[#allocation7_spill] sm:$0xff] %v8368_v32  ;;  %v705_v43 = vrot.slane %v703_v29, 3  ;;  %v708_v44 = vrot.slane %v706_v30, 4  ;;  %v192_v45 = vld [vmem:[%s8345_s9 + $0x2c] sm:$0xf]  ;;  %7259 = vmatmul.mubr.msk.bf16.vlgmr.msra.gmra.mrb[0].mxu0 %vm355_vm1, %v6485_v38  ;;  %v6289_v52 = vcombine.low %v190_v39, %v191_v40  ;;  %v8396_v53 = vcombine.low %v189_v34, %v190_v39  ;;  %s171_s10 = scalar_lea.vmem [#allocation2], %s6282_s6 }
  0x24   : > { %v1935_v48 = vld [vmem:[%s8345_s9 + $0x30] sm:$0xf]  ;;  %v1936_v49 = vld [vmem:[%s8345_s9 + $0x34] sm:$0xf]  ;;  %7307 = vmatpush3.bf16.msra.mxu0 %v3491_v33  ;;  %v1937_v55 = vld [vmem:[%s8345_s9 + $0x38] sm:$0xf]  ;;  %7062 = vmatprep.mubr.msk.bf16.mxu1 %vm355_vm1, %v6288_v46  ;;  %v8405_v59 = vcombine.low %v191_v40, %v192_v45  ;;  %v692_v30 = vor.u32 %v8378_v37, %v8376_v36  ;;  %v700_v40 = vor.u32 %v8384_v42, %v8382_v41 }
  0x25   : > { %v193_v50 = vld [vmem:[%s8345_s9 + $0x30] sm:$0xf]  ;;  %v8398_v54 = vcombine.low %v1934_v35, %v1935_v48  ;;  %v1938_v56 = vld [vmem:[%s8345_s9 + $0x3c] sm:$0xf]  ;;  %v194_v57 = vld [vmem:[%s8345_s9 + $0x34] sm:$0xf]  ;;  %7262 = vmatprep.mubr.msk.bf16.mxu0 %vm355_vm1, %v6486_v47  ;;  %v8415_v63 = vcombine.low %v1936_v49, %v1937_v55  ;;  %v6487_v5 = vcombine.low %v1935_v48, %v1936_v49  ;;  %7899 = vmatprep.subr.msk.bf16.mxu0 %vm428_vm0, %v8394_v51 }
  0x26   : > { %v6290_v58 = vcombine.low %v192_v45, %v193_v50  ;;  %v195_v60 = vld [vmem:[%s8345_s9 + $0x38] sm:$0xf]  ;;  %v8409_v61 = vld [vmem:[%s8345_s9 + $0x40] sm:$0xf]  ;;  %v8412_v62 = vld [vmem:[%s8345_s9 + $0x44] sm:$0xf]  ;;  %v8417_v0 = vcombine.low %v193_v50, %v194_v57  ;;  %v6488_v11 = vcombine.low %v1937_v55, %v1938_v56  ;;  %v8445_v17 = vor.u32 %v708_v44, %v705_v43 }
  0x27   : > { %10260 = vst [vmem:[#allocation8_spill] sm:$0xff] %v8398_v54  ;;  %10261 = vst [vmem:[#allocation9_spill] sm:$0xff] %v8415_v63  ;;  %v196_v1 = vld [vmem:[%s8345_s9 + $0x3c] sm:$0xf]  ;;  %v197_v2 = vld [vmem:[%s8345_s9 + $0x40] sm:$0xf]  ;;  %v8424_v6 = vcombine.low %v1938_v56, %v8409_v61  ;;  %v6291_v23 = vcombine.low %v194_v57, %v195_v60  ;;  %v8510_v42 = vsel %vm684_vm2, %v692_v30, %v700_v40 }
  0x28   : > { %7063 = vmatmul.mubr.msk.bf16.gmra.mrb[4].mxu1 %vm355_vm1, %v6289_v52  ;;  %v1941_v4 = vld [vmem:[%s8345_s9 + $0x48] sm:$0xf]  ;;  %v8426_v7 = vcombine.low %v195_v60, %v196_v1  ;;  %v1942_v8 = vld [vmem:[%s8345_s9 + $0x4c] sm:$0xf]  ;;  %v198_v9 = vld [vmem:[%s8345_s9 + $0x44] sm:$0xf]  ;;  %v6292_v33 = vcombine.low %v196_v1, %v197_v2  ;;  %v8525_v50 = vsel %vm684_vm2, %v700_v40, %v8445_v17  ;;  %v6489_v52 = vcombine.low %v8409_v61, %v8412_v62 }
  0x29   : > { %7066 = vmatprep.mubr.msk.bf16.mxu1 %vm355_vm1, %v6290_v58  ;;  %10262 = vst [vmem:[#allocation10_spill] sm:$0xff] %v8424_v6  ;;  %v199_v10 = vld [vmem:[%s8345_s9 + $0x48] sm:$0xf]  ;;  %v8432_v12 = vcombine.low %v8412_v62, %v1941_v4  ;;  %v8434_v13 = vcombine.low %v197_v2, %v198_v9  ;;  %v8437_v14 = vld [vmem:[%s8345_s9 + $0x50] sm:$0xf]  ;;  %v6490_v56 = vcombine.low %v1941_v4, %v1942_v8  ;;  %s6194_s11 = sshll.u32 %s171_s10, 4  ;;  %s10187_s11 = int_to_ptr.vmem [resolvable:$true] %s6194_s11 }
  0x2a   : > { %v8440_v15 = vld [vmem:[%s8345_s9 + $0x54] sm:$0xf]  ;;  %v200_v16 = vld [vmem:[%s8345_s9 + $0x4c] sm:$0xf]  ;;  %v8448_v18 = vcombine.low %v1942_v8, %v8437_v14  ;;  %v201_v19 = vld [vmem:[%s8345_s9 + $0x50] sm:$0xf]  ;;  %v6293_v1 = vcombine.low %v198_v9, %v199_v10 }
  0x2b   : > { %10263 = vst [vmem:[#allocation11_spill] sm:$0xff] %v8432_v12  ;;  %v8451_v20 = vcombine.low %v199_v10, %v200_v16  ;;  %v8454_v21 = vld [vmem:[%s8345_s9 + $0x58] sm:$0xf]  ;;  %v8457_v22 = vld [vmem:[%s8345_s9 + $0x54] sm:$0xf]  ;;  %7263 = vmatmul.mubr.msk.bf16.gmra.mrb[4].mxu0 %vm355_vm1, %v6487_v5  ;;  %v6294_v61 = vcombine.low %v200_v16, %v201_v19  ;;  %v6491_v9 = vcombine.low %v8437_v14, %v8440_v15  ;;  %s8181_s25 = scalar_lea.vmem %s10187_s11, 32 }
  0x2c   : > { %10264 = vst [vmem:[#allocation12_spill] sm:$0xff] %v8448_v18  ;;  %v1946_v25 = vld [vmem:[%s8345_s9 + $0x5c] sm:$0xf]  ;;  %v8462_v26 = vcombine.low %v8440_v15, %v8454_v21  ;;  %v8465_v27 = vld [vmem:[%s8345_s9 + $0x58] sm:$0xf]  ;;  %v8468_v28 = vcombine.low %v201_v19, %v8457_v22  ;;  %7266 = vmatprep.mubr.msk.bf16.mxu0 %vm355_vm1, %v6488_v11  ;;  %v712_v18 = vshrl.u32 %v8396_v53, 16  ;;  %p8182_p11 = scmp.ne.s32.totalorder %s10187_s11, %s8181_s25 }
  0x2d   : > { %v8471_v29 = vld [vmem:[%s8345_s9 + $0x60] sm:$0xf]  ;;  %v8477_v34 = vld [vmem:[%s8345_s9 + $0x64] sm:$0xf]  ;;  %v204_v38 = vld [vmem:[%s8345_s9 + $0x5c] sm:$0xf]  ;;  %v6492_v19 = vcombine.low %v8454_v21, %v1946_v25 }
  0x2e   : > { %10265 = vst [vmem:[#allocation13_spill] sm:$0xff] %v8462_v26  ;;  %v8480_v35 = vcombine.low %v1946_v25, %v8471_v29  ;;  %v8484_v39 = vld [vmem:[%s8345_s9 + $0x68] sm:$0xf]  ;;  %v205_v43 = vld [vmem:[%s8345_s9 + $0x60] sm:$0xf]  ;;  %v8491_v36 = vcombine.low %v8465_v27, %v204_v38  ;;  %v7993_v14 = vld [vmem:[%s8345_s9 + $0x18] sm:$0xff]   ;;  %p8183_p12 = pnand %p8182_p11, %p8304_p5 }
  0x2f   : > { %v8495_v37 = vcombine.low %v8477_v34, %v8484_v39  ;;  %v8498_v44 = vld [vmem:[%s8345_s9 + $0x64] sm:$0xf]  ;;  %v8501_v45 = vld [vmem:[%s8345_s9 + $0x6c] sm:$0xf]  ;;  %v8507_v41 = vld [vmem:[%s8345_s9 + $0x70] sm:$0xf]  ;;  %v6296_v21 = vcombine.low %v204_v38, %v205_v43 }
  0x30   : > { %10266 = vst [vmem:[#allocation14_spill] sm:$0xff] %v8480_v35  ;;  %v8504_v46 = vcombine.low %v205_v43, %v8498_v44  ;;  %7067 = vmatmul.mubr.msk.bf16.gmra.mrb[8].mxu1 %vm355_vm1, %v6291_v23  ;;  %v8514_v47 = vld [vmem:[%s8345_s9 + $0x68] sm:$0xf]  ;;  %v8518_v48 = vcombine.low %v8501_v45, %v8507_v41  ;;  %v8521_v49 = vld [vmem:[%s8345_s9 + $0x6c] sm:$0xf]  ;;  %v6493_v43 = vcombine.low %v8471_v29, %v8477_v34  ;;  %v8000_v6 = vld [vmem:[%s8345_s9 + $0x30] sm:$0xff]   ;;  %p8184_p13 = pneg %p8183_p12 }
  0x31   : > { %10267 = vst [vmem:[#allocation15_spill] sm:$0xff] %v8495_v37  ;;  %7070 = vmatprep.mubr.msk.bf16.mxu1 %vm355_vm1, %v6292_v33  ;;  %v8532_v55 = vcombine.low %v8514_v47, %v8521_v49  ;;  %v8535_v57 = vld [vmem:[%s8345_s9 + $0x70] sm:$0xf]  ;;  %v8538_v58 = vld [vmem:[%s8345_s9 + $0x74] sm:$0xf]  ;;  %v6295_v33 = vcombine.low %v8457_v22, %v8465_v27  ;;  %v7994_v22 = vld [vmem:[%s8345_s9 + $0x20] sm:$0xff]   ;;  %v6494_v3 = vcombine.low %v8484_v39, %v8501_v45 }
  0x32   : > { %10268 = vst [vmem:[#allocation16_spill] sm:$0xff] %v8518_v48  ;;  %v8542_v60 = vcombine.low %v8535_v57, %v8538_v58  ;;  %v8547_v62 = vld [vmem:[%s8345_s9 + $0x78] sm:$0xf]  ;;  %v8550_v2 = vld [vmem:[%s8345_s9 + $0x7c] sm:$0xf]  ;;  %v3225_v27 = vshll.u32 %v7993_v14, 16 }
  0x33   : > { %7267 = vmatmul.mubr.msk.bf16.gmra.mrb[8].mxu0 %vm355_vm1, %v6489_v52  ;;  %v8553_v4 = vld [vmem:[%s8345_s9 + $0x80] sm:$0xf]  ;;  %v8557_v5 = vcombine.low %v8547_v62, %v8550_v2  ;;  %v8561_v8 = vld [vmem:[%s8345_s9 + $0x84] sm:$0xf]  ;;  %v8567_v10 = vld [vmem:[%s8345_s9 + $0x88] sm:$0xf] }
  0x34   : > { %7270 = vmatprep.mubr.msk.bf16.mxu0 %vm355_vm1, %v6490_v56  ;;  %v8571_v11 = vcombine.low %v8553_v4, %v8561_v8  ;;  %v8574_v16 = vld [vmem:[%s8345_s9 + $0x8c] sm:$0xf]  ;;  %v8583_v15 = vld [vmem:[%s8345_s9 + $0x90] sm:$0xf]  ;;  %v8586_v30 = vld [vmem:[%s8345_s9 + $0x94] sm:$0xf] }
  0x35   : > { %v8579_v23 = vcombine.low %v8567_v10, %v8574_v16  ;;  %v8592_v40 = vcombine.low %v8583_v15, %v8586_v30  ;;  %v8596_v25 = vld [vmem:[%s8345_s9 + $0x98] sm:$0xf]  ;;  %v8599_v52 = vld [vmem:[%s8345_s9 + $0x9c] sm:$0xf]  ;;  %v3227_v37 = vrot.slane %v3225_v27, 1  ;;  %v3230_v35 = vshll.u32 %v7994_v22, 16 }
  0x36   : > { %v8604_v56 = vcombine.low %v8596_v25, %v8599_v52  ;;  %v8634_v29 = vld [vmem:[%s8345_s9 + $0xb0] sm:$0xf]  ;;  %v8637_v34 = vld [vmem:[%s8345_s9 + $0xb4] sm:$0xf]  ;;  %v7997_v27 = vld [vmem:[%s8345_s9 + $0x28] sm:$0xff]   ;;  %v714_v31 = vrot.slane %v712_v18, 3 }
  0x37   : > { %v8643_v39 = vcombine.low %v8634_v29, %v8637_v34  ;;  %v1952_v45 = vld [vmem:[%s8345_s9 + $0x74] sm:$0xf]  ;;  %v8651_v26 = vld [vmem:[%s8345_s9 + $0xb8] sm:$0xf]  ;;  %v3232_v12 = vrot.slane %v3230_v35, 1  ;;  %v3242_v54 = vshrl.u32 %v7997_v27, 16 }
  0x38   : > { %7071 = vmatmul.mubr.msk.bf16.gmra.mrb[12].mxu1 %vm355_vm1, %v6293_v1  ;;  %v8608_v1 = vld [vmem:[%s8345_s9 + $0xa0] sm:$0xf]  ;;  %v724_v18 = vshll.u32 %v8405_v59, 16 }
  0x39   : > { %7074 = vmatprep.mubr.msk.bf16.mxu1 %vm355_vm1, %v6294_v61  ;;  %v8611_v61 = vld [vmem:[%s8345_s9 + $0xa4] sm:$0xf]  ;;  %10269 = vst [vmem:[#allocation17_spill] sm:$0xff] %v8643_v39  ;;  %v8660_v63 = vld [vmem:[%s8345_s9 + $0xc0] sm:$0xf] }
  0x3a   : > { %v8616_v38 = vcombine.low %v8608_v1, %v8611_v61 }
  0x3b   : > { %7271 = vmatmul.mubr.msk.bf16.gmra.mrb[12].mxu0 %vm355_vm1, %v6491_v9  ;;  %v8622_v9 = vld [vmem:[%s8345_s9 + $0xa8] sm:$0xf] }
  0x3c   : > { %7274 = vmatprep.mubr.msk.bf16.mxu0 %vm355_vm1, %v6492_v19  ;;  %v8625_v19 = vld [vmem:[%s8345_s9 + $0xac] sm:$0xf] }
  0x3d   : > { %v8631_v48 = vcombine.low %v8622_v9, %v8625_v19 }
  0x40   : > { %7075 = vmatmul.mubr.msk.bf16.gmra.mrb[16].mxu1 %vm355_vm1, %v6295_v33  ;;  %v3223_v33 = vshrl.u32 %v7993_v14, 16  ;;  %v6298_v14 = vcombine.low %v8521_v49, %v8535_v57  ;;  %v715_v49 = vshll.u32 %v8396_v53, 16  ;;  %v8669_v57 = vld [vmem:[%s8345_s9 + $0xc4] sm:$0xf]  ;;  %v3246_v53 = vshll.u32 %v8000_v6, 16 }
  0x41   : > { %7078 = vmatprep.mubr.msk.bf16.mxu1 %vm355_vm1, %v6296_v21  ;;  %v6297_v21 = vcombine.low %v8498_v44, %v8514_v47  ;;  %v8656_v44 = vld [vmem:[%s8345_s9 + $0xbc] sm:$0xf]  ;;  %v8675_v35 = vcombine.low %v8660_v63, %v8669_v57 }
  0x42   : > { %v3228_v47 = vor.u32 %v3227_v37, %v3223_v33  ;;  %v3238_v37 = vshll.u32 %v7997_v27, 16  ;;  %v3234_v33 = vshrl.u32 %v7994_v22, 16  ;;  %v8687_v27 = vld [vmem:[%s8345_s9 + $0x40] sm:$0xff]  }
  0x43   : > { %7275 = vmatmul.mubr.msk.bf16.gmra.mrb[16].mxu0 %vm355_vm1, %v6493_v43  ;;  %v8664_v43 = vcombine.low %v8651_v26, %v8656_v44  ;;  %10271 = vst [vmem:[#allocation19_spill] sm:$0xff] %v8675_v35  ;;  %v721_v35 = vshrl.u32 %v8405_v59, 16  ;;  %v3262_v59 = vshll.u32 %v8687_v27, 16 }
  0x44   : > { %7278 = vmatprep.mubr.msk.bf16.mxu0 %vm355_vm1, %v6494_v3  ;;  %v6495_v3 = vcombine.low %v8507_v41, %v1952_v45  ;;  %v3233_v32 = vsel %vm1383_vm3, %v3228_v47, %v3232_v12  ;;  %v3240_v41 = vrot.slane %v3238_v37, 1  ;;  %v6300_v45 = vcombine.low %v8550_v2, %v8553_v4 }
  0x45   : > { %10270 = vst [vmem:[#allocation18_spill] sm:$0xff] %v8664_v43  ;;  %v6299_v43 = vcombine.low %v8538_v58, %v8547_v62  ;;  %v3236_v22 = vor.u32 %v3234_v33, %v3232_v12  ;;  %v723_v62 = vrot.slane %v721_v35, 3  ;;  %v726_v2 = vrot.slane %v724_v18, 4 }
  0x46   : > { %v3244_v47 = vor.u32 %v3242_v54, %v3240_v41  ;;  %v730_v4 = vshrl.u32 %v8417_v0, 16  ;;  %v748_v18 = vshrl.u32 %v8434_v13, 16 }
  0x47   : > { %v3241_v54 = vsel %vm1383_vm3, %v3236_v22, %v3240_v41 }
  0x48   : > { %7079 = vmatmul.mubr.msk.bf16.gmra.mrb[20].mxu1 %vm355_vm1, %v6297_v21  ;;  %v717_v21 = vrot.slane %v715_v49, 4  ;;  %v3248_v49 = vrot.slane %v3246_v53, 1  ;;  %v732_v35 = vrot.slane %v730_v4, 3  ;;  %v739_v53 = vshrl.u32 %v8426_v7, 16 }
  0x49   : > { %7082 = vmatprep.mubr.msk.bf16.mxu1 %vm355_vm1, %v6298_v14  ;;  %v8003_v14 = vld [vmem:[%s8345_s9 + $0x38] sm:$0xff]  }
  0x4a   : > { %v718_v39 = vor.u32 %v717_v21, %v714_v31  ;;  %v4237_v31 = vsel %vm428_vm0, %v8394_v51, 0  ;;  %v3254_v12 = vshll.u32 %v8003_v14, 16  ;;  %v3258_v37 = vshrl.u32 %v8003_v14, 16 }
  0x4b   : > { %7279 = vmatmul.mubr.msk.bf16.gmra.mrb[20].mxu0 %vm355_vm1, %v6495_v3  ;;  %v733_v3 = vshll.u32 %v8417_v0, 16  ;;  %v6301_v51 = vcombine.low %v8561_v8, %v8567_v10  ;;  %v6302_v0 = vcombine.low %v8574_v16, %v8583_v15  ;;  %v742_v14 = vshll.u32 %v8426_v7, 16  ;;  %v8716_v10 = vld [vmem:[%s8345_s9 + $0x50] sm:$0xff]  }
  0x4c   : > { %7308 = vmatprep.mubr.msk.bf16.mxu0 %vm355_vm1, %v3233_v32  ;;  %v8692_v58 = vsel %vm684_vm2, %v8445_v17, %v718_v39  ;;  %v3250_v32 = vshrl.u32 %v8000_v6, 16  ;;  %v727_v17 = vor.u32 %v726_v2, %v723_v62  ;;  %v3256_v41 = vrot.slane %v3254_v12, 1 }
  0x4d   : > { %v735_v33 = vrot.slane %v733_v3, 4  ;;  %v3264_v8 = vrot.slane %v3262_v59, 1  ;;  %v741_v22 = vrot.slane %v739_v53, 3  ;;  %v744_v62 = vrot.slane %v742_v14, 4 }
  0x4e   : > { %v8706_v6 = vsel %vm684_vm2, %v718_v39, %v727_v17  ;;  %v3252_v21 = vor.u32 %v3250_v32, %v3248_v49  ;;  %v3266_v16 = vshrl.u32 %v8687_v27, 16  ;;  %v750_v15 = vrot.slane %v748_v18, 3 }
  0x4f   : > { %v736_v39 = vor.u32 %v735_v33, %v732_v35  ;;  %v757_v12 = vshrl.u32 %v8451_v20, 16  ;;  %v760_v59 = vshll.u32 %v8451_v20, 16  ;;  %v8015_v35 = vld [vmem:[%s8345_s9 + $0x58] sm:$0xff]   ;;  %v766_v33 = vshrl.u32 %v8468_v28, 16 }
  0x50   : > { %7083 = vmatmul.mubr.msk.bf16.gmra.mrb[24].mxu1 %vm355_vm1, %v6299_v43  ;;  %v3249_v43 = vsel %vm1383_vm3, %v3244_v47, %v3248_v49  ;;  %v3260_v47 = vor.u32 %v3258_v37, %v3256_v41  ;;  %v751_v49 = vshll.u32 %v8434_v13, 16  ;;  %v3257_v4 = vsel %vm1383_vm3, %v3252_v21, %v3256_v41 }
  0x51   : > { %7086 = vmatprep.mubr.msk.bf16.mxu1 %vm355_vm1, %v6300_v45  ;;  %v8009_v45 = vld [vmem:[%s8345_s9 + $0x48] sm:$0xff]   ;;  %v8723_v7 = vsel %vm684_vm2, %v727_v17, %v736_v39  ;;  %v3278_v13 = vshll.u32 %v8716_v10, 16  ;;  %v6303_v37 = vcombine.low %v8586_v30, %v8596_v25  ;;  %v769_v53 = vshll.u32 %v8468_v28, 16 }
  0x52   : > { %v3270_v2 = vshll.u32 %v8009_v45, 16  ;;  %v753_v32 = vrot.slane %v751_v49, 4  ;;  %v3265_v27 = vsel %vm1383_vm3, %v3260_v47, %v3264_v8  ;;  %v3268_v20 = vor.u32 %v3266_v16, %v3264_v8 }
  0x53   : > { %7309 = vmatmul.mubr.msk.bf16.vlgmr.msra.gmra.mrb[0].mxu0 %vm355_vm1, %v3241_v54  ;;  %v3274_v54 = vshrl.u32 %v8009_v45, 16  ;;  %v6304_v41 = vcombine.low %v8599_v52, %v8608_v1  ;;  %v8747_v45 = vld [vmem:[%s8345_s9 + $0x60] sm:$0xff]   ;;  %v768_v25 = vrot.slane %v766_v33, 3  ;;  %v771_v14 = vrot.slane %v769_v53, 4 }
  0x54   : > { %7357 = vmatpush3.bf16.msra.mxu0 %v4237_v31  ;;  %7312 = vmatprep.mubr.msk.bf16.mxu0 %vm355_vm1, %v3249_v43  ;;  %v745_v31 = vor.u32 %v744_v62, %v741_v22  ;;  %v754_v3 = vor.u32 %v753_v32, %v750_v15  ;;  %v759_v43 = vrot.slane %v757_v12, 3  ;;  %v3272_v21 = vrot.slane %v3270_v2, 1  ;;  %v8754_v52 = vld [vmem:[%s10228_s1 + $0x7] sm:$0x1] }
  0x55   : > { %v3280_v22 = vrot.slane %v3278_v13, 1  ;;  %v775_v28 = vshrl.u32 %v8491_v36, 16  ;;  %v778_v8 = vshll.u32 %v8491_v36, 16  ;;  %v3282_v1 = vshrl.u32 %v8716_v10, 16  ;;  %7900 = vmatprep.subr.msk.bf16.mxu0 %vm428_vm0, %v8754_v52 }
  0x56   : > { %v8732_v17 = vsel %vm684_vm2, %v736_v39, %v745_v31  ;;  %v3276_v39 = vor.u32 %v3274_v54, %v3272_v21  ;;  %v3286_v18 = vshll.u32 %v8015_v35, 16  ;;  %v772_v62 = vor.u32 %v771_v14, %v768_v25 }
  0x57   : > { %v3273_v49 = vsel %vm1383_vm3, %v3268_v20, %v3272_v21  ;;  %v3290_v16 = vshrl.u32 %v8015_v35, 16  ;;  %v777_v36 = vrot.slane %v775_v28, 3  ;;  %v780_v15 = vrot.slane %v778_v8, 4  ;;  %v8021_v35 = vld [vmem:[%s8345_s9 + $0x68] sm:$0xff]   ;;  %v8785_v20 = vld [vmem:[%s8345_s9 + $0x70] sm:$0xff]  }
  0x58   : > { %7087 = vmatmul.mubr.msk.bf16.gmra.mrb[28].mxu1 %vm355_vm1, %v6301_v51  ;;  %v762_v51 = vrot.slane %v760_v59, 4  ;;  %v3294_v2 = vshll.u32 %v8747_v45, 16  ;;  %v787_v32 = vshll.u32 %v8504_v46, 16  ;;  %v3281_v12 = vsel %vm1383_vm3, %v3276_v39, %v3280_v22 }
  0x59   : > { %7090 = vmatprep.mubr.msk.bf16.mxu1 %vm355_vm1, %v6302_v0  ;;  %v8743_v0 = vsel %vm684_vm2, %v745_v31, %v754_v3  ;;  %v784_v31 = vshrl.u32 %v8504_v46, 16  ;;  %v781_v54 = vor.u32 %v780_v15, %v777_v36  ;;  %v3288_v13 = vrot.slane %v3286_v18, 1 }
  0x5a   : > { %v763_v30 = vor.u32 %v762_v51, %v759_v43  ;;  %v3284_v43 = vor.u32 %v3282_v1, %v3280_v22  ;;  %v796_v51 = vshll.u32 %v8532_v55, 16  ;;  %v3298_v28 = vshrl.u32 %v8747_v45, 16  ;;  %v8801_v1 = vld [vmem:[%s8345_s9 + $0x30] sm:$0xf] }
  0x5b   : > { %7313 = vmatmul.mubr.msk.bf16.gmra.mrb[4].mxu0 %vm355_vm1, %v3257_v4  ;;  %v6305_v4 = vcombine.low %v8611_v61, %v8622_v9  ;;  %v786_v59 = vrot.slane %v784_v31, 3  ;;  %v8780_v46 = vsel %vm684_vm2, %v772_v62, %v781_v54  ;;  %v3292_v61 = vor.u32 %v3290_v16, %v3288_v13  ;;  %v10291_v16 = vld [vmem:[#allocation13_spill] sm:$0xff] }
  0x5c   : > { %7316 = vmatprep.mubr.msk.bf16.mxu0 %vm355_vm1, %v3265_v27  ;;  %v8759_v47 = vsel %vm684_vm2, %v754_v3, %v763_v30  ;;  %v8767_v10 = vsel %vm684_vm2, %v763_v30, %v772_v62  ;;  %v789_v27 = vrot.slane %v787_v32, 4  ;;  %v793_v3 = vshrl.u32 %v8532_v55, 16 }
  0x5d   : > { %v3296_v9 = vrot.slane %v3294_v2, 1  ;;  %v798_v21 = vrot.slane %v796_v51, 4  ;;  %v3302_v55 = vshll.u32 %v8021_v35, 16  ;;  %v3289_v39 = vsel %vm1383_vm3, %v3284_v43, %v3288_v13  ;;  %v8028_v2 = vld [vmem:[%s8345_s9 + $0x78] sm:$0xff]  }
  0x5e   : > { %v790_v33 = vor.u32 %v789_v27, %v786_v59  ;;  %v795_v53 = vrot.slane %v793_v3, 3  ;;  %v3306_v8 = vshrl.u32 %v8021_v35, 16  ;;  %v3310_v18 = vshll.u32 %v8785_v20, 16 }
  0x5f   : > { %v3297_v22 = vsel %vm1383_vm3, %v3292_v61, %v3296_v9  ;;  %v6307_v36 = vcombine.low %v8637_v34, %v8651_v26  ;;  %v6308_v45 = vcombine.low %v8656_v44, %v8660_v63  ;;  %v3304_v15 = vrot.slane %v3302_v55, 1  ;;  %v8029_v34 = vld [vmem:[%s8345_s9 + $0x80] sm:$0xff]   ;;  %v8824_v63 = vld [vmem:[%s8345_s9 + $0xc8] sm:$0xf] }
  0x60   : > { %7091 = vmatmul.mubr.msk.bf16.gmra.mrb[32].mxu1 %vm355_vm1, %v6303_v37  ;;  %v6306_v37 = vcombine.low %v8625_v19, %v8634_v29  ;;  %v805_v19 = vshll.u32 %v8542_v60, 16  ;;  %v8791_v29 = vsel %vm684_vm2, %v781_v54, %v790_v33  ;;  %v799_v30 = vor.u32 %v798_v21, %v795_v53 }
  0x61   : > { %7094 = vmatprep.mubr.msk.bf16.mxu1 %vm355_vm1, %v6304_v41  ;;  %v802_v41 = vshrl.u32 %v8542_v60, 16  ;;  %v8798_v60 = vld [vmem:[%s8345_s9 + $0x2c] sm:$0xf]  ;;  %v811_v32 = vshrl.u32 %v8557_v5, 16  ;;  %v3308_v54 = vor.u32 %v3306_v8, %v3304_v15  ;;  %v3312_v26 = vrot.slane %v3310_v18, 1 }
  0x62   : > { %v807_v14 = vrot.slane %v805_v19, 4  ;;  %v8805_v62 = vsel %vm684_vm2, %v790_v33, %v799_v30  ;;  %v3314_v44 = vshrl.u32 %v8785_v20, 16  ;;  %v820_v27 = vshrl.u32 %v8571_v11, 16 }
  0x63   : > { %7317 = vmatmul.mubr.msk.bf16.gmra.mrb[8].mxu0 %vm355_vm1, %v3273_v49  ;;  %v804_v25 = vrot.slane %v802_v41, 3  ;;  %v813_v13 = vrot.slane %v811_v32, 3  ;;  %v823_v3 = vshll.u32 %v8571_v11, 16  ;;  %v832_v35 = vshll.u32 %v8579_v23, 16 }
  0x64   : > { %7320 = vmatprep.mubr.msk.bf16.mxu0 %vm355_vm1, %v3281_v12  ;;  %v814_v12 = vshll.u32 %v8557_v5, 16  ;;  %v3318_v5 = vshll.u32 %v8028_v2, 16  ;;  %v3322_v61 = vshrl.u32 %v8028_v2, 16  ;;  %v3313_v53 = vsel %vm1383_vm3, %v3308_v54, %v3312_v26 }
  0x65   : > { %v808_v49 = vor.u32 %v807_v14, %v804_v25  ;;  %v825_v33 = vrot.slane %v823_v3, 4  ;;  %v3326_v20 = vshll.u32 %v8029_v34, 16  ;;  %v6309_v41 = vcombine.low %v8669_v57, %v8824_v63  ;;  %v8031_v57 = vld [vmem:[%s8345_s9 + $0x90] sm:$0xff]   ;;  %v8032_v3 = vld [vmem:[%s8345_s9 + $0x98] sm:$0xff]  }
  0x66   : > { %v816_v59 = vrot.slane %v814_v12, 4  ;;  %v834_v55 = vrot.slane %v832_v35, 4  ;;  %v838_v25 = vshrl.u32 %v8592_v40, 16  ;;  %v841_v14 = vshll.u32 %v8592_v40, 16  ;;  %v8869_v35 = vld [vmem:[%s8345_s9 + $0xa0] sm:$0xff]  }
  0x67   : > { %v8816_v31 = vsel %vm684_vm2, %v799_v30, %v808_v49  ;;  %v8030_v30 = vld [vmem:[%s8345_s9 + $0x88] sm:$0xff]   ;;  %v3328_v18 = vrot.slane %v3326_v20, 1  ;;  %v847_v40 = vshrl.u32 %v8604_v56, 16  ;;  %v8875_v20 = vld [vmem:[%s10228_s1 + $0x3] sm:$0x1] }
  0x68   : > { %7095 = vmatmul.mubr.msk.bf16.gmra.mrb[36].mxu1 %vm355_vm1, %v6305_v4  ;;  %v3300_v4 = vor.u32 %v3298_v28, %v3296_v9  ;;  %v817_v43 = vor.u32 %v816_v59, %v813_v13  ;;  %v822_v9 = vrot.slane %v820_v27, 3  ;;  %v3334_v2 = vshll.u32 %v8030_v30, 16 }
  0x69   : > { %7098 = vmatprep.mubr.msk.bf16.mxu1 %vm355_vm1, %v6306_v37  ;;  %v829_v37 = vshrl.u32 %v8579_v23, 16  ;;  %v3320_v23 = vrot.slane %v3318_v5, 1  ;;  %v849_v54 = vrot.slane %v847_v40, 3  ;;  %v3342_v59 = vshll.u32 %v8031_v57, 16  ;;  %v8034_v40 = vld [vmem:[%s8345_s9 + $0xa8] sm:$0xff]  }
  0x6a   : > { %v3305_v51 = vsel %vm1383_vm3, %v3300_v4, %v3304_v15  ;;  %v8835_v21 = vsel %vm684_vm2, %v808_v49, %v817_v43  ;;  %v826_v19 = vor.u32 %v825_v33, %v822_v9  ;;  %v840_v49 = vrot.slane %v838_v25, 3 }
  0x6b   : > { %7321 = vmatmul.mubr.msk.bf16.gmra.mrb[12].mxu0 %vm355_vm1, %v3289_v39  ;;  %v831_v11 = vrot.slane %v829_v37, 3  ;;  %v3316_v39 = vor.u32 %v3314_v44, %v3312_v26  ;;  %v3324_v8 = vor.u32 %v3322_v61, %v3320_v23  ;;  %v3330_v15 = vshrl.u32 %v8029_v34, 16 }
  0x6c   : > { %7324 = vmatprep.mubr.msk.bf16.mxu0 %vm355_vm1, %v3297_v22  ;;  %v8845_v22 = vsel %vm684_vm2, %v817_v43, %v826_v19  ;;  %v3338_v4 = vshrl.u32 %v8030_v30, 16  ;;  %v850_v26 = vshll.u32 %v8604_v56, 16  ;;  %v856_v27 = vshrl.u32 %v8616_v38, 16 }
  0x6d   : > { %v835_v28 = vor.u32 %v834_v55, %v831_v11  ;;  %v3321_v12 = vsel %vm1383_vm3, %v3316_v39, %v3320_v23  ;;  %v3329_v13 = vsel %vm1383_vm3, %v3324_v8, %v3328_v18  ;;  %v3332_v34 = vor.u32 %v3330_v15, %v3328_v18  ;;  %v10273_v15 = vld [vmem:[#allocation18_spill] sm:$0xff] }
  0x6e   : > { %v3336_v5 = vrot.slane %v3334_v2, 1  ;;  %v858_v43 = vrot.slane %v856_v27, 3  ;;  %v859_v37 = vshll.u32 %v8616_v38, 16  ;;  %v1653_v56 = vsel %vm428_vm0, %v8361_v24, 0 }
  0x6f   : > { %v865_v61 = vshrl.u32 %v8631_v48, 16  ;;  %v3344_v33 = vrot.slane %v3342_v59, 1  ;;  %v3350_v38 = vshll.u32 %v8032_v3, 16  ;;  %v3346_v55 = vshrl.u32 %v8031_v57, 16 }
  0x70   : > { %7099 = vmatmul.mubr.msk.bf16.gmra.mrb[40].mxu1 %vm355_vm1, %v6307_v36  ;;  %v843_v36 = vrot.slane %v841_v14, 4  ;;  %v3340_v9 = vor.u32 %v3338_v4, %v3336_v5  ;;  %v3354_v23 = vshrl.u32 %v8032_v3, 16  ;;  %v3358_v25 = vshll.u32 %v8869_v35, 16  ;;  %v10272_v14 = vld [vmem:[#allocation17_spill] sm:$0xff] }
  0x71   : > { %7102 = vmatprep.mubr.msk.bf16.mxu1 %vm355_vm1, %v6308_v45  ;;  %v8850_v45 = vsel %vm684_vm2, %v826_v19, %v835_v28  ;;  %v867_v24 = vrot.slane %v865_v61, 3  ;;  %v3337_v19 = vsel %vm1383_vm3, %v3332_v34, %v3336_v5  ;;  %v874_v39 = vshrl.u32 %v10272_v14, 16 }
  0x72   : > { %v844_v32 = vor.u32 %v843_v36, %v840_v49  ;;  %v3348_v36 = vor.u32 %v3346_v55, %v3344_v33  ;;  %v883_v2 = vshrl.u32 %v10273_v15, 16  ;;  %v886_v27 = vshll.u32 %v10273_v15, 16  ;;  %v8038_v15 = vld [vmem:[%s8345_s9 + $0xc8] sm:$0xff]  }
  0x73   : > { %7325 = vmatmul.mubr.msk.bf16.gmra.mrb[16].mxu0 %vm355_vm1, %v3305_v51  ;;  %v876_v57 = vrot.slane %v874_v39, 3  ;;  %v3370_v61 = vshrl.u32 %v8034_v40, 16 }
  0x74   : > { %7328 = vmatprep.mubr.msk.bf16.mxu0 %vm355_vm1, %v3313_v53  ;;  %v8859_v44 = vsel %vm684_vm2, %v835_v28, %v844_v32  ;;  %v861_v53 = vrot.slane %v859_v37, 4  ;;  %v877_v28 = vshll.u32 %v10272_v14, 16  ;;  %v885_v59 = vrot.slane %v883_v2, 3  ;;  %v8039_v2 = vld [vmem:[%s8345_s9 + $0xd0] sm:$0xff]  }
  0x76   : > { %v862_v30 = vor.u32 %v861_v53, %v858_v43  ;;  %v879_v49 = vrot.slane %v877_v28, 4  ;;  %v3366_v43 = vshll.u32 %v8034_v40, 16  ;;  %v1928_v40 = vld [vmem:[%s8345_s9 + $0x14] sm:$0x8] }
  0x78   : > { %7103 = vmatmul.mubr.msk.bf16.gmra.mrb[44].mxu1 %vm355_vm1, %v6309_v41  ;;  %v868_v41 = vshll.u32 %v8631_v48, 16  ;;  %v3345_v48 = vsel %vm1383_vm3, %v3340_v9, %v3344_v33 }
  0x79   : > { %7108 = vmatprep.mubr.msk.bf16.mxu1 %vm355_vm1, %v8510_v42  ;;  %v852_v42 = vrot.slane %v850_v26, 4  ;;  %v6358_v26 = vcombine.low %v8824_v63, %v8824_v63  ;;  %v888_v63 = vrot.slane %v886_v27, 4 }
  0x7b   : > { %7329 = vmatmul.mubr.msk.bf16.gmra.mrb[20].mxu0 %vm355_vm1, %v3321_v12  ;;  %v853_v51 = vor.u32 %v852_v42, %v849_v54  ;;  %v3360_v12 = vrot.slane %v3358_v25, 1  ;;  %v880_v54 = vor.u32 %v879_v49, %v876_v57  ;;  %v10274_v42 = vld [vmem:[#allocation19_spill] sm:$0xff]  ;;  %v889_v33 = vor.u32 %v888_v63, %v885_v59 }
  0x7c   : > { %7332 = vmatprep.mubr.msk.bf16.mxu0 %vm355_vm1, %v3329_v13  ;;  %v8035_v13 = vld [vmem:[%s8345_s9 + $0xb0] sm:$0xff]   ;;  %v892_v34 = vshrl.u32 %v10274_v42, 16  ;;  %v901_v53 = vshrl.u32 %v6358_v26, 16  ;;  %v904_v55 = vshll.u32 %v6358_v26, 16  ;;  %v8164_v26 = vld [vmem:[%s8345_s9 + $0x18] sm:$0xf] }
  0x7d   : > { %v8880_v11 = vsel %vm684_vm2, %v844_v32, %v853_v51  ;;  %v8893_v8 = vsel %vm684_vm2, %v853_v51, %v862_v30  ;;  %v3374_v9 = vshll.u32 %v8035_v13, 16  ;;  %v3402_v63 = vshrl.u32 %v8038_v15, 16 }
  0x7e   : > { %v894_v51 = vrot.slane %v892_v34, 3  ;;  %v906_v14 = vrot.slane %v904_v55, 4  ;;  %v3398_v34 = vshll.u32 %v8038_v15, 16 }
  0x7f   : > { %v3376_v25 = vrot.slane %v3374_v9, 1  ;;  %v10275_v9 = vld [vmem:[#allocation6_spill] sm:$0xff] }
  0x80   : > { %7109 = vmatmul.mubr.msk.bf16.vlgmr.msra.gmra.mrb[0].mxu1 %vm355_vm1, %v8525_v50  ;;  %v870_v50 = vrot.slane %v868_v41, 4  ;;  %v8036_v41 = vld [vmem:[%s8345_s9 + $0xb8] sm:$0xff]  }
  0x81   : > { %7157 = vmatpush3.bf16.msra.mxu1 %v1653_v56  ;;  %7112 = vmatprep.mubr.msk.bf16.mxu1 %vm355_vm1, %v8692_v58  ;;  %v3352_v58 = vrot.slane %v3350_v38, 1  ;;  %v3362_v56 = vshrl.u32 %v8869_v35, 16  ;;  %v3382_v28 = vshll.u32 %v8036_v41, 16  ;;  %v3386_v49 = vshrl.u32 %v8036_v41, 16  ;;  %v3771_v41 = vld [vmem:[%s8345_s9 + $0x34] sm:$0xf] }
  0x82   : > { %7895 = vmatprep.subr.msk.bf16.mxu1 %vm428_vm0, %v8875_v20  ;;  %v871_v18 = vor.u32 %v870_v50, %v867_v24  ;;  %v3368_v24 = vrot.slane %v3366_v43, 1  ;;  %v8037_v50 = vld [vmem:[%s8345_s9 + $0xc0] sm:$0xff]  }
  0x83   : > { %7333 = vmatmul.mubr.msk.bf16.gmra.mrb[24].mxu0 %vm355_vm1, %v3337_v19  ;;  %v3356_v32 = vor.u32 %v3354_v23, %v3352_v58  ;;  %v3353_v5 = vsel %vm1383_vm3, %v3348_v36, %v3352_v58  ;;  %v903_v19 = vrot.slane %v901_v53, 3  ;;  %v3364_v35 = vor.u32 %v3362_v56, %v3360_v12 }
  0x84   : > { %7336 = vmatprep.mubr.msk.bf16.mxu0 %vm355_vm1, %v3345_v48  ;;  %v8900_v4 = vsel %vm684_vm2, %v862_v30, %v871_v18  ;;  %v8909_v3 = vsel %vm684_vm2, %v871_v18, %v880_v54  ;;  %v3372_v30 = vor.u32 %v3370_v61, %v3368_v24  ;;  %v3378_v18 = vshrl.u32 %v8035_v13, 16 }
  0x85   : > { %v3361_v37 = vsel %vm1383_vm3, %v3356_v32, %v3360_v12  ;;  %v907_v48 = vor.u32 %v906_v14, %v903_v19  ;;  %v3369_v58 = vsel %vm1383_vm3, %v3364_v35, %v3368_v24  ;;  %v3390_v36 = vshll.u32 %v8037_v50, 16  ;;  %v3766_v12 = vld [vmem:[%s8345_s9 + $0x20] sm:$0x8] }
  0x86   : > { %v3377_v57 = vsel %vm1383_vm3, %v3372_v30, %v3376_v25  ;;  %v3380_v32 = vor.u32 %v3378_v18, %v3376_v25  ;;  %v8945_v13 = vcombine.low %v1928_v40, %v8164_v26  ;;  %v3400_v53 = vrot.slane %v3398_v34, 1  ;;  %v10276_v30 = vld [vmem:[#allocation7_spill] sm:$0xff]  ;;  %v3775_v26 = vld [vmem:[%s8345_s9 + $0x44] sm:$0xf] }
  0x87   : > { %v3392_v27 = vrot.slane %v3390_v36, 1  ;;  %v2120_v25 = vshrl.u32 %v10276_v30, 16  ;;  %v6585_v40 = vcombine.low %v8801_v1, %v3771_v41 }
  0x88   : > { %7113 = vmatmul.mubr.msk.bf16.gmra.mrb[4].mxu1 %vm355_vm1, %v8706_v6  ;;  %v895_v6 = vshll.u32 %v10274_v42, 16  ;;  %v3768_v42 = vld [vmem:[%s8345_s9 + $0x28] sm:$0xf]  ;;  %v3404_v19 = vor.u32 %v3402_v63, %v3400_v53 }
  0x89   : > { %7116 = vmatprep.mubr.msk.bf16.mxu1 %vm355_vm1, %v8723_v7  ;;  %v8921_v7 = vsel %vm684_vm2, %v880_v54, %v889_v33  ;;  %v3767_v54 = vld [vmem:[%s8345_s9 + $0x24] sm:$0xf]  ;;  %v3961_v34 = vshll.u32 %v6585_v40, 16 }
  0x8a   : > { %v897_v38 = vrot.slane %v895_v6, 4  ;;  %v6583_v56 = vcombine.low %v3766_v12, %v3767_v54  ;;  %v2106_v6 = vshll.u32 %v8945_v13, 16  ;;  %v3774_v54 = vld [vmem:[%s8345_s9 + $0x40] sm:$0xf] }
  0x8b   : > { %7337 = vmatmul.mubr.msk.bf16.gmra.mrb[28].mxu0 %vm355_vm1, %v3353_v5  ;;  %v3394_v5 = vshrl.u32 %v8037_v50, 16 }
  0x8c   : > { %7340 = vmatprep.mubr.msk.bf16.mxu0 %vm355_vm1, %v3361_v37  ;;  %v898_v23 = vor.u32 %v897_v38, %v894_v51  ;;  %v3406_v37 = vshll.u32 %v8039_v2, 16  ;;  %v2103_v51 = vshrl.u32 %v8945_v13, 16  ;;  %v8040_v38 = vld [vmem:[%s8345_s9 + $0xd8] ss:$0 sps:$4 sm:$0x11]   ;;  %v3941_v35 = vshrl.u32 %v6583_v56, 16 }
  0x8d   : > { %v3396_v24 = vor.u32 %v3394_v5, %v3392_v27  ;;  %v3944_v50 = vshll.u32 %v6583_v56, 16  ;;  %v3414_v36 = vshll.u32 %v8040_v38, 16  ;;  %v6587_v56 = vcombine.low %v3774_v54, %v3775_v26  ;;  %v8987_v38 = vld [vmem:[%s8345_s9 + $0x58] sm:$0xf]  ;;  %v9015_v54 = vld [vmem:[%s8345_s9 + $0x7c] sm:$0xf] }
  0x8e   : > { %v8928_v39 = vsel %vm684_vm2, %v889_v33, %v898_v23  ;;  %v2111_v33 = vshrl.u32 %v10275_v9, 16  ;;  %v3408_v55 = vrot.slane %v3406_v37, 1  ;;  %v3943_v15 = vrot.slane %v3941_v35, 3 }
  0x8f   : > { %v3401_v18 = vsel %vm1383_vm3, %v3396_v24, %v3400_v53 }
  0x90   : > { %7117 = vmatmul.mubr.msk.bf16.gmra.mrb[8].mxu1 %vm355_vm1, %v8732_v17  ;;  %v8935_v17 = vsel %vm684_vm2, %v898_v23, %v907_v48  ;;  %v3772_v23 = vld [vmem:[%s8345_s9 + $0x38] sm:$0xf]  ;;  %v3773_v48 = vld [vmem:[%s8345_s9 + $0x3c] sm:$0xf] }
  0x91   : > { %7120 = vmatprep.mubr.msk.bf16.mxu1 %vm355_vm1, %v8743_v0  ;;  %v3384_v0 = vrot.slane %v3382_v28, 1  ;;  %v6586_v12 = vcombine.low %v3772_v23, %v3773_v48  ;;  %v3781_v23 = vld [vmem:[%s8345_s9 + $0x5c] sm:$0xf] }
  0x93   : > { %7341 = vmatmul.mubr.msk.bf16.gmra.mrb[32].mxu0 %vm355_vm1, %v3369_v58  ;;  %v3388_v59 = vor.u32 %v3386_v49, %v3384_v0  ;;  %v3385_v43 = vsel %vm1383_vm3, %v3380_v32, %v3384_v0  ;;  %v2123_v58 = vshll.u32 %v10276_v30, 16  ;;  %v3409_v49 = vsel %vm1383_vm3, %v3404_v19, %v3408_v55 }
  0x94   : > { %7344 = vmatprep.mubr.msk.bf16.mxu0 %vm355_vm1, %v3377_v57  ;;  %v3410_v57 = vshrl.u32 %v8039_v2, 16  ;;  %v3946_v0 = vrot.slane %v3944_v50, 4  ;;  %v3416_v2 = vrot.slane %v3414_v36, 1  ;;  %v3967_v63 = vshrl.u32 %v6586_v12, 16  ;;  %v9001_v36 = vld [vmem:[%s8345_s9 + $0x6c] sm:$0xf] }
  0x95   : > { %v3393_v61 = vsel %vm1383_vm3, %v3388_v59, %v3392_v27  ;;  %v3776_v59 = vld [vmem:[%s8345_s9 + $0x48] sm:$0xf]  ;;  %v3777_v27 = vld [vmem:[%s8345_s9 + $0x4c] sm:$0xf]  ;;  %v3970_v37 = vshll.u32 %v6586_v12, 16  ;;  %v3963_v19 = vrot.slane %v3961_v34, 4 }
  0x96   : > { %v3947_v5 = vor.u32 %v3946_v0, %v3943_v15  ;;  %v6588_v53 = vcombine.low %v3776_v59, %v3777_v27  ;;  %v3976_v50 = vshrl.u32 %v6587_v56, 16  ;;  %v6590_v15 = vcombine.low %v8987_v38, %v3781_v23  ;;  %v9006_v0 = vld [vmem:[%s8345_s9 + $0x70] sm:$0xf]  ;;  %v9012_v12 = vld [vmem:[%s8345_s9 + $0x78] sm:$0xf] }
  0x97   : > { %v3972_v35 = vrot.slane %v3970_v37, 4 }
  0x98   : > { %7121 = vmatmul.mubr.msk.bf16.gmra.mrb[12].mxu1 %vm355_vm1, %v8759_v47  ;;  %v6584_v47 = vcombine.low %v3768_v42, %v8798_v60  ;;  %v3958_v42 = vshrl.u32 %v6585_v40, 16  ;;  %v3985_v48 = vshrl.u32 %v6588_v53, 16  ;;  %v3978_v26 = vrot.slane %v3976_v50, 3 }
  0x99   : > { %7124 = vmatprep.mubr.msk.bf16.mxu1 %vm355_vm1, %v8767_v10  ;;  %v2114_v10 = vshll.u32 %v10275_v9, 16 }
  0x9a   : > { %v3949_v14 = vshrl.u32 %v6584_v47, 16  ;;  %v3952_v28 = vshll.u32 %v6584_v47, 16  ;;  %v3779_v47 = vld [vmem:[%s8345_s9 + $0x54] sm:$0xf]  ;;  %v3960_v41 = vrot.slane %v3958_v42, 3  ;;  %v3987_v27 = vrot.slane %v3985_v48, 3 }
  0x9b   : > { %7345 = vmatmul.mubr.msk.bf16.gmra.mrb[36].mxu0 %vm355_vm1, %v3385_v43 }
  0x9c   : > { %7348 = vmatprep.mubr.msk.bf16.mxu0 %vm355_vm1, %v3393_v61  ;;  %v3951_v32 = vrot.slane %v3949_v14, 3  ;;  %v3778_v61 = vld [vmem:[%s8345_s9 + $0x50] sm:$0xf]  ;;  %v3979_v14 = vshll.u32 %v6587_v56, 16  ;;  %v3964_v40 = vor.u32 %v3963_v19, %v3960_v41 }
  0x9e   : > { %v3981_v59 = vrot.slane %v3979_v14, 4  ;;  %v9050_v14 = vld [vmem:[%s8345_s9 + $0x84] sm:$0xf] }
  0xa0   : > { %7125 = vmatmul.mubr.msk.bf16.gmra.mrb[16].mxu1 %vm355_vm1, %v8780_v46  ;;  %v3954_v46 = vrot.slane %v3952_v28, 4  ;;  %v3783_v28 = vld [vmem:[%s8345_s9 + $0x64] sm:$0xf]  ;;  %v3982_v41 = vor.u32 %v3981_v59, %v3978_v26  ;;  %v9057_v26 = vld [vmem:[%s8345_s9 + $0x14] sm:$0xff]  }
  0xa1   : > { %7128 = vmatprep.mubr.msk.bf16.mxu1 %vm355_vm1, %v8791_v29  ;;  %v3412_v29 = vor.u32 %v3410_v57, %v3408_v55  ;;  %v6589_v57 = vcombine.low %v3778_v61, %v3779_v47  ;;  %v4006_v61 = vshll.u32 %v6590_v15, 16  ;;  %v9032_v47 = vrot.slane %v2103_v51, 3 }
  0xa2   : > { %v3955_v43 = vor.u32 %v3954_v46, %v3951_v32  ;;  %v9009_v32 = vld [vmem:[%s8345_s9 + $0x74] sm:$0xf] }
  0xa3   : > { %7349 = vmatmul.mubr.msk.bf16.gmra.mrb[40].mxu0 %vm355_vm1, %v3401_v18  ;;  %v3417_v24 = vsel %vm1383_vm3, %v3412_v29, %v3416_v2  ;;  %v3988_v18 = vshll.u32 %v6588_v53, 16  ;;  %v3994_v2 = vshrl.u32 %v6589_v57, 16  ;;  %v9037_v53 = vld [vmem:[%s8345_s9 + $0x80] sm:$0xf] }
  0xa4   : > { %7352 = vmatprep.mubr.msk.bf16.mxu0 %vm355_vm1, %v3409_v49  ;;  %v3956_v55 = vsel %vm684_vm2, %v3947_v5, %v3955_v43  ;;  %v8998_v49 = vld [vmem:[%s8345_s9 + $0x68] sm:$0xf]  ;;  %v3965_v34 = vsel %vm684_vm2, %v3955_v43, %v3964_v40  ;;  %v3997_v5 = vshll.u32 %v6589_v57, 16  ;;  %v6594_v43 = vcombine.low %v9012_v12, %v9015_v54 }
  0xa5   : > { %v3990_v29 = vrot.slane %v3988_v18, 4  ;;  %v6592_v37 = vcombine.low %v8998_v49, %v9001_v36 }
  0xa7   : > { %v3991_v19 = vor.u32 %v3990_v29, %v3987_v27  ;;  %v4021_v50 = vshrl.u32 %v6592_v37, 16  ;;  %v4024_v48 = vshll.u32 %v6592_v37, 16  ;;  %v6595_v29 = vcombine.low %v9037_v53, %v9050_v14  ;;  %v9067_v37 = vld [vmem:[%s8345_s9 + $0x88] sm:$0xf] }
  0xa8   : > { %7129 = vmatmul.mubr.msk.bf16.gmra.mrb[20].mxu1 %vm355_vm1, %v8805_v62  ;;  %v3969_v62 = vrot.slane %v3967_v63, 3  ;;  %v4003_v63 = vshrl.u32 %v6590_v15, 16  ;;  %v4042_v15 = vshll.u32 %v6594_v43, 16 }
  0xa9   : > { %7132 = vmatprep.mubr.msk.bf16.mxu1 %vm355_vm1, %v8816_v31  ;;  %v8993_v31 = vld [vmem:[%s8345_s9 + $0x60] sm:$0xf] }
  0xaa   : > { %v3973_v46 = vor.u32 %v3972_v35, %v3969_v62  ;;  %v6591_v42 = vcombine.low %v8993_v31, %v3783_v28  ;;  %v3996_v62 = vrot.slane %v3994_v2, 3  ;;  %v3999_v35 = vrot.slane %v3997_v5, 4 }
  0xab   : > { %7353 = vmatmul.mubr.msk.bf16.gmra.mrb[44].mxu0 %vm355_vm1, %v3417_v24  ;;  %v9040_v24 = vld [vmem:[%s8345_s9 + $0xc] sm:$0xff]   ;;  %v4005_v23 = vrot.slane %v4003_v63, 3  ;;  %v4008_v28 = vrot.slane %v4006_v61, 4  ;;  %v3992_v5 = vsel %vm684_vm2, %v3982_v41, %v3991_v19  ;;  %v4044_v61 = vrot.slane %v4042_v15, 4  ;;  %v8165_v15 = vld [vmem:[%s8345_s9 + $0x74] sm:$0xf] }
  0xac   : > { %7358 = vmatprep.mubr.msk.bf16.mxu0 %vm355_vm1, %v3956_v55  ;;  %v3974_v56 = vsel %vm684_vm2, %v3964_v40, %v3973_v46  ;;  %v4012_v55 = vshrl.u32 %v6591_v42, 16  ;;  %v4015_v51 = vshll.u32 %v6591_v42, 16  ;;  %v4039_v40 = vshrl.u32 %v6594_v43, 16 }
  0xad   : > { %v3983_v2 = vsel %vm684_vm2, %v3973_v46, %v3982_v41  ;;  %v4023_v42 = vrot.slane %v4021_v50, 3  ;;  %v4000_v46 = vor.u32 %v3999_v35, %v3996_v62  ;;  %v4048_v43 = vshrl.u32 %v6595_v29, 16 }
  0xae   : > { %v4014_v59 = vrot.slane %v4012_v55, 3  ;;  %v4017_v27 = vrot.slane %v4015_v51, 4  ;;  %v4051_v55 = vshll.u32 %v6595_v29, 16  ;;  %v1392_v51 = vshll.u32 %v9057_v26, 16 }
  0xaf   : > { %v2108_v50 = vrot.slane %v2106_v6, 4  ;;  %v2113_v62 = vrot.slane %v2111_v33, 3  ;;  %v2116_v35 = vrot.slane %v2114_v10, 4  ;;  %v4001_v30 = vsel %vm684_vm2, %v3991_v19, %v4000_v46 }
  0xb0   : > { %7133 = vmatmul.mubr.msk.bf16.gmra.mrb[24].mxu1 %vm355_vm1, %v8835_v21  ;;  %v4611_v21 = vsel %vm428_vm0, %v8754_v52, 0  ;;  %v9045_v52 = vld [vmem:[%s10228_s1 + $0x8] sm:$0x1]  ;;  %v4018_v13 = vor.u32 %v4017_v27, %v4014_v59  ;;  %v1396_v27 = vshrl.u32 %v9057_v26, 16 }
  0xb1   : > { %7136 = vmatprep.mubr.msk.bf16.mxu1 %vm355_vm1, %v8845_v22  ;;  %v6593_v22 = vcombine.low %v9006_v0, %v9009_v32 }
  0xb3   : > { %7359 = vmatmul.mubr.msk.bf16.vlgmr.msra.gmra.mrb[0].mxu0 %vm355_vm1, %v3965_v34  ;;  %v4030_v18 = vshrl.u32 %v6593_v22, 16  ;;  %v4033_v57 = vshll.u32 %v6593_v22, 16  ;;  %v1387_v34 = vshll.u32 %v9040_v24, 16  ;;  %v1385_v22 = vshrl.u32 %v9040_v24, 16 }
  0xb4   : > { %7407 = vmatpush3.bf16.msra.mxu0 %v4611_v21  ;;  %7362 = vmatprep.mubr.msk.bf16.mxu0 %vm355_vm1, %v3974_v56  ;;  %v9070_v21 = vld [vmem:[%s8345_s9 + $0x8c] sm:$0xf]  ;;  %v2125_v24 = vrot.slane %v2123_v58, 4  ;;  %v4050_v58 = vrot.slane %v4048_v43, 3 }
  0xb5   : > { %7901 = vmatprep.subr.msk.bf16.mxu0 %vm428_vm0, %v9045_v52  ;;  %v4032_v63 = vrot.slane %v4030_v18, 3  ;;  %v4035_v56 = vrot.slane %v4033_v57, 4  ;;  %v1389_v41 = vrot.slane %v1387_v34, 1  ;;  %v4009_v18 = vor.u32 %v4008_v28, %v4005_v23  ;;  %v1953_v57 = vld [vmem:[%s8345_s9 + $0x78] sm:$0xf] }
  0xb6   : > { %v6596_v6 = vcombine.low %v9067_v37, %v9070_v21  ;;  %v4053_v23 = vrot.slane %v4051_v55, 4  ;;  %v1394_v28 = vrot.slane %v1392_v51, 1  ;;  %v9102_v59 = vcombine.low %v8165_v15, %v1953_v57  ;;  %v9112_v34 = vld [vmem:[%s8345_s9 + $0x94] sm:$0xf] }
  0xb7   : > { %v4036_v9 = vor.u32 %v4035_v56, %v4032_v63  ;;  %v4010_v19 = vsel %vm684_vm2, %v4000_v46, %v4009_v18  ;;  %v9135_v46 = vsel %vm428_vm0, %v8875_v20, 0  ;;  %v2109_v51 = vor.u32 %v2108_v50, %v9032_v47  ;;  %v9149_v20 = vld [vmem:[%s8345_s9 + $0x98] sm:$0xf]  ;;  %v9157_v47 = vld [vmem:[%s8345_s9 + $0x9c] sm:$0xf] }
  0xb8   : > { %7137 = vmatmul.mubr.msk.bf16.gmra.mrb[28].mxu1 %vm355_vm1, %v8850_v45  ;;  %v4026_v45 = vrot.slane %v4024_v48, 4  ;;  %v2122_v48 = vrot.slane %v2120_v25, 3  ;;  %v9092_v25 = vld [vmem:[%s8345_s9 + $0x1c] sm:$0xff]   ;;  %v4057_v29 = vshrl.u32 %v6596_v6, 16  ;;  %v4060_v26 = vshll.u32 %v6596_v6, 16  ;;  %10277 = vst [vmem:[#allocation17_spill] sm:$0xff] %v9157_v47 }
  0xb9   : > { %7140 = vmatprep.mubr.msk.bf16.mxu1 %vm355_vm1, %v8859_v44  ;;  %v4041_v44 = vrot.slane %v4039_v40, 3  ;;  %v9137_v43 = vor.u32 %v1396_v27, %v1394_v28  ;;  %v1404_v6 = vshrl.u32 %v9092_v25, 16  ;;  %v10278_v50 = vld [vmem:[#allocation8_spill] sm:$0xff]  ;;  %v6598_v27 = vcombine.low %v9149_v20, %v9157_v47 }
  0xba   : > { %v4027_v33 = vor.u32 %v4026_v45, %v4023_v42  ;;  %v9099_v40 = vor.u32 %v2125_v24, %v2122_v48  ;;  %v9109_v42 = vld [vmem:[%s8345_s9 + $0x90] sm:$0xf]  ;;  %v4059_v48 = vrot.slane %v4057_v29, 3  ;;  %v9183_v29 = vld [vmem:[%s8345_s9 + $0xa4] sm:$0xf]  ;;  %v9283_v47 = vld [vmem:[%s8345_s9 + $0x3c] sm:$0xff]  }
  0xbb   : > { %7363 = vmatmul.mubr.msk.bf16.gmra.mrb[4].mxu0 %vm355_vm1, %v3983_v2  ;;  %v9097_v10 = vor.u32 %v4044_v61, %v4041_v44  ;;  %v1400_v2 = vshll.u32 %v9092_v25, 16  ;;  %v9128_v61 = vor.u32 %v4053_v23, %v4050_v58  ;;  %v6597_v55 = vcombine.low %v9109_v42, %v9112_v34  ;;  %v9176_v58 = vld [vmem:[%s8345_s9 + $0xa0] sm:$0xf]  ;;  %10281 = vst [vmem:[#allocation19_spill] sm:$0xff] %v9183_v29  ;;  %v9195_v25 = vld [vmem:[%s8345_s9 + $0xac] sm:$0xf] }
  0xbc   : > { %7366 = vmatprep.mubr.msk.bf16.mxu0 %vm355_vm1, %v3992_v5  ;;  %v4028_v45 = vsel %vm684_vm2, %v4018_v13, %v4027_v33  ;;  %v9119_v63 = vsel %vm684_vm2, %v4027_v33, %v4036_v9  ;;  %v9163_v33 = vld [vmem:[%s8345_s9 + $0x24] sm:$0xff]   ;;  %10279 = vst [vmem:[#allocation18_spill] sm:$0xff] %v9176_v58  ;;  %10283 = vst [vmem:[#allocation6_spill] sm:$0xff] %v9195_v25 }
  0xbd   : > { %v9126_v44 = vsel %vm684_vm2, %v4036_v9, %v9097_v10  ;;  %v9146_v24 = vrot.slane %v1400_v2, 1  ;;  %v4066_v9 = vshrl.u32 %v6597_v55, 16 }
  0xc0   : > { %7141 = vmatmul.mubr.msk.bf16.gmra.mrb[32].mxu1 %vm355_vm1, %v8880_v11  ;;  %v1390_v11 = vor.u32 %v1389_v41, %v1385_v22  ;;  %v9203_v41 = vld [vmem:[%s8345_s9 + $0xb0] sm:$0xf] }
  0xc1   : > { %7144 = vmatprep.mubr.msk.bf16.mxu1 %vm355_vm1, %v8893_v8  ;;  %v4019_v8 = vsel %vm684_vm2, %v4009_v18, %v4018_v13  ;;  %v2117_v18 = vor.u32 %v2116_v35, %v2113_v62  ;;  %v4062_v13 = vrot.slane %v4060_v26, 4  ;;  %v2132_v35 = vshll.u32 %v10278_v50, 16  ;;  %v10284_v26 = vld [vmem:[#allocation11_spill] sm:$0xff]  ;;  %10285 = vst [vmem:[#allocation7_spill] sm:$0xff] %v9203_v41 }
  0xc2   : > { %v9131_v22 = vsel %vm1383_vm3, %v1390_v11, %v1394_v28  ;;  %v10280_v11 = vld [vmem:[#allocation9_spill] sm:$0xff]  ;;  %v2156_v57 = vshrl.u32 %v10284_v26, 16 }
  0xc3   : > { %7367 = vmatmul.mubr.msk.bf16.gmra.mrb[8].mxu0 %vm355_vm1, %v4001_v30  ;;  %v2129_v30 = vshrl.u32 %v10278_v50, 16  ;;  %v9166_v62 = vsel %vm684_vm2, %v2109_v51, %v2117_v18  ;;  %v2138_v28 = vshrl.u32 %v10280_v11, 16  ;;  %v2141_v15 = vshll.u32 %v10280_v11, 16  ;;  %v9189_v51 = vld [vmem:[%s8345_s9 + $0xa8] sm:$0xf] }
  0xc4   : > { %7370 = vmatprep.mubr.msk.bf16.mxu0 %vm355_vm1, %v4010_v19  ;;  %v4069_v19 = vshll.u32 %v6597_v55, 16  ;;  %v2134_v2 = vrot.slane %v2132_v35, 4  ;;  %v4063_v35 = vor.u32 %v4062_v13, %v4059_v48 }
  0xc5   : > { %v2131_v23 = vrot.slane %v2129_v30, 3  ;;  %v2143_v50 = vrot.slane %v2141_v15, 4  ;;  %v10282_v30 = vld [vmem:[#allocation10_spill] sm:$0xff] }
  0xc6   : > { %v2147_v11 = vshrl.u32 %v10282_v30, 16  ;;  %v2150_v55 = vshll.u32 %v10282_v30, 16 }
  0xc8   : > { %7145 = vmatmul.mubr.msk.bf16.gmra.mrb[36].mxu1 %vm355_vm1, %v8900_v4  ;;  %v2135_v4 = vor.u32 %v2134_v2, %v2131_v23  ;;  %v2149_v56 = vrot.slane %v2147_v11, 3  ;;  %v2152_v5 = vrot.slane %v2150_v55, 4  ;;  %v2158_v2 = vrot.slane %v2156_v57, 3 }
  0xc9   : > { %7148 = vmatprep.mubr.msk.bf16.mxu1 %vm355_vm1, %v8909_v3  ;;  %v9170_v3 = vsel %vm684_vm2, %v2117_v18, %v9099_v40  ;;  %v2140_v18 = vrot.slane %v2138_v28, 3  ;;  %v1408_v28 = vshll.u32 %v9163_v33, 16  ;;  %v4075_v57 = vshrl.u32 %v6598_v27, 16 }
  0xca   : > { %v9212_v23 = vsel %vm684_vm2, %v9099_v40, %v2135_v4  ;;  %v2153_v11 = vor.u32 %v2152_v5, %v2149_v56  ;;  %v4055_v40 = vsel %vm684_vm2, %v9097_v10, %v9128_v61  ;;  %v4078_v55 = vshll.u32 %v6598_v27, 16  ;;  %v10289_v27 = vld [vmem:[#allocation12_spill] sm:$0xff] }
  0xcb   : > { %7371 = vmatmul.mubr.msk.bf16.gmra.mrb[12].mxu0 %vm355_vm1, %v4019_v8  ;;  %v2159_v8 = vshll.u32 %v10284_v26, 16  ;;  %v2144_v15 = vor.u32 %v2143_v50, %v2140_v18  ;;  %v4068_v18 = vrot.slane %v4066_v9, 3  ;;  %v4071_v50 = vrot.slane %v4069_v19, 4  ;;  %v9228_v9 = vld [vmem:[%s8345_s9 + $0xb4] sm:$0xf] }
  0xcc   : > { %7374 = vmatprep.mubr.msk.bf16.mxu0 %vm355_vm1, %v4028_v45  ;;  %v9208_v45 = vld [vmem:[%s8345_s9 + $0x2c] sm:$0xff]   ;;  %v1406_v26 = vor.u32 %v1404_v6, %v9146_v24  ;;  %10286 = vst [vmem:[#allocation8_spill] sm:$0xff] %v9228_v9  ;;  %v1410_v5 = vrot.slane %v1408_v28, 1  ;;  %v1412_v56 = vshrl.u32 %v9163_v33, 16  ;;  %v9236_v19 = vld [vmem:[%s8345_s9 + $0xb8] sm:$0xf] }
  0xcd   : > { %v2161_v30 = vrot.slane %v2159_v8, 4  ;;  %v1416_v10 = vshll.u32 %v9208_v45, 16  ;;  %10287 = vst [vmem:[#allocation9_spill] sm:$0xff] %v9236_v19  ;;  %v9243_v13 = vor.u32 %v4071_v50, %v4068_v18  ;;  %v9246_v6 = vld [vmem:[%s8345_s9 + $0x34] sm:$0xff]   ;;  %v2168_v28 = vshll.u32 %v10289_v27, 16 }
  0xce   : > { %v2177_v18 = vshll.u32 %v10291_v16, 16  ;;  %v1420_v33 = vshrl.u32 %v9208_v45, 16 }
  0xcf   : > { %v2162_v8 = vor.u32 %v2161_v30, %v2158_v2  ;;  %v4077_v2 = vrot.slane %v4075_v57, 3  ;;  %v4080_v30 = vrot.slane %v4078_v55, 4  ;;  %v1414_v55 = vor.u32 %v1412_v56, %v1410_v5 }
  0xd0   : > { %7149 = vmatmul.mubr.msk.bf16.gmra.mrb[40].mxu1 %vm355_vm1, %v8921_v7  ;;  %v9219_v7 = vsel %vm684_vm2, %v2135_v4, %v2144_v15  ;;  %v9231_v4 = vsel %vm684_vm2, %v2144_v15, %v2153_v11  ;;  %v2165_v15 = vshrl.u32 %v10289_v27, 16  ;;  %v2170_v27 = vrot.slane %v2168_v28, 4 }
  0xd1   : > { %7152 = vmatprep.mubr.msk.bf16.mxu1 %vm355_vm1, %v8928_v39  ;;  %v6599_v39 = vcombine.low %v9176_v58, %v9183_v29  ;;  %v9239_v48 = vsel %vm684_vm2, %v2153_v11, %v2162_v8  ;;  %v9255_v11 = vld [vmem:[%s8345_s9 + $0xbc] sm:$0xf]  ;;  %v9260_v29 = vld [vmem:[%s8345_s9 + $0xc0] sm:$0xf]  ;;  %v2179_v57 = vrot.slane %v2177_v18, 4  ;;  %v1418_v28 = vrot.slane %v1416_v10, 1 }
  0xd2   : > { %10288 = vst [vmem:[#allocation10_spill] sm:$0xff] %v9239_v48  ;;  %10290 = vst [vmem:[#allocation11_spill] sm:$0xff] %v9255_v11  ;;  %v2167_v58 = vrot.slane %v2165_v15, 3  ;;  %v1411_v15 = vsel %vm1383_vm3, %v1406_v26, %v1410_v5  ;;  %v9289_v10 = vld [vmem:[%s8345_s9 + $0xc4] sm:$0xf]  ;;  %v10294_v5 = vld [vmem:[#allocation14_spill] sm:$0xff] }
  0xd3   : > { %7375 = vmatmul.mubr.msk.bf16.gmra.mrb[16].mxu0 %vm355_vm1, %v9119_v63  ;;  %v2174_v63 = vshrl.u32 %v10291_v16, 16  ;;  %v4084_v50 = vshrl.u32 %v6599_v39, 16  ;;  %v4087_v48 = vshll.u32 %v6599_v39, 16  ;;  %v4064_v16 = vsel %vm684_vm2, %v9128_v61, %v4063_v35 }
  0xd4   : > { %7378 = vmatprep.mubr.msk.bf16.mxu0 %vm355_vm1, %v9126_v44  ;;  %v1403_v39 = vsel %vm1383_vm3, %v9137_v43, %v9146_v24  ;;  %v2171_v45 = vor.u32 %v2170_v27, %v2167_v58  ;;  %v9280_v61 = vor.u32 %v4080_v30, %v4077_v2  ;;  %v1422_v26 = vor.u32 %v1420_v33, %v1418_v28  ;;  %v9292_v27 = vld [vmem:[%s8345_s9 + $0xc8] sm:$0xf]  ;;  %v9304_v30 = vld [vmem:[%s8345_s9 + $0xcc] sm:$0xf] }
  0xd5   : > { %v2176_v44 = vrot.slane %v2174_v63, 3  ;;  %v6600_v63 = vcombine.low %v9189_v51, %v9195_v25  ;;  %v4086_v24 = vrot.slane %v4084_v50, 3  ;;  %v4089_v58 = vrot.slane %v4087_v48, 4  ;;  %10295 = vst [vmem:[#allocation14_spill] sm:$0xff] %v9304_v30  ;;  %v10296_v50 = vld [vmem:[#allocation15_spill] sm:$0xff] }
  0xd6   : > { %v9286_v43 = vsel %vm684_vm2, %v2162_v8, %v2171_v45  ;;  %v2183_v56 = vshrl.u32 %v10294_v5, 16  ;;  %v2186_v2 = vshll.u32 %v10294_v5, 16 }
  0xd7   : > { %v2180_v18 = vor.u32 %v2179_v57, %v2176_v44  ;;  %10292 = vst [vmem:[#allocation12_spill] sm:$0xff] %v9286_v43  ;;  %v4093_v48 = vshrl.u32 %v6600_v63, 16  ;;  %v4096_v33 = vshll.u32 %v6600_v63, 16  ;;  %v2192_v57 = vshrl.u32 %v10296_v50, 16  ;;  %v8166_v43 = vld [vmem:[%s10228_s1 + $0x4] sm:$0x1] }
  0xd8   : > { %7153 = vmatmul.mubr.msk.bf16.gmra.mrb[44].mxu1 %vm355_vm1, %v8935_v17  ;;  %v1424_v17 = vshll.u32 %v9246_v6, 16  ;;  %v2185_v5 = vrot.slane %v2183_v56, 3  ;;  %v2188_v25 = vrot.slane %v2186_v2, 4  ;;  %v1419_v56 = vsel %vm1383_vm3, %v1414_v55, %v1418_v28 }
  0xd9   : > { %7158 = vmatprep.mubr.msk.bf16.mxu1 %vm355_vm1, %v9131_v22  ;;  %v4073_v22 = vsel %vm684_vm2, %v4063_v35, %v9243_v13  ;;  %v9295_v44 = vsel %vm684_vm2, %v2171_v45, %v2180_v18  ;;  %v2195_v45 = vshll.u32 %v10296_v50, 16  ;;  %v2194_v63 = vrot.slane %v2192_v57, 3 }
  0xda   : > { %10293 = vst [vmem:[#allocation13_spill] sm:$0xff] %v9295_v44  ;;  %v1426_v35 = vrot.slane %v1424_v17, 1  ;;  %v1432_v17 = vshll.u32 %v9283_v47, 16  ;;  %v9311_v44 = vld [vmem:[%s8345_s9 + $0xd0] sm:$0xf]  ;;  %v4090_v2 = vor.u32 %v4089_v58, %v4086_v24  ;;  %v4095_v50 = vrot.slane %v4093_v48, 3 }
  0xdb   : > { %7379 = vmatmul.mubr.msk.bf16.gmra.mrb[20].mxu0 %vm355_vm1, %v4055_v40  ;;  %v1428_v40 = vshrl.u32 %v9246_v6, 16  ;;  %v2197_v8 = vrot.slane %v2195_v45, 4  ;;  %v4082_v6 = vsel %vm684_vm2, %v9243_v13, %v9280_v61  ;;  %v4098_v57 = vrot.slane %v4096_v33, 4  ;;  %v9325_v45 = vld [vmem:[%s8345_s9 + $0x44] sm:$0xff]   ;;  %v9342_v48 = vld [vmem:[%s8345_s9 + $0xd8] sm:$0xf] }
  0xdc   : > { %7382 = vmatprep.mubr.msk.bf16.mxu0 %vm355_vm1, %v4064_v16  ;;  %v6601_v16 = vcombine.low %v9203_v41, %v9228_v9  ;;  %v6602_v13 = vcombine.low %v9236_v19, %v9255_v11  ;;  %v1434_v28 = vrot.slane %v1432_v17, 1  ;;  %v1436_v58 = vshrl.u32 %v9283_v47, 16  ;;  %v9355_v17 = vld [vmem:[%s8345_s9 + $0xdc] sm:$0xf]  ;;  %v8072_v41 = vld [vmem:[%s8345_s9 + $0x54] sm:$0xff]  }
  0xdd   : > { %v1430_v9 = vor.u32 %v1428_v40, %v1426_v35  ;;  %v4099_v47 = vor.u32 %v4098_v57, %v4095_v50  ;;  %v1440_v40 = vshll.u32 %v9325_v45, 16  ;;  %v8070_v50 = vld [vmem:[%s8345_s9 + $0x4c] sm:$0xff]   ;;  %v6604_v11 = vcombine.low %v9292_v27, %v9304_v30 }
  0xde   : > { %v4102_v24 = vshrl.u32 %v6601_v16, 16 }
  0xdf   : > { %v1442_v19 = vrot.slane %v1440_v40, 1  ;;  %v4132_v30 = vshll.u32 %v6604_v11, 16 }
  0xe0   : > { %7159 = vmatmul.mubr.msk.bf16.vlgmr.msra.gmra.mrb[0].mxu1 %vm355_vm1, %v1403_v39  ;;  %v2189_v39 = vor.u32 %v2188_v25, %v2185_v5  ;;  %v9335_v25 = vld [vmem:[%s8345_s9 + $0xd4] sm:$0xf]  ;;  %v2210_v5 = vshrl.u32 %v9102_v59, 16 }
  0xe1   : > { %7207 = vmatpush3.bf16.msra.mxu1 %v9135_v46  ;;  %7162 = vmatprep.mubr.msk.bf16.mxu1 %vm355_vm1, %v1411_v15  ;;  %v2198_v46 = vor.u32 %v2197_v8, %v2194_v63  ;;  %v1427_v15 = vsel %vm1383_vm3, %v1422_v26, %v1426_v35  ;;  %v4105_v26 = vshll.u32 %v6601_v16, 16  ;;  %v10299_v35 = vld [vmem:[#allocation16_spill] sm:$0xff]  ;;  %v4111_v16 = vshrl.u32 %v6602_v13, 16 }
  0xe2   : > { %7897 = vmatprep.subr.msk.bf16.mxu1 %vm428_vm0, %v8166_v43  ;;  %v9338_v55 = vsel %vm684_vm2, %v2180_v18, %v2189_v39  ;;  %v2201_v8 = vshrl.u32 %v10299_v35, 16  ;;  %v2204_v33 = vshll.u32 %v10299_v35, 16  ;;  %v4114_v63 = vshll.u32 %v6602_v13, 16 }
  0xe3   : > { %10297 = vst [vmem:[#allocation15_spill] sm:$0xff] %v9338_v55  ;;  %v9345_v43 = vsel %vm684_vm2, %v2189_v39, %v2198_v46  ;;  %7383 = vmatmul.mubr.msk.bf16.gmra.mrb[24].mxu0 %vm355_vm1, %v4073_v22  ;;  %v2213_v22 = vshll.u32 %v9102_v59, 16  ;;  %v9360_v39 = vld [vmem:[%s8345_s9 + $0xe0] sm:$0xf]  ;;  %v2212_v57 = vrot.slane %v2210_v5, 3  ;;  %v4104_v59 = vrot.slane %v4102_v24, 3 }
  0xe4   : > { %10298 = vst [vmem:[#allocation20_spill] sm:$0xff] %v9345_v43  ;;  %7386 = vmatprep.mubr.msk.bf16.mxu0 %vm355_vm1, %v4082_v6  ;;  %v2203_v43 = vrot.slane %v2201_v8, 3  ;;  %v2206_v35 = vrot.slane %v2204_v33, 4  ;;  %v4091_v6 = vsel %vm684_vm2, %v9280_v61, %v4090_v2  ;;  %v4107_v13 = vrot.slane %v4105_v26, 4 }
  0xe5   : > { %v2215_v18 = vrot.slane %v2213_v22, 4  ;;  %v6603_v8 = vcombine.low %v9260_v29, %v9289_v10  ;;  %v4100_v33 = vsel %vm684_vm2, %v4090_v2, %v4099_v47  ;;  %v4113_v5 = vrot.slane %v4111_v16, 3 }
  0xe6   : > { %v2207_v55 = vor.u32 %v2206_v35, %v2203_v43  ;;  %v4116_v22 = vrot.slane %v4114_v63, 4  ;;  %v1444_v24 = vshrl.u32 %v9325_v45, 16  ;;  %v1448_v26 = vshll.u32 %v8070_v50, 16  ;;  %v8074_v45 = vld [vmem:[%s8345_s9 + $0x5c] sm:$0xff]  }
  0xe7   : > { %v9373_v61 = vor.u32 %v2215_v18, %v2212_v57  ;;  %v4108_v43 = vor.u32 %v4107_v13, %v4104_v59  ;;  %v4120_v18 = vshrl.u32 %v6603_v8, 16  ;;  %v1452_v16 = vshrl.u32 %v8070_v50, 16  ;;  %v8076_v13 = vld [vmem:[%s8345_s9 + $0x64] sm:$0xff]  }
  0xe8   : > { %7163 = vmatmul.mubr.msk.bf16.gmra.mrb[4].mxu1 %vm355_vm1, %v1419_v56  ;;  %v1438_v56 = vor.u32 %v1436_v58, %v1434_v28  ;;  %v1435_v58 = vsel %vm1383_vm3, %v1430_v9, %v1434_v28  ;;  %v1456_v63 = vshll.u32 %v8072_v41, 16  ;;  %v4117_v35 = vor.u32 %v4116_v22, %v4113_v5 }
  0xe9   : > { %7166 = vmatprep.mubr.msk.bf16.mxu1 %vm355_vm1, %v1427_v15  ;;  %v9378_v15 = vsel %vm684_vm2, %v2198_v46, %v2207_v55  ;;  %v9383_v2 = vsel %vm684_vm2, %v2207_v55, %v9373_v61  ;;  %v4123_v46 = vshll.u32 %v6603_v8, 16  ;;  %v4129_v57 = vshrl.u32 %v6604_v11, 16 }
  0xea   : > { %v1443_v40 = vsel %vm1383_vm3, %v1438_v56, %v1442_v19  ;;  %v1446_v55 = vor.u32 %v1444_v24, %v1442_v19  ;;  %v4109_v9 = vsel %vm684_vm2, %v4099_v47, %v4108_v43  ;;  %v4122_v28 = vrot.slane %v4120_v18, 3 }
  0xeb   : > { %7387 = vmatmul.mubr.msk.bf16.gmra.mrb[28].mxu0 %vm355_vm1, %v4091_v6  ;;  %v1450_v6 = vrot.slane %v1448_v26, 1  ;;  %v6605_v59 = vcombine.low %v9311_v44, %v9335_v25  ;;  %v4125_v8 = vrot.slane %v4123_v46, 4  ;;  %v1464_v56 = vshll.u32 %v8074_v45, 16 }
  0xec   : > { %7390 = vmatprep.mubr.msk.bf16.mxu0 %vm355_vm1, %v4100_v33  ;;  %v1458_v33 = vrot.slane %v1456_v63, 1  ;;  %v4118_v5 = vsel %vm684_vm2, %v4108_v43, %v4117_v35  ;;  %v4131_v11 = vrot.slane %v4129_v57, 3  ;;  %v4134_v22 = vrot.slane %v4132_v30, 4 }
  0xed   : > { %v1454_v50 = vor.u32 %v1452_v16, %v1450_v6  ;;  %v6606_v19 = vcombine.low %v9342_v48, %v9355_v17  ;;  %v1451_v47 = vsel %vm1383_vm3, %v1446_v55, %v1450_v6  ;;  %v1460_v24 = vshrl.u32 %v8072_v41, 16  ;;  %v8078_v41 = vld [vmem:[%s8345_s9 + $0x6c] sm:$0xff]  }
  0xee   : > { %v4138_v26 = vshrl.u32 %v6605_v59, 16  ;;  %v1468_v18 = vshrl.u32 %v8074_v45, 16  ;;  %v4126_v46 = vor.u32 %v4125_v8, %v4122_v28  ;;  %v4135_v30 = vor.u32 %v4134_v22, %v4131_v11  ;;  %v8080_v8 = vld [vmem:[%s8345_s9 + $0x74] sm:$0xff]  }
  0xef   : > { %v1459_v43 = vsel %vm1383_vm3, %v1454_v50, %v1458_v33  ;;  %v1466_v16 = vrot.slane %v1464_v56, 1  ;;  %v4147_v63 = vshrl.u32 %v6606_v19, 16  ;;  %v4150_v57 = vshll.u32 %v6606_v19, 16 }
  0xf0   : > { %7167 = vmatmul.mubr.msk.bf16.gmra.mrb[8].mxu1 %vm355_vm1, %v1435_v58  ;;  %v4141_v58 = vshll.u32 %v6605_v59, 16  ;;  %v1462_v55 = vor.u32 %v1460_v24, %v1458_v33  ;;  %v4140_v6 = vrot.slane %v4138_v26, 3  ;;  %v6607_v28 = vcombine.low %v9360_v39, %v9360_v39 }
  0xf1   : > { %7170 = vmatprep.mubr.msk.bf16.mxu1 %vm355_vm1, %v1443_v40  ;;  %v1472_v40 = vshll.u32 %v8076_v13, 16  ;;  %v1470_v45 = vor.u32 %v1468_v18, %v1466_v16  ;;  %v4136_v50 = vsel %vm684_vm2, %v4126_v46, %v4135_v30  ;;  %v4149_v56 = vrot.slane %v4147_v63, 3 }
  0xf2   : > { %v4152_v11 = vrot.slane %v4150_v57, 4  ;;  %v1480_v22 = vshll.u32 %v8078_v41, 16  ;;  %v1467_v33 = vsel %vm1383_vm3, %v1462_v55, %v1466_v16  ;;  %v1476_v24 = vshrl.u32 %v8076_v13, 16 }
  0xf3   : > { %7391 = vmatmul.mubr.msk.bf16.gmra.mrb[32].mxu0 %vm355_vm1, %v4109_v9  ;;  %v4143_v9 = vrot.slane %v4141_v58, 4  ;;  %v1474_v59 = vrot.slane %v1472_v40, 1  ;;  %v4159_v26 = vshll.u32 %v6607_v28, 16  ;;  %v1484_v58 = vshrl.u32 %v8078_v41, 16 }
  0xf4   : > { %7394 = vmatprep.mubr.msk.bf16.mxu0 %vm355_vm1, %v4118_v5  ;;  %v4127_v5 = vsel %vm684_vm2, %v4117_v35, %v4126_v46  ;;  %v4156_v35 = vshrl.u32 %v6607_v28, 16  ;;  %v1488_v18 = vshll.u32 %v8080_v8, 16  ;;  %v4153_v40 = vor.u32 %v4152_v11, %v4149_v56 }
  0xf5   : > { %v4144_v19 = vor.u32 %v4143_v9, %v4140_v6  ;;  %v1482_v46 = vrot.slane %v1480_v22, 1  ;;  %v1478_v16 = vor.u32 %v1476_v24, %v1474_v59  ;;  %v4161_v55 = vrot.slane %v4159_v26, 4  ;;  %v8083_v9 = vld [vmem:[%s8345_s9 + $0x84] sm:$0xff]   ;;  %v8085_v22 = vld [vmem:[%s8345_s9 + $0x8c] sm:$0xff]  }
  0xf6   : > { %v4158_v57 = vrot.slane %v4156_v35, 3  ;;  %v1490_v6 = vrot.slane %v1488_v18, 1  ;;  %v1492_v28 = vshrl.u32 %v8080_v8, 16  ;;  %v1504_v56 = vshll.u32 %v8083_v9, 16  ;;  %v8168_v8 = vld [vmem:[%s8345_s9 + $0x28] sm:$0xf] }
  0xf7   : > { %v4145_v63 = vsel %vm684_vm2, %v4135_v30, %v4144_v19  ;;  %v1486_v13 = vor.u32 %v1484_v58, %v1482_v46  ;;  %v8087_v58 = vld [vmem:[%s8345_s9 + $0x94] sm:$0xff]   ;;  %v1512_v18 = vshll.u32 %v8085_v22, 16 }
  0xf8   : > { %7171 = vmatmul.mubr.msk.bf16.gmra.mrb[12].mxu1 %vm355_vm1, %v1451_v47  ;;  %v1475_v47 = vsel %vm1383_vm3, %v1470_v45, %v1474_v59  ;;  %v4154_v45 = vsel %vm684_vm2, %v4144_v19, %v4153_v40  ;;  %v4162_v30 = vor.u32 %v4161_v55, %v4158_v57  ;;  %v1506_v26 = vrot.slane %v1504_v56, 1  ;;  %v8089_v55 = vld [vmem:[%s8345_s9 + $0x9c] sm:$0xff]  }
  0xf9   : > { %7174 = vmatprep.mubr.msk.bf16.mxu1 %vm355_vm1, %v1459_v43  ;;  %v8082_v43 = vld [vmem:[%s8345_s9 + $0x7c] sm:$0xff]   ;;  %v1491_v59 = vsel %vm1383_vm3, %v1486_v13, %v1490_v6  ;;  %v1514_v57 = vrot.slane %v1512_v18, 1 }
  0xfa   : > { %v1496_v41 = vshll.u32 %v8082_v43, 16  ;;  %v4163_v19 = vsel %vm684_vm2, %v4153_v40, %v4162_v30  ;;  %v5329_v30 = vsel %vm428_vm0, %v9045_v52, 0 }
  0xfb   : > { %7395 = vmatmul.mubr.msk.bf16.gmra.mrb[36].mxu0 %vm355_vm1, %v4127_v5  ;;  %v1483_v5 = vsel %vm1383_vm3, %v1478_v16, %v1482_v46  ;;  %v1520_v16 = vshll.u32 %v8087_v58, 16 }
  0xfc   : > { %7398 = vmatprep.mubr.msk.bf16.mxu0 %vm355_vm1, %v4136_v50  ;;  %v1500_v50 = vshrl.u32 %v8082_v43, 16  ;;  %v1498_v11 = vrot.slane %v1496_v41, 1  ;;  %v1508_v43 = vshrl.u32 %v8083_v9, 16 }
  0xfd   : > { %v1522_v9 = vrot.slane %v1520_v16, 1 }
  0xfe   : > { %v1502_v35 = vor.u32 %v1500_v50, %v1498_v11  ;;  %v1510_v13 = vor.u32 %v1508_v43, %v1506_v26  ;;  %v10300_v50 = vcombine.low %v8798_v60, %v8801_v1  ;;  %v8171_v60 = vld [vmem:[%s8345_s9 + $0x3c] sm:$0xf]  ;;  %v8172_v1 = vld [vmem:[%s8345_s9 + $0x40] sm:$0xf]  ;;  %v8095_v43 = vld [vmem:[%s8345_s9 + $0xb4] sm:$0xff]  }
 0x100   : > { %7175 = vmatmul.mubr.msk.bf16.gmra.mrb[16].mxu1 %vm355_vm1, %v1467_v33  ;;  %v1494_v33 = vor.u32 %v1492_v28, %v1490_v6  ;;  %v1507_v40 = vsel %vm1383_vm3, %v1502_v35, %v1506_v26  ;;  %v8169_v6 = vld [vmem:[%s8345_s9 + $0x34] sm:$0xf]  ;;  %v8091_v28 = vld [vmem:[%s8345_s9 + $0xa4] sm:$0xff]   ;;  %v1515_v56 = vsel %vm1383_vm3, %v1510_v13, %v1514_v57  ;;  %v1552_v13 = vshll.u32 %v8095_v43, 16 }
 0x101   : > { %7178 = vmatprep.mubr.msk.bf16.mxu1 %vm355_vm1, %v1475_v47  ;;  %v8167_v47 = vld [vmem:[%s8345_s9 + $0x24] sm:$0xf]  ;;  %v8174_v26 = vld [vmem:[%s8345_s9 + $0x48] sm:$0xf]  ;;  %v1540_v16 = vshrl.u32 %v8091_v28, 16 }
 0x102   : > { %v6633_v24 = vcombine.low %v8167_v47, %v8168_v8  ;;  %v1499_v46 = vsel %vm1383_vm3, %v1494_v33, %v1498_v11  ;;  %v1524_v11 = vshrl.u32 %v8087_v58, 16  ;;  %v1532_v33 = vshrl.u32 %v8089_v55, 16  ;;  %v8093_v47 = vld [vmem:[%s8345_s9 + $0xac] sm:$0xff]   ;;  %v8173_v35 = vld [vmem:[%s8345_s9 + $0x44] sm:$0xf] }
 0x103   : > { %7399 = vmatmul.mubr.msk.bf16.gmra.mrb[40].mxu0 %vm355_vm1, %v4145_v63  ;;  %v1516_v63 = vshrl.u32 %v8085_v22, 16  ;;  %v6636_v8 = vcombine.low %v8171_v60, %v8172_v1  ;;  %v6637_v58 = vcombine.low %v8173_v35, %v8174_v26  ;;  %v8178_v1 = vld [vmem:[%s8345_s9 + $0x5c] sm:$0xf]  ;;  %v8101_v35 = vld [vmem:[%s8345_s9 + $0xcc] ss:$0 sps:$4 sm:$0x11]  }
 0x104   : > { %7402 = vmatprep.mubr.msk.bf16.mxu0 %vm355_vm1, %v4154_v45  ;;  %v8170_v45 = vld [vmem:[%s8345_s9 + $0x38] sm:$0xf]  ;;  %v8179_v26 = vld [vmem:[%s8345_s9 + $0x64] sm:$0xf] }
 0x105   : > { %v6635_v41 = vcombine.low %v8169_v6, %v8170_v45  ;;  %v8097_v45 = vld [vmem:[%s8345_s9 + $0xbc] sm:$0xff]  }
 0x108   : > { %7179 = vmatmul.mubr.msk.bf16.gmra.mrb[20].mxu1 %vm355_vm1, %v1483_v5  ;;  %v1518_v5 = vor.u32 %v1516_v63, %v1514_v57 }
 0x109   : > { %7182 = vmatprep.mubr.msk.bf16.mxu1 %vm355_vm1, %v1491_v59  ;;  %v1528_v59 = vshll.u32 %v8089_v55, 16  ;;  %v1548_v55 = vshrl.u32 %v8093_v47, 16 }
 0x10a   : > { %v1523_v22 = vsel %vm1383_vm3, %v1518_v5, %v1522_v9  ;;  %v8176_v5 = vld [vmem:[%s8345_s9 + $0x50] sm:$0xf] }
 0x10b   : > { %7403 = vmatmul.mubr.msk.bf16.gmra.mrb[44].mxu0 %vm355_vm1, %v4163_v19  ;;  %v1536_v19 = vshll.u32 %v8091_v28, 16  ;;  %v1530_v52 = vrot.slane %v1528_v59, 1  ;;  %v8177_v59 = vld [vmem:[%s8345_s9 + $0x54] sm:$0xf] }
 0x10c   : > { %7408 = vmatprep.mubr.msk.bf16.mxu0 %vm355_vm1, %v6633_v24  ;;  %v1526_v24 = vor.u32 %v1524_v11, %v1522_v9  ;;  %v6639_v28 = vcombine.low %v8177_v59, %v8987_v38  ;;  %v8099_v11 = vld [vmem:[%s8345_s9 + $0xc4] sm:$0xff]  }
 0x10d   : > { %v1534_v18 = vor.u32 %v1532_v33, %v1530_v52  ;;  %v1568_v60 = vshll.u32 %v8099_v11, 16 }
 0x10e   : > { %v1531_v63 = vsel %vm1383_vm3, %v1526_v24, %v1530_v52 }
 0x110   : > { %7183 = vmatmul.mubr.msk.bf16.gmra.mrb[24].mxu1 %vm355_vm1, %v1499_v46  ;;  %v1538_v46 = vrot.slane %v1536_v19, 1  ;;  %v1556_v19 = vshrl.u32 %v8095_v43, 16 }
 0x111   : > { %7186 = vmatprep.mubr.msk.bf16.mxu1 %vm355_vm1, %v1507_v40  ;;  %v1544_v40 = vshll.u32 %v8093_v47, 16  ;;  %v1564_v47 = vshrl.u32 %v8097_v45, 16 }
 0x112   : > { %v1539_v57 = vsel %vm1383_vm3, %v1534_v18, %v1538_v46 }
 0x113   : > { %7409 = vmatmul.mubr.msk.bf16.vlgmr.msra.gmra.mrb[0].mxu0 %vm355_vm1, %v10300_v50  ;;  %v1546_v6 = vrot.slane %v1544_v40, 1  ;;  %v1572_v40 = vshrl.u32 %v8099_v11, 16  ;;  %v9565_v11 = vld [vmem:[%s8345_s9 + $0x8c] sm:$0xf] }
 0x114   : > { %7457 = vmatpush3.bf16.msra.mxu0 %v5329_v30  ;;  %7412 = vmatprep.mubr.msk.bf16.mxu0 %vm355_vm1, %v6635_v41  ;;  %v8175_v41 = vld [vmem:[%s8345_s9 + $0x4c] sm:$0xf]  ;;  %v1542_v30 = vor.u32 %v1540_v16, %v1538_v46  ;;  %v1570_v46 = vrot.slane %v1568_v60, 1 }
 0x115   : > { %v6638_v9 = vcombine.low %v8175_v41, %v8176_v5  ;;  %v1550_v50 = vor.u32 %v1548_v55, %v1546_v6  ;;  %v10321_v5 = vld [vmem:[#allocation13_spill] sm:$0xff] }
 0x116   : > { %v1547_v33 = vsel %vm1383_vm3, %v1542_v30, %v1546_v6  ;;  %v10303_v6 = vcombine.low %v9015_v54, %v9037_v53  ;;  %v10308_v54 = vld [vmem:[#allocation17_spill] sm:$0xff]  ;;  %v10309_v53 = vld [vmem:[#allocation18_spill] sm:$0xff] }
 0x118   : > { %7187 = vmatmul.mubr.msk.bf16.gmra.mrb[28].mxu1 %vm355_vm1, %v1515_v56  ;;  %v1554_v56 = vrot.slane %v1552_v13, 1  ;;  %v10302_v13 = vcombine.low %v9009_v32, %v9012_v12  ;;  %v10306_v32 = vcombine.low %v9070_v21, %v9109_v42  ;;  %v10307_v12 = vcombine.low %v9112_v34, %v9149_v20  ;;  %v10313_v42 = vld [vmem:[#allocation10_spill] sm:$0xff]  ;;  %v10314_v34 = vld [vmem:[#allocation12_spill] sm:$0xff] }
 0x119   : > { %7190 = vmatprep.mubr.msk.bf16.mxu1 %vm355_vm1, %v1523_v22  ;;  %v1560_v22 = vshll.u32 %v8097_v45, 16  ;;  %v9538_v20 = vld [vmem:[%s8345_s9 + $0x7c] sm:$0xf] }
 0x11a   : > { %v1555_v52 = vsel %vm1383_vm3, %v1550_v50, %v1554_v56  ;;  %v1558_v24 = vor.u32 %v1556_v19, %v1554_v56  ;;  %v9561_v50 = vld [vmem:[%s8345_s9 + $0x88] sm:$0xf] }
 0x11b   : > { %7413 = vmatmul.mubr.msk.bf16.gmra.mrb[4].mxu0 %vm355_vm1, %v6636_v8  ;;  %v1562_v38 = vrot.slane %v1560_v22, 1  ;;  %v6640_v8 = vcombine.low %v8178_v1, %v8993_v31  ;;  %v1574_v31 = vor.u32 %v1572_v40, %v1570_v46  ;;  %v8116_v56 = vld [vmem:[%s8345_s9 + $0x24] sm:$0xff]   ;;  %v9568_v22 = vld [vmem:[%s8345_s9 + $0x90] sm:$0xf] }
 0x11c   : > { %7416 = vmatprep.mubr.msk.bf16.mxu0 %vm355_vm1, %v6637_v58  ;;  %v6641_v58 = vcombine.low %v8179_v26, %v8998_v49  ;;  %v10301_v49 = vcombine.low %v9001_v36, %v9006_v0  ;;  %v10304_v36 = vcombine.low %v9050_v14, %v9067_v37  ;;  %v10305_v0 = vld [vmem:[#allocation5_spill] sm:$0xff]  ;;  %v10310_v14 = vcombine.low %v10308_v54, %v10309_v53  ;;  %v10311_v37 = vld [vmem:[#allocation19_spill] sm:$0xff] }
 0x11d   : > { %v1566_v18 = vor.u32 %v1564_v47, %v1562_v38  ;;  %v1563_v43 = vsel %vm1383_vm3, %v1558_v24, %v1562_v38  ;;  %v10312_v21 = vcombine.low %v10311_v37, %v9189_v51  ;;  %v10318_v51 = vld [vmem:[#allocation8_spill] sm:$0xff]  ;;  %v10325_v47 = vcombine.low %v9289_v10, %v9292_v27 }
 0x11e   : > { %v6449_v1 = vcombine.low %v9565_v11, %v9568_v22  ;;  %v10326_v24 = vld [vmem:[#allocation20_spill] sm:$0xff]  ;;  %v5061_v10 = vshrl.u32 %v8116_v56, 16 }
 0x11f   : > { %v1571_v16 = vsel %vm1383_vm3, %v1566_v18, %v1570_v46  ;;  %v9588_v46 = vld [vmem:[%s8345_s9 + $0x94] sm:$0xf] }
 0x120   : > { %7191 = vmatmul.mubr.msk.bf16.gmra.mrb[32].mxu1 %vm355_vm1, %v1531_v63  ;;  %v1576_v63 = vshll.u32 %v8101_v35, 16  ;;  %v2240_v18 = vshll.u32 %v6449_v1, 16 }
 0x121   : > { %7194 = vmatprep.mubr.msk.bf16.mxu1 %vm355_vm1, %v1539_v57 }
 0x122   : > { %v1578_v57 = vrot.slane %v1576_v63, 1 }
 0x123   : > { %7417 = vmatmul.mubr.msk.bf16.gmra.mrb[8].mxu0 %vm355_vm1, %v6638_v9  ;;  %v10322_v9 = vld [vmem:[#allocation15_spill] sm:$0xff] }
 0x124   : > { %7420 = vmatprep.mubr.msk.bf16.mxu0 %vm355_vm1, %v6639_v28  ;;  %v1579_v55 = vsel %vm1383_vm3, %v1574_v31, %v1578_v57  ;;  %v9558_v28 = vld [vmem:[%s8345_s9 + $0x84] sm:$0xf]  ;;  %v9597_v31 = vld [vmem:[%s8345_s9 + $0xa0] sm:$0xf]  ;;  %v8120_v57 = vld [vmem:[%s8345_s9 + $0x34] sm:$0xff]  }
 0x128   : > { %7195 = vmatmul.mubr.msk.bf16.gmra.mrb[36].mxu1 %vm355_vm1, %v1547_v33  ;;  %v10323_v33 = vld [vmem:[#allocation11_spill] sm:$0xff] }
 0x129   : > { %7198 = vmatprep.mubr.msk.bf16.mxu1 %vm355_vm1, %v1555_v52  ;;  %v10324_v19 = vcombine.low %v10323_v33, %v9260_v29  ;;  %v6448_v52 = vcombine.low %v9558_v28, %v9561_v50  ;;  %v8117_v29 = vld [vmem:[%s8345_s9 + $0x2c] sm:$0xff]  }
 0x12a   : > { %v5068_v63 = vshll.u32 %v8117_v29, 16 }
 0x12b   : > { %7421 = vmatmul.mubr.msk.bf16.gmra.mrb[12].mxu0 %vm355_vm1, %v6640_v8  ;;  %v5063_v8 = vshll.u32 %v8116_v56, 16  ;;  %v2228_v27 = vshrl.u32 %v6448_v52, 16  ;;  %v2231_v35 = vshll.u32 %v6448_v52, 16 }
 0x12c   : > { %7424 = vmatprep.mubr.msk.bf16.mxu0 %vm355_vm1, %v6641_v58  ;;  %v2237_v58 = vshrl.u32 %v6449_v1, 16  ;;  %v5070_v53 = vrot.slane %v5068_v63, 1  ;;  %v9648_v63 = vld [vmem:[%s8345_s9 + $0xb4] sm:$0xf] }
 0x12d   : > { %v5065_v40 = vrot.slane %v5063_v8, 1 }
 0x12f   : > { %v5066_v54 = vor.u32 %v5065_v40, %v5061_v10 }
 0x130   : > { %7199 = vmatmul.mubr.msk.bf16.gmra.mrb[40].mxu1 %vm355_vm1, %v1563_v43  ;;  %v9591_v43 = vld [vmem:[%s8345_s9 + $0x98] sm:$0xf] }
 0x131   : > { %7202 = vmatprep.mubr.msk.bf16.mxu1 %vm355_vm1, %v1571_v16  ;;  %v9594_v16 = vld [vmem:[%s8345_s9 + $0x9c] sm:$0xf] }
 0x133   : > { %7425 = vmatmul.mubr.msk.bf16.gmra.mrb[16].mxu0 %vm355_vm1, %v10301_v49  ;;  %v10327_v49 = vld [vmem:[#allocation14_spill] sm:$0xff] }
 0x134   : > { %7428 = vmatprep.mubr.msk.bf16.mxu0 %vm355_vm1, %v10302_v13  ;;  %v2233_v13 = vrot.slane %v2231_v35, 4 }
 0x138   : > { %7203 = vmatmul.mubr.msk.bf16.gmra.mrb[44].mxu1 %vm355_vm1, %v1579_v55  ;;  %v2230_v55 = vrot.slane %v2228_v27, 3 }
 0x139   : > { %7208 = vmatprep.mubr.msk.bf16.mxu1 %vm355_vm1, %v9166_v62  ;;  %v9541_v62 = vld [vmem:[%s8345_s9 + $0x80] sm:$0xf] }
 0x13a   : > { %v6447_v41 = vcombine.low %v9538_v20, %v9541_v62 }
 0x13b   : > { %7429 = vmatmul.mubr.msk.bf16.gmra.mrb[20].mxu0 %vm355_vm1, %v10303_v6  ;;  %v6450_v6 = vcombine.low %v9588_v46, %v9591_v43 }
 0x13c   : > { %7432 = vmatprep.mubr.msk.bf16.mxu0 %vm355_vm1, %v10304_v36  ;;  %v2219_v30 = vshrl.u32 %v6447_v41, 16  ;;  %v2222_v59 = vshll.u32 %v6447_v41, 16  ;;  %v10329_v36 = vcombine.low %v9335_v25, %v9342_v48  ;;  %v5072_v25 = vshrl.u32 %v8117_v29, 16  ;;  %v9629_v41 = vld [vmem:[%s8345_s9 + $0xb0] sm:$0xf] }
 0x13d   : > { %v5076_v48 = vshll.u32 %v8120_v57, 16  ;;  %v2246_v37 = vshrl.u32 %v6450_v6, 16  ;;  %v8126_v29 = vld [vmem:[%s8345_s9 + $0x4c] sm:$0xff]  }
 0x13e   : > { %v2221_v60 = vrot.slane %v2219_v30, 3  ;;  %v2224_v38 = vrot.slane %v2222_v59, 4  ;;  %v8124_v30 = vld [vmem:[%s8345_s9 + $0x44] sm:$0xff]   ;;  %v10330_v59 = vcombine.low %v9355_v17, %v9360_v39 }
 0x13f   : > { %v2248_v33 = vrot.slane %v2246_v37, 3 }
 0x140   : > { %7209 = vmatmul.mubr.msk.bf16.vlgmr.msra.gmra.mrb[0].mxu1 %vm355_vm1, %v9170_v3  ;;  %v10315_v3 = vld [vmem:[#allocation6_spill] sm:$0xff]  ;;  %v2225_v26 = vor.u32 %v2224_v38, %v2221_v60 }
 0x141   : > { %7507 = vmatpush3.bf16.msra.mxu1 %v10305_v0  ;;  %7212 = vmatprep.mubr.msk.bf16.mxu1 %vm355_vm1, %v9212_v23  ;;  %v10316_v23 = vld [vmem:[#allocation7_spill] sm:$0xff] }
 0x142   : > { %v2226_v0 = vsel %vm684_vm2, %v9373_v61, %v2225_v26  ;;  %v2234_v61 = vor.u32 %v2233_v13, %v2230_v55  ;;  %v5100_v55 = vshll.u32 %v8126_v29, 16  ;;  %v9655_v13 = vld [vmem:[%s8345_s9 + $0xbc] sm:$0xf] }
 0x143   : > { %7433 = vmatmul.mubr.msk.bf16.gmra.mrb[24].mxu0 %vm355_vm1, %v10306_v32  ;;  %v2239_v32 = vrot.slane %v2237_v58, 3 }
 0x144   : > { %7436 = vmatprep.mubr.msk.bf16.mxu0 %vm355_vm1, %v10307_v12  ;;  %v2242_v12 = vrot.slane %v2240_v18, 4  ;;  %v2235_v56 = vsel %vm684_vm2, %v2225_v26, %v2234_v61 }
 0x148   : > { %7213 = vmatmul.mubr.msk.bf16.gmra.mrb[4].mxu1 %vm355_vm1, %v9219_v7  ;;  %v10317_v7 = vcombine.low %v10315_v3, %v10316_v23  ;;  %v9619_v23 = vld [vmem:[%s8345_s9 + $0xa4] sm:$0xf] }
 0x149   : > { %7216 = vmatprep.mubr.msk.bf16.mxu1 %vm355_vm1, %v9231_v4  ;;  %v10319_v4 = vld [vmem:[#allocation9_spill] sm:$0xff] }
 0x14a   : > { %v10320_v45 = vcombine.low %v10318_v51, %v10319_v4  ;;  %v5071_v51 = vsel %vm1383_vm3, %v5066_v54, %v5070_v53  ;;  %v5080_v4 = vshrl.u32 %v8120_v57, 16  ;;  %v9651_v57 = vld [vmem:[%s8345_s9 + $0xb8] sm:$0xf] }
 0x14b   : > { %7437 = vmatmul.mubr.msk.bf16.gmra.mrb[28].mxu0 %vm355_vm1, %v10310_v14  ;;  %v8122_v14 = vld [vmem:[%s8345_s9 + $0x3c] sm:$0xff]  }
 0x14c   : > { %7440 = vmatprep.mubr.msk.bf16.mxu0 %vm355_vm1, %v10312_v21  ;;  %v2249_v21 = vshll.u32 %v6450_v6, 16  ;;  %v5088_v8 = vshrl.u32 %v8122_v14, 16  ;;  %v9658_v6 = vld [vmem:[%s8345_s9 + $0xc0] sm:$0xf] }
 0x150   : > { %7217 = vmatmul.mubr.msk.bf16.gmra.mrb[8].mxu1 %vm355_vm1, %v10313_v42  ;;  %v2243_v42 = vor.u32 %v2242_v12, %v2239_v32  ;;  %v8128_v32 = vld [vmem:[%s8345_s9 + $0x54] sm:$0xff]  }
 0x151   : > { %7220 = vmatprep.mubr.msk.bf16.mxu1 %vm355_vm1, %v10314_v34 }
 0x153   : > { %7441 = vmatmul.mubr.msk.bf16.gmra.mrb[32].mxu0 %vm355_vm1, %v10317_v7  ;;  %v9622_v7 = vld [vmem:[%s8345_s9 + $0xa8] sm:$0xf] }
 0x154   : > { %7444 = vmatprep.mubr.msk.bf16.mxu0 %vm355_vm1, %v10320_v45  ;;  %v9626_v45 = vld [vmem:[%s8345_s9 + $0xac] sm:$0xf]  ;;  %v6452_v52 = vcombine.low %v9619_v23, %v9622_v7 }
 0x155   : > { %v6453_v1 = vcombine.low %v9626_v45, %v9629_v41 }
 0x156   : > { %v2264_v27 = vshrl.u32 %v6452_v52, 16  ;;  %v2267_v35 = vshll.u32 %v6452_v52, 16  ;;  %v5112_v52 = vshrl.u32 %v8128_v32, 16 }
 0x157   : > { %v2273_v18 = vshrl.u32 %v6453_v1, 16  ;;  %v2276_v40 = vshll.u32 %v6453_v1, 16 }
 0x158   : > { %7221 = vmatmul.mubr.msk.bf16.gmra.mrb[12].mxu1 %vm355_vm1, %v10321_v5  ;;  %v5074_v5 = vor.u32 %v5072_v25, %v5070_v53  ;;  %v2269_v54 = vrot.slane %v2267_v35, 4  ;;  %v6454_v53 = vcombine.low %v9648_v63, %v9651_v57 }
 0x159   : > { %7224 = vmatprep.mubr.msk.bf16.mxu1 %vm355_vm1, %v10322_v9  ;;  %v5078_v9 = vrot.slane %v5076_v48, 1  ;;  %v2275_v25 = vrot.slane %v2273_v18, 3  ;;  %v2278_v48 = vrot.slane %v2276_v40, 4 }
 0x15b   : > { %7445 = vmatmul.mubr.msk.bf16.gmra.mrb[36].mxu0 %vm355_vm1, %v10324_v19  ;;  %v2251_v19 = vrot.slane %v2249_v21, 4  ;;  %v5082_v17 = vor.u32 %v5080_v4, %v5078_v9  ;;  %v5079_v26 = vsel %vm1383_vm3, %v5074_v5, %v5078_v9  ;;  %v5102_v21 = vrot.slane %v5100_v55, 1 }
 0x15c   : > { %7448 = vmatprep.mubr.msk.bf16.mxu0 %vm355_vm1, %v10325_v47  ;;  %v2244_v47 = vsel %vm684_vm2, %v2234_v61, %v2243_v42  ;;  %v6455_v61 = vcombine.low %v9655_v13, %v9658_v6  ;;  %v2282_v4 = vshrl.u32 %v6454_v53, 16  ;;  %v2279_v9 = vor.u32 %v2278_v48, %v2275_v25 }
 0x15d   : > { %v2252_v10 = vor.u32 %v2251_v19, %v2248_v33  ;;  %v9677_v33 = vld [vmem:[%s8345_s9 + $0xc8] sm:$0xf] }
 0x15f   : > { %v2253_v12 = vsel %vm684_vm2, %v2243_v42, %v2252_v10  ;;  %v5104_v42 = vshrl.u32 %v8126_v29, 16 }
 0x160   : > { %7225 = vmatmul.mubr.msk.bf16.gmra.mrb[16].mxu1 %vm355_vm1, %v10326_v24  ;;  %v5092_v24 = vshll.u32 %v8124_v30, 16 }
 0x161   : > { %7228 = vmatprep.mubr.msk.bf16.mxu1 %vm355_vm1, %v9378_v15  ;;  %v10328_v15 = vcombine.low %v10327_v49, %v9311_v44  ;;  %v6451_v44 = vcombine.low %v9594_v16, %v9597_v31  ;;  %v5106_v1 = vor.u32 %v5104_v42, %v5102_v21 }
 0x163   : > { %7449 = vmatmul.mubr.msk.bf16.gmra.mrb[40].mxu0 %vm355_vm1, %v10328_v15  ;;  %v2255_v34 = vshrl.u32 %v6451_v44, 16  ;;  %v2258_v3 = vshll.u32 %v6451_v44, 16  ;;  %v5096_v15 = vshrl.u32 %v8124_v30, 16  ;;  %v2266_v44 = vrot.slane %v2264_v27, 3 }
 0x164   : > { %7452 = vmatprep.mubr.msk.bf16.mxu0 %vm355_vm1, %v10329_v36  ;;  %v2291_v30 = vshrl.u32 %v6455_v61, 16 }
 0x165   : > { %v2257_v60 = vrot.slane %v2255_v34, 3  ;;  %v2260_v38 = vrot.slane %v2258_v3, 4  ;;  %v8130_v34 = vld [vmem:[%s8345_s9 + $0x5c] sm:$0xff]   ;;  %v5108_v3 = vshll.u32 %v8128_v32, 16 }
 0x166   : > { %v2293_v35 = vrot.slane %v2291_v30, 3 }
 0x167   : > { %v2261_v58 = vor.u32 %v2260_v38, %v2257_v60  ;;  %v9681_v60 = vld [vmem:[%s8345_s9 + $0xcc] sm:$0xf]  ;;  %v9684_v38 = vld [vmem:[%s8345_s9 + $0xd0] sm:$0xf] }
 0x168   : > { %7229 = vmatmul.mubr.msk.bf16.gmra.mrb[20].mxu1 %vm355_vm1, %v9383_v2  ;;  %v5084_v2 = vshll.u32 %v8122_v14, 16  ;;  %v6457_v18 = vcombine.low %v9681_v60, %v9684_v38 }
 0x169   : > { %7232 = vmatprep.mubr.msk.bf16.mxu1 %vm355_vm1, %v2226_v0  ;;  %v5094_v0 = vrot.slane %v5092_v24, 1  ;;  %v2262_v14 = vsel %vm684_vm2, %v2252_v10, %v2261_v58 }
 0x16a   : > { %v5086_v39 = vrot.slane %v5084_v2, 1  ;;  %v2285_v2 = vshll.u32 %v6454_v53, 16  ;;  %v2312_v53 = vshll.u32 %v6457_v18, 16 }
 0x16b   : > { %7453 = vmatmul.mubr.msk.bf16.gmra.mrb[44].mxu0 %vm355_vm1, %v10330_v59  ;;  %v5098_v37 = vor.u32 %v5096_v15, %v5094_v0  ;;  %v2294_v59 = vshll.u32 %v6455_v61, 16  ;;  %v8134_v15 = vld [vmem:[%s8345_s9 + $0x6c] sm:$0xff]  }
 0x16c   : > { %7458 = vmatprep.mubr.msk.bf16.mxu0 %vm355_vm1, %v5071_v51  ;;  %v5087_v49 = vsel %vm1383_vm3, %v5082_v17, %v5086_v39  ;;  %v5090_v36 = vor.u32 %v5088_v8, %v5086_v39  ;;  %v2270_v51 = vor.u32 %v2269_v54, %v2266_v44  ;;  %v5110_v17 = vrot.slane %v5108_v3, 1  ;;  %v8132_v39 = vld [vmem:[%s8345_s9 + $0x64] sm:$0xff]  }
 0x16d   : > { %v5103_v19 = vsel %vm1383_vm3, %v5098_v37, %v5102_v21  ;;  %v2284_v8 = vrot.slane %v2282_v4, 3  ;;  %v2287_v24 = vrot.slane %v2285_v2, 4  ;;  %v2309_v54 = vshrl.u32 %v6457_v18, 16 }
 0x16e   : > { %v5095_v5 = vsel %vm1383_vm3, %v5090_v36, %v5094_v0  ;;  %v2271_v29 = vsel %vm684_vm2, %v2261_v58, %v2270_v51  ;;  %v2280_v27 = vsel %vm684_vm2, %v2270_v51, %v2279_v9  ;;  %v5114_v40 = vor.u32 %v5112_v52, %v5110_v17  ;;  %v8136_v51 = vld [vmem:[%s8345_s9 + $0x74] sm:$0xff]   ;;  %v8138_v52 = vld [vmem:[%s8345_s9 + $0x7c] sm:$0xff]  }
 0x16f   : > { %v5124_v58 = vshll.u32 %v8132_v39, 16  ;;  %v5111_v55 = vsel %vm1383_vm3, %v5106_v1, %v5110_v17  ;;  %v2288_v36 = vor.u32 %v2287_v24, %v2284_v8  ;;  %v5128_v48 = vshrl.u32 %v8132_v39, 16 }
 0x170   : > { %7233 = vmatmul.mubr.msk.bf16.gmra.mrb[24].mxu1 %vm355_vm1, %v2235_v56  ;;  %v9674_v56 = vld [vmem:[%s8345_s9 + $0xc4] sm:$0xf]  ;;  %v5132_v61 = vshll.u32 %v8134_v15, 16  ;;  %v2314_v30 = vrot.slane %v2312_v53, 4 }
 0x171   : > { %7236 = vmatprep.mubr.msk.bf16.mxu1 %vm355_vm1, %v2244_v47  ;;  %v5116_v47 = vshll.u32 %v8130_v34, 16  ;;  %v6456_v10 = vcombine.low %v9674_v56, %v9677_v33  ;;  %v5126_v37 = vrot.slane %v5124_v58, 1  ;;  %v2289_v21 = vsel %vm684_vm2, %v2279_v9, %v2288_v36 }
 0x173   : > { %7459 = vmatmul.mubr.msk.bf16.vlgmr.msra.gmra.mrb[0].mxu0 %vm355_vm1, %v5079_v26  ;;  %v2296_v26 = vrot.slane %v2294_v59, 4  ;;  %v2300_v0 = vshrl.u32 %v6456_v10, 16  ;;  %v2303_v32 = vshll.u32 %v6456_v10, 16  ;;  %v5130_v59 = vor.u32 %v5128_v48, %v5126_v37 }
 0x174   : > { %7462 = vmatprep.mubr.msk.bf16.mxu0 %vm355_vm1, %v5087_v49  ;;  %v5118_v49 = vrot.slane %v5116_v47, 1  ;;  %v5140_v47 = vshll.u32 %v8136_v51, 16  ;;  %v5144_v10 = vshrl.u32 %v8136_v51, 16 }
 0x175   : > { %v2297_v44 = vor.u32 %v2296_v26, %v2293_v35  ;;  %v2302_v42 = vrot.slane %v2300_v0, 3  ;;  %v2305_v3 = vrot.slane %v2303_v32, 4  ;;  %v8142_v0 = vld [vmem:[%s8345_s9 + $0x8c] sm:$0xff]  }
 0x176   : > { %v5119_v25 = vsel %vm1383_vm3, %v5114_v40, %v5118_v49  ;;  %v5142_v26 = vrot.slane %v5140_v47, 1  ;;  %v5164_v48 = vshll.u32 %v8142_v0, 16 }
 0x177   : > { %v2298_v2 = vsel %vm684_vm2, %v2288_v36, %v2297_v44  ;;  %v2306_v9 = vor.u32 %v2305_v3, %v2302_v42  ;;  %v8143_v3 = vld [vmem:[%s8345_s9 + $0x94] sm:$0xff]  }
 0x178   : > { %7237 = vmatmul.mubr.msk.bf16.gmra.mrb[28].mxu1 %vm355_vm1, %v2253_v12  ;;  %v5120_v12 = vshrl.u32 %v8130_v34, 16 }
 0x179   : > { %7240 = vmatprep.mubr.msk.bf16.mxu1 %vm355_vm1, %v2262_v14  ;;  %v9700_v14 = vld [vmem:[%s8345_s9 + $0xd4] sm:$0xf]  ;;  %v2307_v35 = vsel %vm684_vm2, %v2297_v44, %v2306_v9 }
 0x17a   : > { %v6458_v34 = vcombine.low %v9700_v14, %v9700_v14  ;;  %v5122_v4 = vor.u32 %v5120_v12, %v5118_v49  ;;  %v8140_v49 = vld [vmem:[%s8345_s9 + $0x84] sm:$0xff]  }
 0x17b   : > { %7463 = vmatmul.mubr.msk.bf16.gmra.mrb[4].mxu0 %vm355_vm1, %v5095_v5  ;;  %v2311_v5 = vrot.slane %v2309_v54, 3  ;;  %v5156_v12 = vshll.u32 %v8140_v49, 16  ;;  %v5152_v54 = vshrl.u32 %v8138_v52, 16 }
 0x17c   : > { %7466 = vmatprep.mubr.msk.bf16.mxu0 %vm355_vm1, %v5103_v19  ;;  %v5134_v19 = vrot.slane %v5132_v61, 1  ;;  %v2318_v1 = vshrl.u32 %v6458_v34, 16  ;;  %v2321_v17 = vshll.u32 %v6458_v34, 16  ;;  %v5127_v39 = vsel %vm1383_vm3, %v5122_v4, %v5126_v37 }
 0x17d   : > { %v2315_v8 = vor.u32 %v2314_v30, %v2311_v5  ;;  %v5158_v37 = vrot.slane %v5156_v12, 1  ;;  %v5166_v4 = vrot.slane %v5164_v48, 1  ;;  %v5172_v5 = vshll.u32 %v8143_v3, 16 }
 0x17e   : > { %v5135_v24 = vsel %vm1383_vm3, %v5130_v59, %v5134_v19  ;;  %v2320_v18 = vrot.slane %v2318_v1, 3  ;;  %v2323_v40 = vrot.slane %v2321_v17, 4  ;;  %v5168_v59 = vshrl.u32 %v8142_v0, 16  ;;  %v8147_v17 = vld [vmem:[%s8345_s9 + $0xa4] sm:$0xff]  }
 0x17f   : > { %v5174_v47 = vrot.slane %v5172_v5, 1  ;;  %v6498_v1 = vcombine.low %v9561_v50, %v9565_v11  ;;  %v5192_v50 = vshrl.u32 %v8147_v17, 16 }
 0x180   : > { %7241 = vmatmul.mubr.msk.bf16.gmra.mrb[32].mxu1 %vm355_vm1, %v2271_v29  ;;  %v5136_v29 = vshrl.u32 %v8134_v15, 16  ;;  %v5146_v15 = vor.u32 %v5144_v10, %v5142_v26  ;;  %v2324_v32 = vor.u32 %v2323_v40, %v2320_v18  ;;  %v6500_v18 = vcombine.low %v9591_v43, %v9594_v16  ;;  %v8151_v40 = vld [vmem:[%s8345_s9 + $0xb4] sm:$0xff]  }
 0x181   : > { %7244 = vmatprep.mubr.msk.bf16.mxu1 %vm355_vm1, %v2280_v27  ;;  %v5148_v27 = vshll.u32 %v8138_v52, 16  ;;  %v5208_v43 = vshrl.u32 %v8151_v40, 16 }
 0x182   : > { %v5138_v58 = vor.u32 %v5136_v29, %v5134_v19  ;;  %v2325_v61 = vsel %vm684_vm2, %v2315_v8, %v2324_v32  ;;  %v6501_v32 = vcombine.low %v9597_v31, %v9619_v23 }
 0x183   : > { %7467 = vmatmul.mubr.msk.bf16.gmra.mrb[8].mxu0 %vm355_vm1, %v5111_v55  ;;  %v2316_v55 = vsel %vm684_vm2, %v2306_v9, %v2315_v8  ;;  %v5150_v36 = vrot.slane %v5148_v27, 1  ;;  %v6497_v9 = vcombine.low %v9541_v62, %v9558_v28  ;;  %v5188_v62 = vshll.u32 %v8147_v17, 16 }
 0x184   : > { %7470 = vmatprep.mubr.msk.bf16.mxu0 %vm355_vm1, %v5119_v25  ;;  %v5143_v44 = vsel %vm1383_vm3, %v5138_v58, %v5142_v26  ;;  %v5160_v25 = vshrl.u32 %v8140_v49, 16 }
 0x185   : > { %v5151_v53 = vsel %vm1383_vm3, %v5146_v15, %v5150_v36  ;;  %v5154_v51 = vor.u32 %v5152_v54, %v5150_v36  ;;  %v5190_v26 = vrot.slane %v5188_v62, 1  ;;  %v8153_v15 = vld [vmem:[%s8345_s9 + $0xbc] sm:$0xff]   ;;  %v8155_v54 = vld [vmem:[%s8345_s9 + $0xc4] sm:$0xff]  }
 0x186   : > { %v5162_v34 = vor.u32 %v5160_v25, %v5158_v37  ;;  %v5212_v16 = vshll.u32 %v8153_v15, 16  ;;  %v5220_v31 = vshll.u32 %v8155_v54, 16 }
 0x187   : > { %v5159_v30 = vsel %vm1383_vm3, %v5154_v51, %v5158_v37  ;;  %v5194_v58 = vor.u32 %v5192_v50, %v5190_v26  ;;  %v5216_v37 = vshrl.u32 %v8153_v15, 16  ;;  %v6504_v51 = vcombine.low %v9651_v57, %v9655_v13 }
 0x188   : > { %7245 = vmatmul.mubr.msk.bf16.gmra.mrb[36].mxu1 %vm355_vm1, %v2289_v21  ;;  %v8180_v21 = vld [vmem:[%s8345_s9 + $0x78] sm:$0xf]  ;;  %v5167_v19 = vsel %vm1383_vm3, %v5162_v34, %v5166_v4  ;;  %v5214_v48 = vrot.slane %v5212_v16, 1  ;;  %v6505_v13 = vcombine.low %v9658_v6, %v9674_v56 }
 0x189   : > { %7248 = vmatprep.mubr.msk.bf16.mxu1 %vm355_vm1, %v2298_v2  ;;  %v6496_v42 = vcombine.low %v8180_v21, %v9538_v20  ;;  %v8145_v2 = vld [vmem:[%s8345_s9 + $0x9c] sm:$0xff]   ;;  %v5176_v20 = vshrl.u32 %v8143_v3, 16  ;;  %v5222_v3 = vrot.slane %v5220_v31, 1  ;;  %v8159_v34 = vld [vmem:[%s8345_s9 + $0xd4] sm:$0xff]  }
 0x18a   : > { %v5180_v52 = vshll.u32 %v8145_v2, 16  ;;  %v5184_v10 = vshrl.u32 %v8145_v2, 16 }
 0x18b   : > { %7471 = vmatmul.mubr.msk.bf16.gmra.mrb[12].mxu0 %vm355_vm1, %v5127_v39  ;;  %v5170_v39 = vor.u32 %v5168_v59, %v5166_v4  ;;  %v5178_v29 = vor.u32 %v5176_v20, %v5174_v47  ;;  %v5218_v4 = vor.u32 %v5216_v37, %v5214_v48  ;;  %v5236_v59 = vshll.u32 %v8159_v34, 16 }
 0x18c   : > { %7474 = vmatprep.mubr.msk.bf16.mxu0 %vm355_vm1, %v5135_v24  ;;  %v5182_v8 = vrot.slane %v5180_v52, 1  ;;  %v8149_v24 = vld [vmem:[%s8345_s9 + $0xac] sm:$0xff]   ;;  %v5240_v20 = vshrl.u32 %v8159_v34, 16 }
 0x18d   : > { %v5175_v28 = vsel %vm1383_vm3, %v5170_v39, %v5174_v47  ;;  %v5196_v11 = vshll.u32 %v8149_v24, 16  ;;  %v5200_v36 = vshrl.u32 %v8149_v24, 16  ;;  %v5238_v52 = vrot.slane %v5236_v59, 1 }
 0x18e   : > { %v5183_v27 = vsel %vm1383_vm3, %v5178_v29, %v5182_v8  ;;  %v5186_v49 = vor.u32 %v5184_v10, %v5182_v8  ;;  %v6507_v24 = vcombine.low %v9684_v38, %v9700_v14 }
 0x18f   : > { %v5242_v17 = vor.u32 %v5240_v20, %v5238_v52 }
 0x190   : > { %7249 = vmatmul.mubr.msk.bf16.gmra.mrb[40].mxu1 %vm355_vm1, %v2307_v35  ;;  %v6499_v35 = vcombine.low %v9568_v22, %v9588_v46  ;;  %v5204_v22 = vshll.u32 %v8151_v40, 16  ;;  %v5191_v46 = vsel %vm1383_vm3, %v5186_v49, %v5190_v26 }
 0x191   : > { %7252 = vmatprep.mubr.msk.bf16.mxu1 %vm355_vm1, %v2316_v55  ;;  %v5198_v55 = vrot.slane %v5196_v11, 1 }
 0x192   : > { %v5206_v12 = vrot.slane %v5204_v22, 1 }
 0x193   : > { %7475 = vmatmul.mubr.msk.bf16.gmra.mrb[16].mxu0 %vm355_vm1, %v5143_v44  ;;  %v5199_v0 = vsel %vm1383_vm3, %v5194_v58, %v5198_v55  ;;  %v6502_v44 = vcombine.low %v9622_v7, %v9626_v45  ;;  %v5224_v7 = vshrl.u32 %v8155_v54, 16  ;;  %v5604_v54 = vlaneseq }
 0x194   : > { %7478 = vmatprep.mubr.msk.bf16.mxu0 %vm355_vm1, %v5151_v53  ;;  %v5202_v53 = vor.u32 %v5200_v36, %v5198_v55  ;;  %v5210_v25 = vor.u32 %v5208_v43, %v5206_v12 }
 0x195   : > { %v5226_v2 = vor.u32 %v5224_v7, %v5222_v3 }
 0x196   : > { %v5207_v23 = vsel %vm1383_vm3, %v5202_v53, %v5206_v12  ;;  %v5215_v21 = vsel %vm1383_vm3, %v5210_v25, %v5214_v48  ;;  %v9838_v53 = vshrl.u32 %v5604_v54, 7 }
 0x198   : > { %7253 = vmatmul.mubr.msk.bf16.gmra.mrb[44].mxu1 %vm355_vm1, %v2325_v61  ;;  %v8157_v61 = vld [vmem:[%s8345_s9 + $0xcc] sm:$0xff]   ;;  %v9841_v48 = vadd.s32 16, %v9838_v53  ;;  %vm5608_vm4 = vcmp.ge.s32.totalorder %v9838_v53, 1 }
 0x199   : > { %7282 = vmatprep.mubr.msk.bf16.mxu1 %vm355_vm1, %v6496_v42  ;;  %v5228_v45 = vshll.u32 %v8157_v61, 16  ;;  %v6503_v42 = vcombine.low %v9629_v41, %v9648_v63  ;;  %v5223_v41 = vsel %vm1383_vm3, %v5218_v4, %v5222_v3  ;;  %v5232_v63 = vshrl.u32 %v8157_v61, 16 }
 0x19a   : > { %vm5613_vm7 = vcmp.le.s32.totalorder %v9841_v48, 16 }
 0x19b   : > { %7479 = vmatmul.mubr.msk.bf16.gmra.mrb[20].mxu0 %vm355_vm1, %v5159_v30  ;;  %v5230_v5 = vrot.slane %v5228_v45, 1  ;;  %v8161_v30 = vld [vmem:[%s8345_s9 + $0xdc] sm:$0xff]  }
 0x19c   : > { %7482 = vmatprep.mubr.msk.bf16.mxu0 %vm355_vm1, %v5167_v19  ;;  %v5244_v57 = vshll.u32 %v8161_v30, 16  ;;  %v5248_v8 = vshrl.u32 %v8161_v30, 16 }
 0x19d   : > { %v5231_v19 = vsel %vm1383_vm3, %v5226_v2, %v5230_v5  ;;  %v5234_v47 = vor.u32 %v5232_v63, %v5230_v5 }
 0x19e   : > { %v5246_v39 = vrot.slane %v5244_v57, 1 }
 0x19f   : > { %v5239_v29 = vsel %vm1383_vm3, %v5234_v47, %v5238_v52 }
 0x1a0   : > { %7283 = vmatmul.mubr.msk.bf16.vlgmr.msra.gmra.mrb[24].mxu1 %vm355_vm1, %v6497_v9  ;;  %v6506_v9 = vcombine.low %v9677_v33, %v9681_v60  ;;  %v5247_v56 = vsel %vm1383_vm3, %v5242_v17, %v5246_v39  ;;  %v5250_v33 = vor.u32 %v5248_v8, %v5246_v39 }
 0x1a1   : > { %7286 = vmatprep.mubr.msk.bf16.mxu1 %vm355_vm1, %v6498_v1  ;;  %v8163_v1 = vld [vmem:[%s8345_s9 + $0xe4] ss:$0 sps:$4 sm:$0x11]   ;;  %s6780_s9 = sshll.u32 %s8287_s16, 5  ;;  %s8245_s16 = smov [#allocation2]  }
 0x1a2   : > { %v5252_v6 = vshll.u32 %v8163_v1, 16  ;;  %s10185_s20 = scalar_lea.hbm %s10230_s3, %s6780_s9  ;;  %s8185_s26 = sshll.u32 %s8245_s16, 4  ;;  %s8186_s26 = int_to_ptr.vmem [resolvable:$false] %s8185_s26 }
 0x1a3   : > { %7483 = vmatmul.mubr.msk.bf16.gmra.mrb[24].mxu0 %vm355_vm1, %v5175_v28  ;;  %s8187_s27 = scalar_lea.vmem %s8186_s26, 64  ;;  %p8188_p0 = scmp.lt.s32.totalorder %s10187_s11, %s8186_s26 }
 0x1a4   : > { %7486 = vmatprep.mubr.msk.bf16.mxu0 %vm355_vm1, %v5183_v27  ;;  %v5254_v60 = vrot.slane %v5252_v6, 1  ;;  %p8189_p1 = scmp.lt.s32.totalorder %s8187_s27, %s8181_s25 }
 0x1a6   : > { %v5255_v62 = vsel %vm1383_vm3, %v5250_v33, %v5254_v60  ;;  %p8190_p2 = por %p8189_p1, %p8188_p0 }
 0x1a8   : > { %7287 = vmatmul.mubr.msk.bf16.gmra.mrb[28].mxu1 %vm355_vm1, %v6499_v35  ;;  %p8191_p3 = pnand %p8190_p2, %p8184_p13 }
 0x1a9   : > { %7290 = vmatprep.mubr.msk.bf16.mxu1 %vm355_vm1, %v6500_v18 }
 0x1ab   : > { %7487 = vmatmul.mubr.msk.bf16.gmra.mrb[28].mxu0 %vm355_vm1, %v5191_v46 }
 0x1ac   : > { %7490 = vmatprep.mubr.msk.bf16.mxu0 %vm355_vm1, %v5199_v0 }
 0x1b0   : > { %7291 = vmatmul.mubr.msk.bf16.gmra.mrb[32].mxu1 %vm355_vm1, %v6501_v32 }
 0x1b1   : > { %7294 = vmatprep.mubr.msk.bf16.mxu1 %vm355_vm1, %v6502_v44 }
 0x1b3   : > { %7491 = vmatmul.mubr.msk.bf16.gmra.mrb[32].mxu0 %vm355_vm1, %v5207_v23 }
 0x1b4   : > { %7494 = vmatprep.mubr.msk.bf16.mxu0 %vm355_vm1, %v5215_v21 }
 0x1b8   : > { %7295 = vmatmul.mubr.msk.bf16.gmra.mrb[36].mxu1 %vm355_vm1, %v6503_v42 }
 0x1b9   : > { %7298 = vmatprep.mubr.msk.bf16.mxu1 %vm355_vm1, %v6504_v51 }
 0x1bb   : > { %7495 = vmatmul.mubr.msk.bf16.gmra.mrb[36].mxu0 %vm355_vm1, %v5223_v41 }
 0x1bc   : > { %7498 = vmatprep.mubr.msk.bf16.mxu0 %vm355_vm1, %v5231_v19 }
 0x1c0   : > { %7299 = vmatmul.mubr.msk.bf16.gmra.mrb[40].mxu1 %vm355_vm1, %v6505_v13 }
 0x1c1   : > { %7302 = vmatprep.mubr.msk.bf16.mxu1 %vm355_vm1, %v6506_v9 }
 0x1c3   : > { %7499 = vmatmul.mubr.msk.bf16.gmra.mrb[40].mxu0 %vm355_vm1, %v5239_v29 }
 0x1c4   : > { %7502 = vmatprep.mubr.msk.bf16.mxu0 %vm355_vm1, %v5247_v56 }
 0x1c8   : > { %7303 = vmatmul.mubr.msk.bf16.gmra.mrb[44].mxu1 %vm355_vm1, %v6507_v24 }
 0x1cb   : > { %7503 = vmatmul.mubr.msk.bf16.gmra.mrb[44].mxu0 %vm355_vm1, %v5255_v62 }
 0x213   : > { %v7210_v28 = vpop.f32.mrb[0].mxu1 }
 0x214   : > { %v2435_v10 = vpop.f32.mrb[1].mxu1 }
 0x215   : > { %v7211_v27 = vpop.f32.mrb[2].mxu1 }
 0x216   : > { %v2438_v50 = vpop.f32.mrb[3].mxu1 }
 0x21b   : > { %v7214_v11 = vpop.f32.mrb[4].mxu1 }
 0x21c   : > { %v2451_v35 = vpop.f32.mrb[5].mxu1 }
 0x21d   : > { %v9802_v26 = vpop.f32.mrb[6].mxu1 }
 0x21e   : > { %v9804_v38 = vpop.f32.mrb[7].mxu1 }
 0x223   : > { %v9806_v14 = vpop.f32.mrb[8].mxu1 }
 0x224   : > { %v9808_v18 = vpop.f32.mrb[9].mxu1 }
 0x225   : > { %v9810_v40 = vpop.f32.mrb[10].mxu1 }
 0x226   : > { %v9812_v49 = vpop.f32.mrb[11].mxu1 }
 0x22b   : > { %v9814_v58 = vpop.f32.mrb[12].mxu1 }
 0x22c   : > { %v9816_v55 = vpop.f32.mrb[13].mxu1 }
 0x22d   : > { %v9818_v15 = vpop.f32.mrb[14].mxu1 }
 0x22e   : > { %v9820_v22 = vpop.f32.mrb[15].mxu1 }
 0x233   : > { %v9822_v46 = vpop.f32.mrb[16].mxu1 }
 0x234   : > { %v9824_v36 = vpop.f32.mrb[17].mxu1 }
 0x235   : > { %v9826_v0 = vpop.f32.mrb[18].mxu1 }
 0x236   : > { %v9828_v43 = vpop.f32.mrb[19].mxu1 }
 0x23b   : > { %v9830_v16 = vpop.f32.mrb[20].mxu1 }
 0x23c   : > { %v9832_v32 = vpop.f32.mrb[21].mxu1 }
 0x23d   : > { %v9834_v12 = vpop.f32.mrb[22].mxu1 }
 0x23e   : > { %v9836_v44 = vpop.f32.mrb[23].mxu1 }
 0x246   : > { %v7460_v25 = vpop.f32.mrb[0].mxu0 }
 0x247   : > { %v7508_v61 = vadd.f32 %v7460_v25, %v7210_v28  ;;  %v5365_v31 = vpop.f32.mrb[1].mxu0 }
 0x248   : > { %v7509_v23 = vadd.f32 %v5365_v31, %v2435_v10  ;;  %v7461_v37 = vpop.f32.mrb[2].mxu0 }
 0x249   : > { %v6785_v21 = vpack.c.bf16 %v7508_v61, %v7508_v61  ;;  %v7510_v7 = vadd.f32 %v7461_v37, %v7211_v27  ;;  %v5368_v45 = vpop.f32.mrb[3].mxu0  ;;  %v5625_v41 = vsel %vm5613_vm7, %v7508_v61, 0.0 }
 0x24a   : > { %v5623_v42 = vsel %vm5608_vm4, %v7509_v23, 0.0  ;;  %v6783_v3 = vpack.c.bf16 %v7509_v23, %v7509_v23  ;;  %v7511_v59 = vadd.f32 %v5368_v45, %v2438_v50  ;;  %v5778_v17 = vmul.f32 %v5625_v41, %v5625_v41 }
 0x24b   : > { %6126 = vst.msk [vmem:[%s9849_s8 + $0x20] sm:$0xf] %vm6123_vm6, %v6785_v21  ;;  %v5672_v51 = vsel %vm5671_vm5, %v5623_v42, 0.0  ;;  %v5776_v34 = vmul.f32 %v5623_v42, %v5623_v42  ;;  %v5626_v4 = vsel %vm5608_vm4, %v7510_v7, 0.0  ;;  %v6786_v2 = vpack.c.bf16 %v7510_v7, %v7510_v7 }
 0x24c   : > { %6124 = vst.msk [vmem:[%s9849_s8 + $0x18] sm:$0xf] %vm6123_vm6, %v6783_v3  ;;  %v5673_v5 = vsel %vm5671_vm5, %v5626_v4, 0.0  ;;  %v5779_v30 = vmul.f32 %v5626_v4, %v5626_v4  ;;  %v5777_v57 = vmul.f32 %v7511_v59, %v7511_v59  ;;  %v6784_v13 = vpack.c.bf16 %v7511_v59, %v7511_v59 }
 0x24d   : > { %v5824_v63 = vsel %vm5671_vm5, %v5776_v34, 0.0  ;;  %v5674_v19 = vadd.f32 %v5673_v5, %v5672_v51  ;;  %6127 = vst.msk [vmem:[%s9849_s8 + $0x24] sm:$0xf] %vm6123_vm6, %v6786_v2  ;;  %v5703_v39 = vsel %vm5671_vm5, %v7511_v59, 0.0  ;;  %v5734_v45 = vsel %vm5671_vm5, %v5625_v41, 0.0 }
 0x24e   : > { %v5825_v20 = vsel %vm5671_vm5, %v5779_v30, 0.0  ;;  %v7464_v52 = vpop.f32.mrb[4].mxu0  ;;  %6125 = vst.msk [vmem:[%s9849_s8 + $0x1c] sm:$0xf] %vm6123_vm6, %v6784_v13  ;;  %v5855_v6 = vsel %vm5671_vm5, %v5777_v57, 0.0  ;;  %v5886_v30 = vsel %vm5671_vm5, %v5778_v17, 0.0 }
 0x24f   : > { %v5826_v9 = vadd.f32 %v5825_v20, %v5824_v63  ;;  %v7512_v47 = vadd.f32 %v7464_v52, %v7214_v11  ;;  %v5381_v1 = vpop.f32.mrb[5].mxu0 }
 0x250   : > { %v7513_v29 = vadd.f32 %v5381_v1, %v2451_v35  ;;  %v7465_v8 = vpop.f32.mrb[6].mxu0 }
 0x251   : > { %v5629_v56 = vsel %vm5608_vm4, %v7512_v47, 0.0  ;;  %v6789_v24 = vpack.c.bf16 %v7512_v47, %v7512_v47  ;;  %v7514_v33 = vadd.f32 %v7465_v8, %v9802_v26  ;;  %v5384_v60 = vpop.f32.mrb[7].mxu0 }
 0x252   : > { %v5675_v62 = vsel %vm5671_vm5, %v5629_v56, 0.0  ;;  %v5782_v28 = vmul.f32 %v5629_v56, %v5629_v56  ;;  %v5704_v10 = vsel %vm5671_vm5, %v7513_v29, 0.0  ;;  %v5780_v27 = vmul.f32 %v7513_v29, %v7513_v29 }
 0x253   : > { %v5676_v50 = vadd.f32 %v5675_v62, %v5674_v19  ;;  %6130 = vst.msk [vmem:[%s9849_s8 + $0x30] sm:$0xf] %vm6123_vm6, %v6789_v24  ;;  %v5705_v11 = vadd.f32 %v5704_v10, %v5703_v39  ;;  %v6787_v35 = vpack.c.bf16 %v7513_v29, %v7513_v29  ;;  %v5706_v54 = vsel %vm5671_vm5, %v7514_v33, 0.0 }
 0x254   : > { %v5827_v25 = vsel %vm5671_vm5, %v5782_v28, 0.0  ;;  %v5856_v26 = vsel %vm5671_vm5, %v5780_v27, 0.0  ;;  %v5783_v61 = vmul.f32 %v7514_v33, %v7514_v33  ;;  %v6790_v31 = vpack.c.bf16 %v7514_v33, %v7514_v33 }
 0x255   : > { %v5828_v23 = vadd.f32 %v5827_v25, %v5826_v9  ;;  %v5857_v37 = vadd.f32 %v5856_v26, %v5855_v6  ;;  %6128 = vst.msk [vmem:[%s9849_s8 + $0x28] sm:$0xf] %vm6123_vm6, %v6787_v35  ;;  %v5707_v21 = vadd.f32 %v5706_v54, %v5705_v11  ;;  %v7515_v7 = vadd.f32 %v5384_v60, %v9804_v38 }
 0x256   : > { %v5858_v42 = vsel %vm5671_vm5, %v5783_v61, 0.0  ;;  %6131 = vst.msk [vmem:[%s9849_s8 + $0x34] sm:$0xf] %vm6123_vm6, %v6790_v31  ;;  %v7468_v3 = vpop.f32.mrb[8].mxu0 }
 0x257   : > { %v5859_v51 = vadd.f32 %v5858_v42, %v5857_v37  ;;  %v5628_v34 = vsel %vm5613_vm7, %v7515_v7, 0.0  ;;  %v6788_v4 = vpack.c.bf16 %v7515_v7, %v7515_v7  ;;  %v7516_v2 = vadd.f32 %v7468_v3, %v9806_v14  ;;  %v5397_v5 = vpop.f32.mrb[9].mxu0 }
 0x258   : > { %v5735_v38 = vsel %vm5671_vm5, %v5628_v34, 0.0  ;;  %v5781_v59 = vmul.f32 %v5628_v34, %v5628_v34  ;;  %v7517_v41 = vadd.f32 %v5397_v5, %v9808_v18  ;;  %v7469_v63 = vpop.f32.mrb[10].mxu0 }
 0x259   : > { %v5736_v19 = vadd.f32 %v5735_v38, %v5734_v45  ;;  %6129 = vst.msk [vmem:[%s9849_s8 + $0x2c] sm:$0xf] %vm6123_vm6, %v6788_v4  ;;  %v5708_v20 = vsel %vm5671_vm5, %v7516_v2, 0.0  ;;  %v5786_v57 = vmul.f32 %v7516_v2, %v7516_v2  ;;  %v6793_v13 = vpack.c.bf16 %v7516_v2, %v7516_v2  ;;  %v5400_v52 = vpop.f32.mrb[11].mxu0 }
 0x25a   : > { %v5887_v14 = vsel %vm5671_vm5, %v5781_v59, 0.0  ;;  %v9899_v9 = vadd.f32 %v5708_v20, %v5707_v21  ;;  %v5631_v47 = vsel %vm5613_vm7, %v7517_v41, 0.0  ;;  %v6791_v1 = vpack.c.bf16 %v7517_v41, %v7517_v41 }
 0x25b   : > { %v5888_v17 = vadd.f32 %v5887_v14, %v5886_v30  ;;  %v5860_v18 = vsel %vm5671_vm5, %v5786_v57, 0.0  ;;  %6134 = vst.msk [vmem:[%s9849_s8 + $0x40] sm:$0xf] %vm6123_vm6, %v6793_v13  ;;  %v5737_v39 = vsel %vm5671_vm5, %v5631_v47, 0.0  ;;  %v5784_v29 = vmul.f32 %v5631_v47, %v5631_v47 }
 0x25c   : > { %v9907_v8 = vadd.f32 %v5860_v18, %v5859_v51  ;;  %v5738_v6 = vadd.f32 %v5737_v39, %v5736_v19  ;;  %6132 = vst.msk [vmem:[%s9849_s8 + $0x38] sm:$0xf] %vm6123_vm6, %v6791_v1  ;;  %v7518_v56 = vadd.f32 %v7469_v63, %v9810_v40  ;;  %v7519_v24 = vadd.f32 %v5400_v52, %v9812_v49 }
 0x25d   : > { %v5889_v33 = vsel %vm5671_vm5, %v5784_v29, 0.0 }
 0x25e   : > { %v5890_v60 = vadd.f32 %v5889_v33, %v5888_v17  ;;  %v5634_v62 = vsel %vm5613_vm7, %v7518_v56, 0.0  ;;  %v6794_v28 = vpack.c.bf16 %v7518_v56, %v7518_v56  ;;  %v5632_v10 = vsel %vm5608_vm4, %v7519_v24, 0.0  ;;  %v7472_v27 = vpop.f32.mrb[12].mxu0 }
 0x25f   : > { %v5739_v11 = vsel %vm5671_vm5, %v5634_v62, 0.0  ;;  %v5787_v35 = vmul.f32 %v5634_v62, %v5634_v62  ;;  %v5677_v54 = vsel %vm5671_vm5, %v5632_v10, 0.0  ;;  %v5785_v40 = vmul.f32 %v5632_v10, %v5632_v10  ;;  %v5413_v25 = vpop.f32.mrb[13].mxu0 }
 0x260   : > { %v5740_v49 = vadd.f32 %v5739_v11, %v5738_v6  ;;  %6135 = vst.msk [vmem:[%s9849_s8 + $0x44] sm:$0xf] %vm6123_vm6, %v6794_v28  ;;  %v5678_v26 = vadd.f32 %v5677_v54, %v5676_v50  ;;  %v6792_v61 = vpack.c.bf16 %v7519_v24, %v7519_v24  ;;  %v7520_v31 = vadd.f32 %v7472_v27, %v9814_v58  ;;  %v7473_v37 = vpop.f32.mrb[14].mxu0 }
 0x261   : > { %v5891_v21 = vsel %vm5671_vm5, %v5787_v35, 0.0  ;;  %v5829_v7 = vsel %vm5671_vm5, %v5785_v40, 0.0  ;;  %v7521_v45 = vadd.f32 %v5413_v25, %v9816_v55  ;;  %v7522_v42 = vadd.f32 %v7473_v37, %v9818_v15  ;;  %v5416_v3 = vpop.f32.mrb[15].mxu0 }
 0x262   : > { %v5892_v51 = vadd.f32 %v5891_v21, %v5890_v60  ;;  %v5830_v34 = vadd.f32 %v5829_v7, %v5828_v23  ;;  %6133 = vst.msk [vmem:[%s9849_s8 + $0x3c] sm:$0xf] %vm6123_vm6, %v6792_v61  ;;  %v5637_v50 = vsel %vm5613_vm7, %v7520_v31, 0.0  ;;  %v6797_v58 = vpack.c.bf16 %v7520_v31, %v7520_v31 }
 0x263   : > { %v5741_v4 = vsel %vm5671_vm5, %v5637_v50, 0.0  ;;  %v5790_v2 = vmul.f32 %v5637_v50, %v5637_v50  ;;  %v5635_v5 = vsel %vm5608_vm4, %v7521_v45, 0.0  ;;  %v6795_v30 = vpack.c.bf16 %v7521_v45, %v7521_v45 }
 0x264   : > { %v9934_v55 = vadd.f32 %v5741_v4, %v5740_v49  ;;  %6138 = vst.msk [vmem:[%s9849_s8 + $0x50] sm:$0xf] %vm6123_vm6, %v6797_v58  ;;  %v5679_v15 = vsel %vm5671_vm5, %v5635_v5, 0.0  ;;  %v5788_v23 = vmul.f32 %v5635_v5, %v5635_v5  ;;  %v5638_v38 = vsel %vm5608_vm4, %v7522_v42, 0.0 }
 0x265   : > { %v5893_v59 = vsel %vm5671_vm5, %v5790_v2, 0.0  ;;  %v5680_v41 = vadd.f32 %v5679_v15, %v5678_v26  ;;  %6136 = vst.msk [vmem:[%s9849_s8 + $0x48] sm:$0xf] %vm6123_vm6, %v6795_v30  ;;  %v5681_v63 = vsel %vm5671_vm5, %v5638_v38, 0.0  ;;  %v5791_v19 = vmul.f32 %v5638_v38, %v5638_v38 }
 0x266   : > { %v9945_v20 = vadd.f32 %v5893_v59, %v5892_v51  ;;  %v5831_v57 = vsel %vm5671_vm5, %v5788_v23, 0.0  ;;  %v6798_v13 = vpack.c.bf16 %v7522_v42, %v7522_v42  ;;  %v7523_v52 = vadd.f32 %v5416_v3, %v9820_v22  ;;  %v7476_v14 = vpop.f32.mrb[16].mxu0 }
 0x267   : > { %v5832_v47 = vadd.f32 %v5831_v57, %v5830_v34  ;;  %v5682_v1 = vadd.f32 %v5681_v63, %v5680_v41  ;;  %v5833_v17 = vsel %vm5671_vm5, %v5791_v19, 0.0  ;;  %v7524_v18 = vadd.f32 %v7476_v14, %v9822_v46  ;;  %v5429_v39 = vpop.f32.mrb[17].mxu0 }
 0x268   : > { %6139 = vst.msk [vmem:[%s9849_s8 + $0x54] sm:$0xf] %vm6123_vm6, %v6798_v13  ;;  %v5710_v29 = vsel %vm5671_vm5, %v7523_v52, 0.0  ;;  %v5789_v6 = vmul.f32 %v7523_v52, %v7523_v52  ;;  %v6796_v56 = vpack.c.bf16 %v7523_v52, %v7523_v52  ;;  %v7525_v24 = vadd.f32 %v5429_v39, %v9824_v36  ;;  %v7477_v33 = vpop.f32.mrb[18].mxu0 }
 0x269   : > { %v5834_v22 = vadd.f32 %v5833_v17, %v5832_v47  ;;  %v5711_v60 = vadd.f32 %v5710_v29, %v9899_v9  ;;  %v5641_v62 = vsel %vm5608_vm4, %v7524_v18, 0.0  ;;  %v6801_v28 = vpack.c.bf16 %v7524_v18, %v7524_v18  ;;  %v5432_v10 = vpop.f32.mrb[19].mxu0 }
 0x26a   : > { %v5862_v46 = vsel %vm5671_vm5, %v5789_v6, 0.0  ;;  %6137 = vst.msk [vmem:[%s9849_s8 + $0x4c] sm:$0xf] %vm6123_vm6, %v6796_v56  ;;  %v5683_v27 = vsel %vm5671_vm5, %v5641_v62, 0.0  ;;  %v5794_v11 = vmul.f32 %v5641_v62, %v5641_v62  ;;  %v5712_v35 = vsel %vm5671_vm5, %v7525_v24, 0.0 }
 0x26b   : > { %v5863_v36 = vadd.f32 %v5862_v46, %v9907_v8  ;;  %v9964_v54 = vadd.f32 %v5683_v27, %v5682_v1  ;;  %6142 = vst.msk [vmem:[%s9849_s8 + $0x60] sm:$0xf] %vm6123_vm6, %v6801_v28  ;;  %v5713_v9 = vadd.f32 %v5712_v35, %v5711_v60  ;;  %v5792_v40 = vmul.f32 %v7525_v24, %v7525_v24 }
 0x26c   : > { %v5835_v25 = vsel %vm5671_vm5, %v5794_v11, 0.0  ;;  %v6799_v49 = vpack.c.bf16 %v7525_v24, %v7525_v24  ;;  %v7526_v26 = vadd.f32 %v7477_v33, %v9826_v0  ;;  %v7527_v61 = vadd.f32 %v5432_v10, %v9828_v43 }
 0x26d   : > { %v9971_v31 = vadd.f32 %v5835_v25, %v5834_v22  ;;  %v5864_v37 = vsel %vm5671_vm5, %v5792_v40, 0.0 }
 0x26e   : > { %v5865_v21 = vadd.f32 %v5864_v37, %v5863_v36  ;;  %6140 = vst.msk [vmem:[%s9849_s8 + $0x58] sm:$0xf] %vm6123_vm6, %v6799_v49  ;;  %v5714_v8 = vsel %vm5671_vm5, %v7526_v26, 0.0  ;;  %v5795_v7 = vmul.f32 %v7526_v26, %v7526_v26  ;;  %v6802_v45 = vpack.c.bf16 %v7526_v26, %v7526_v26  ;;  %v7480_v42 = vpop.f32.mrb[20].mxu0 }
 0x26f   : > { %v5715_v3 = vadd.f32 %v5714_v8, %v5713_v9  ;;  %v5640_v0 = vsel %vm5613_vm7, %v7527_v61, 0.0  ;;  %v6800_v51 = vpack.c.bf16 %v7527_v61, %v7527_v61  ;;  %v7528_v43 = vadd.f32 %v7480_v42, %v9830_v16  ;;  %v5445_v34 = vpop.f32.mrb[21].mxu0 }
 0x270   : > { %v5866_v50 = vsel %vm5671_vm5, %v5795_v7, 0.0  ;;  %6143 = vst.msk [vmem:[%s9849_s8 + $0x64] sm:$0xf] %vm6123_vm6, %v6802_v45  ;;  %v5743_v58 = vsel %vm5671_vm5, %v5640_v0, 0.0  ;;  %v5793_v4 = vmul.f32 %v5640_v0, %v5640_v0  ;;  %v7529_v2 = vadd.f32 %v5445_v34, %v9832_v32  ;;  %v7481_v5 = vpop.f32.mrb[22].mxu0 }
 0x271   : > { %v5867_v30 = vadd.f32 %v5866_v50, %v5865_v21  ;;  %v5744_v15 = vadd.f32 %v5743_v58, %v9934_v55  ;;  %6141 = vst.msk [vmem:[%s9849_s8 + $0x5c] sm:$0xf] %vm6123_vm6, %v6800_v51  ;;  %v5716_v23 = vsel %vm5671_vm5, %v7528_v43, 0.0  ;;  %v5798_v16 = vmul.f32 %v7528_v43, %v7528_v43  ;;  %v5448_v38 = vpop.f32.mrb[23].mxu0 }
 0x272   : > { %v5895_v41 = vsel %vm5671_vm5, %v5793_v4, 0.0  ;;  %v9990_v63 = vadd.f32 %v5716_v23, %v5715_v3  ;;  %v6805_v19 = vpack.c.bf16 %v7528_v43, %v7528_v43  ;;  %v5643_v32 = vsel %vm5613_vm7, %v7529_v2, 0.0 }
 0x273   : > { %v7284_v59 = vpop.f32.mrb[24].mxu1  ;;  %v5896_v55 = vadd.f32 %v5895_v41, %v9945_v20  ;;  %v5868_v13 = vsel %vm5671_vm5, %v5798_v16, 0.0  ;;  %v5745_v52 = vsel %vm5671_vm5, %v5643_v32, 0.0  ;;  %v5796_v14 = vmul.f32 %v5643_v32, %v5643_v32 }
 0x274   : > { %v2905_v57 = vpop.f32.mrb[25].mxu1  ;;  %v9997_v1 = vadd.f32 %v5868_v13, %v5867_v30  ;;  %6146 = vst.msk [vmem:[%s9849_s8 + $0x70] sm:$0xf] %vm6123_vm6, %v6805_v19  ;;  %v5746_v17 = vadd.f32 %v5745_v52, %v5744_v15  ;;  %v6803_v18 = vpack.c.bf16 %v7529_v2, %v7529_v2  ;;  %v7530_v39 = vadd.f32 %v7481_v5, %v9834_v12 }
 0x275   : > { %v7285_v47 = vpop.f32.mrb[26].mxu1  ;;  %v5897_v6 = vsel %vm5671_vm5, %v5796_v14, 0.0  ;;  %v7531_v20 = vadd.f32 %v5448_v38, %v9836_v44 }
 0x276   : > { %v2908_v29 = vpop.f32.mrb[27].mxu1  ;;  %v5898_v56 = vadd.f32 %v5897_v6, %v5896_v55  ;;  %6144 = vst.msk [vmem:[%s9849_s8 + $0x68] sm:$0xf] %vm6123_vm6, %v6803_v18  ;;  %v5646_v24 = vsel %vm5613_vm7, %v7530_v39, 0.0  ;;  %v6806_v33 = vpack.c.bf16 %v7530_v39, %v7530_v39  ;;  %v7484_v22 = vpop.f32.mrb[24].mxu0 }
 0x277   : > { %v5747_v60 = vsel %vm5671_vm5, %v5646_v24, 0.0  ;;  %v5799_v62 = vmul.f32 %v5646_v24, %v5646_v24  ;;  %v5644_v12 = vsel %vm5608_vm4, %v7531_v20, 0.0  ;;  %v6804_v28 = vpack.c.bf16 %v7531_v20, %v7531_v20  ;;  %v5461_v10 = vpop.f32.mrb[25].mxu0 }
 0x278   : > { %v5748_v46 = vadd.f32 %v5747_v60, %v5746_v17  ;;  %6147 = vst.msk [vmem:[%s9849_s8 + $0x74] sm:$0xf] %vm6123_vm6, %v6806_v33  ;;  %v5685_v44 = vsel %vm5671_vm5, %v5644_v12, 0.0  ;;  %v5797_v27 = vmul.f32 %v5644_v12, %v5644_v12  ;;  %v7532_v11 = vadd.f32 %v7484_v22, %v7284_v59  ;;  %v7485_v35 = vpop.f32.mrb[26].mxu0 }
 0x279   : > { %v5899_v36 = vsel %vm5671_vm5, %v5799_v62, 0.0  ;;  %v5686_v9 = vadd.f32 %v5685_v44, %v9964_v54  ;;  %6145 = vst.msk [vmem:[%s9849_s8 + $0x6c] sm:$0xf] %vm6123_vm6, %v6804_v28  ;;  %v7533_v40 = vadd.f32 %v5461_v10, %v2905_v57  ;;  %v7534_v25 = vadd.f32 %v7485_v35, %v7285_v47  ;;  %v5464_v49 = vpop.f32.mrb[27].mxu0 }
 0x27a   : > { %v5900_v61 = vadd.f32 %v5899_v36, %v5898_v56  ;;  %v5837_v37 = vsel %vm5671_vm5, %v5797_v27, 0.0  ;;  %v5649_v21 = vsel %vm5613_vm7, %v7532_v11, 0.0  ;;  %v6809_v8 = vpack.c.bf16 %v7532_v11, %v7532_v11 }
 0x27b   : > { %v7288_v26 = vpop.f32.mrb[28].mxu1  ;;  %v5838_v45 = vadd.f32 %v5837_v37, %v9971_v31  ;;  %v5749_v42 = vsel %vm5671_vm5, %v5649_v21, 0.0  ;;  %v5802_v54 = vmul.f32 %v5649_v21, %v5649_v21  ;;  %v5647_v3 = vsel %vm5608_vm4, %v7533_v40, 0.0 }
 0x27c   : > { %v2921_v7 = vpop.f32.mrb[29].mxu1  ;;  %v10025_v51 = vadd.f32 %v5749_v42, %v5748_v46  ;;  %6150 = vst.msk [vmem:[%s9849_s8 + $0x80] sm:$0xf] %vm6123_vm6, %v6809_v8  ;;  %v5687_v43 = vsel %vm5671_vm5, %v5647_v3, 0.0  ;;  %v5800_v34 = vmul.f32 %v5647_v3, %v5647_v3  ;;  %v6807_v50 = vpack.c.bf16 %v7533_v40, %v7533_v40 }
 0x27d   : > { %v7289_v0 = vpop.f32.mrb[30].mxu1  ;;  %v5901_v31 = vsel %vm5671_vm5, %v5802_v54, 0.0  ;;  %v5688_v4 = vadd.f32 %v5687_v43, %v5686_v9  ;;  %v5650_v2 = vsel %vm5608_vm4, %v7534_v25, 0.0  ;;  %v6810_v5 = vpack.c.bf16 %v7534_v25, %v7534_v25 }
 0x27e   : > { %v2924_v58 = vpop.f32.mrb[31].mxu1  ;;  %v10033_v30 = vadd.f32 %v5901_v31, %v5900_v61  ;;  %v5839_v15 = vsel %vm5671_vm5, %v5800_v34, 0.0  ;;  %6148 = vst.msk [vmem:[%s9849_s8 + $0x78] sm:$0xf] %vm6123_vm6, %v6807_v50  ;;  %v5689_v23 = vsel %vm5671_vm5, %v5650_v2, 0.0  ;;  %v5803_v16 = vmul.f32 %v5650_v2, %v5650_v2  ;;  %v7488_v38 = vpop.f32.mrb[28].mxu0 }
 0x27f   : > { %v5840_v59 = vadd.f32 %v5839_v15, %v5838_v45  ;;  %v5690_v41 = vadd.f32 %v5689_v23, %v5688_v4  ;;  %6151 = vst.msk [vmem:[%s9849_s8 + $0x84] sm:$0xf] %vm6123_vm6, %v6810_v5  ;;  %v7535_v19 = vadd.f32 %v5464_v49, %v2908_v29  ;;  %v7536_v32 = vadd.f32 %v7488_v38, %v7288_v26  ;;  %v5477_v57 = vpop.f32.mrb[29].mxu0 }
 0x280   : > { %v5841_v55 = vsel %vm5671_vm5, %v5803_v16, 0.0  ;;  %v7537_v13 = vadd.f32 %v5477_v57, %v2921_v7  ;;  %v7489_v52 = vpop.f32.mrb[30].mxu0 }
 0x281   : > { %v5842_v14 = vadd.f32 %v5841_v55, %v5840_v59  ;;  %v5718_v47 = vsel %vm5671_vm5, %v7535_v19, 0.0  ;;  %v5801_v17 = vmul.f32 %v7535_v19, %v7535_v19  ;;  %v6808_v18 = vpack.c.bf16 %v7535_v19, %v7535_v19  ;;  %v5480_v39 = vpop.f32.mrb[31].mxu0 }
 0x282   : > { %v5719_v20 = vadd.f32 %v5718_v47, %v9990_v63  ;;  %v5653_v29 = vsel %vm5608_vm4, %v7536_v32, 0.0  ;;  %v6813_v56 = vpack.c.bf16 %v7536_v32, %v7536_v32  ;;  %v5720_v24 = vsel %vm5671_vm5, %v7537_v13, 0.0 }
 0x283   : > { %v7292_v6 = vpop.f32.mrb[32].mxu1  ;;  %v5870_v22 = vsel %vm5671_vm5, %v5801_v17, 0.0  ;;  %6149 = vst.msk [vmem:[%s9849_s8 + $0x7c] sm:$0xf] %vm6123_vm6, %v6808_v18  ;;  %v5691_v60 = vsel %vm5671_vm5, %v5653_v29, 0.0  ;;  %v5806_v62 = vmul.f32 %v5653_v29, %v5653_v29  ;;  %v5804_v12 = vmul.f32 %v7537_v13, %v7537_v13 }
 0x284   : > { %v2937_v33 = vpop.f32.mrb[33].mxu1  ;;  %v5871_v10 = vadd.f32 %v5870_v22, %v9997_v1  ;;  %v10052_v63 = vadd.f32 %v5691_v60, %v5690_v41  ;;  %6154 = vst.msk [vmem:[%s9849_s8 + $0x90] sm:$0xf] %vm6123_vm6, %v6813_v56  ;;  %v5721_v46 = vadd.f32 %v5720_v24, %v5719_v20  ;;  %v6811_v44 = vpack.c.bf16 %v7537_v13, %v7537_v13 }
 0x285   : > { %v7293_v28 = vpop.f32.mrb[34].mxu1  ;;  %v5843_v11 = vsel %vm5671_vm5, %v5806_v62, 0.0  ;;  %v5872_v35 = vsel %vm5671_vm5, %v5804_v12, 0.0  ;;  %v7538_v36 = vadd.f32 %v7489_v52, %v7289_v0  ;;  %v7539_v9 = vadd.f32 %v5480_v39, %v2924_v58 }
 0x286   : > { %v2940_v27 = vpop.f32.mrb[35].mxu1  ;;  %v10058_v40 = vadd.f32 %v5843_v11, %v5842_v14  ;;  %v5873_v25 = vadd.f32 %v5872_v35, %v5871_v10  ;;  %6152 = vst.msk [vmem:[%s9849_s8 + $0x88] sm:$0xf] %vm6123_vm6, %v6811_v44  ;;  %v7492_v1 = vpop.f32.mrb[32].mxu0 }
 0x287   : > { %v5722_v49 = vsel %vm5671_vm5, %v7538_v36, 0.0  ;;  %v5807_v26 = vmul.f32 %v7538_v36, %v7538_v36  ;;  %v6814_v61 = vpack.c.bf16 %v7538_v36, %v7538_v36  ;;  %v5652_v37 = vsel %vm5613_vm7, %v7539_v9, 0.0  ;;  %v5493_v21 = vpop.f32.mrb[33].mxu0 }
 0x288   : > { %v5723_v8 = vadd.f32 %v5722_v49, %v5721_v46  ;;  %v5751_v7 = vsel %vm5671_vm5, %v5652_v37, 0.0  ;;  %v5805_v45 = vmul.f32 %v5652_v37, %v5652_v37  ;;  %v6812_v42 = vpack.c.bf16 %v7539_v9, %v7539_v9  ;;  %v7493_v54 = vpop.f32.mrb[34].mxu0 }
 0x289   : > { %v5874_v3 = vsel %vm5671_vm5, %v5807_v26, 0.0  ;;  %6155 = vst.msk [vmem:[%s9849_s8 + $0x94] sm:$0xf] %vm6123_vm6, %v6814_v61  ;;  %v5752_v0 = vadd.f32 %v5751_v7, %v10025_v51  ;;  %v7540_v43 = vadd.f32 %v7492_v1, %v7292_v6  ;;  %v7541_v34 = vadd.f32 %v5493_v21, %v2937_v33  ;;  %v5496_v50 = vpop.f32.mrb[35].mxu0 }
 0x28a   : > { %v5875_v31 = vadd.f32 %v5874_v3, %v5873_v25  ;;  %v5903_v4 = vsel %vm5671_vm5, %v5805_v45, 0.0  ;;  %6153 = vst.msk [vmem:[%s9849_s8 + $0x8c] sm:$0xf] %vm6123_vm6, %v6812_v42  ;;  %v7542_v2 = vadd.f32 %v7493_v54, %v7293_v28  ;;  %v7543_v5 = vadd.f32 %v5496_v50, %v2940_v27 }
 0x28b   : > { %v7296_v58 = vpop.f32.mrb[36].mxu1  ;;  %v5904_v23 = vadd.f32 %v5903_v4, %v10033_v30  ;;  %v5724_v16 = vsel %vm5671_vm5, %v7540_v43, 0.0  ;;  %v5810_v38 = vmul.f32 %v7540_v43, %v7540_v43  ;;  %v6817_v51 = vpack.c.bf16 %v7540_v43, %v7540_v43 }
 0x28c   : > { %v2953_v15 = vpop.f32.mrb[37].mxu1  ;;  %v10075_v41 = vadd.f32 %v5724_v16, %v5723_v8  ;;  %v5655_v19 = vsel %vm5613_vm7, %v7541_v34, 0.0  ;;  %v6815_v32 = vpack.c.bf16 %v7541_v34, %v7541_v34  ;;  %v5658_v57 = vsel %vm5613_vm7, %v7542_v2, 0.0 }
 0x28d   : > { %v7297_v59 = vpop.f32.mrb[38].mxu1  ;;  %v5876_v13 = vsel %vm5671_vm5, %v5810_v38, 0.0  ;;  %6158 = vst.msk [vmem:[%s9849_s8 + $0xa0] sm:$0xf] %vm6123_vm6, %v6817_v51  ;;  %v5753_v30 = vsel %vm5671_vm5, %v5655_v19, 0.0  ;;  %v5808_v52 = vmul.f32 %v5655_v19, %v5655_v19  ;;  %v5755_v14 = vsel %vm5671_vm5, %v5658_v57, 0.0 }
 0x28e   : > { %v2956_v55 = vpop.f32.mrb[39].mxu1  ;;  %v10086_v47 = vadd.f32 %v5876_v13, %v5875_v31  ;;  %v5754_v17 = vadd.f32 %v5753_v30, %v5752_v0  ;;  %6156 = vst.msk [vmem:[%s9849_s8 + $0x98] sm:$0xf] %vm6123_vm6, %v6815_v32  ;;  %v5811_v18 = vmul.f32 %v5658_v57, %v5658_v57  ;;  %v6818_v39 = vpack.c.bf16 %v7542_v2, %v7542_v2  ;;  %v7496_v6 = vpop.f32.mrb[36].mxu0 }
 0x28f   : > { %v5905_v20 = vsel %vm5671_vm5, %v5808_v52, 0.0  ;;  %v5656_v29 = vsel %vm5608_vm4, %v7543_v5, 0.0  ;;  %v6816_v56 = vpack.c.bf16 %v7543_v5, %v7543_v5  ;;  %v7544_v24 = vadd.f32 %v7496_v6, %v7296_v58  ;;  %v5509_v33 = vpop.f32.mrb[37].mxu0 }
 0x290   : > { %v5906_v22 = vadd.f32 %v5905_v20, %v5904_v23  ;;  %v5756_v60 = vadd.f32 %v5755_v14, %v5754_v17  ;;  %v5907_v62 = vsel %vm5671_vm5, %v5811_v18, 0.0  ;;  %6159 = vst.msk [vmem:[%s9849_s8 + $0xa4] sm:$0xf] %vm6123_vm6, %v6818_v39  ;;  %v5693_v12 = vsel %vm5671_vm5, %v5656_v29, 0.0  ;;  %v7497_v28 = vpop.f32.mrb[38].mxu0 }
 0x291   : > { %v5694_v10 = vadd.f32 %v5693_v12, %v10052_v63  ;;  %v5809_v46 = vmul.f32 %v5656_v29, %v5656_v29  ;;  %6157 = vst.msk [vmem:[%s9849_s8 + $0x9c] sm:$0xf] %vm6123_vm6, %v6816_v56  ;;  %v5661_v44 = vsel %vm5613_vm7, %v7544_v24, 0.0  ;;  %v6821_v27 = vpack.c.bf16 %v7544_v24, %v7544_v24  ;;  %v5512_v11 = vpop.f32.mrb[39].mxu0 }
 0x292   : > { %v5908_v36 = vadd.f32 %v5907_v62, %v5906_v22  ;;  %v5757_v9 = vsel %vm5671_vm5, %v5661_v44, 0.0  ;;  %v5814_v25 = vmul.f32 %v5661_v44, %v5661_v44  ;;  %v7545_v1 = vadd.f32 %v5509_v33, %v2953_v15 }
 0x293   : > { %v7300_v35 = vpop.f32.mrb[40].mxu1  ;;  %v5845_v26 = vsel %vm5671_vm5, %v5809_v46, 0.0  ;;  %v10104_v61 = vadd.f32 %v5757_v9, %v5756_v60  ;;  %6162 = vst.msk [vmem:[%s9849_s8 + $0xb0] sm:$0xf] %vm6123_vm6, %v6821_v27  ;;  %v7546_v63 = vadd.f32 %v7497_v28, %v7297_v59  ;;  %v7547_v37 = vadd.f32 %v5512_v11, %v2956_v55 }
 0x294   : > { %v2969_v49 = vpop.f32.mrb[41].mxu1  ;;  %v5846_v8 = vadd.f32 %v5845_v26, %v10058_v40  ;;  %v5909_v7 = vsel %vm5671_vm5, %v5814_v25, 0.0  ;;  %v5659_v45 = vsel %vm5608_vm4, %v7545_v1, 0.0  ;;  %v6819_v42 = vpack.c.bf16 %v7545_v1, %v7545_v1 }
 0x295   : > { %v7301_v21 = vpop.f32.mrb[42].mxu1  ;;  %v10112_v3 = vadd.f32 %v5909_v7, %v5908_v36  ;;  %v5695_v0 = vsel %vm5671_vm5, %v5659_v45, 0.0  ;;  %v5812_v43 = vmul.f32 %v5659_v45, %v5659_v45  ;;  %v5662_v34 = vsel %vm5608_vm4, %v7546_v63, 0.0 }
 0x296   : > { %v2972_v54 = vpop.f32.mrb[43].mxu1  ;;  %v5696_v50 = vadd.f32 %v5695_v0, %v5694_v10  ;;  %6160 = vst.msk [vmem:[%s9849_s8 + $0xa8] sm:$0xf] %vm6123_vm6, %v6819_v42  ;;  %v5697_v40 = vsel %vm5671_vm5, %v5662_v34, 0.0  ;;  %v5815_v58 = vmul.f32 %v5662_v34, %v5662_v34  ;;  %v6822_v31 = vpack.c.bf16 %v7546_v63, %v7546_v63  ;;  %v7500_v4 = vpop.f32.mrb[40].mxu0 }
 0x297   : > { %v5847_v2 = vsel %vm5671_vm5, %v5812_v43, 0.0  ;;  %v5726_v5 = vsel %vm5671_vm5, %v7547_v37, 0.0  ;;  %v5813_v15 = vmul.f32 %v7547_v37, %v7547_v37  ;;  %v6820_v23 = vpack.c.bf16 %v7547_v37, %v7547_v37  ;;  %v5525_v16 = vpop.f32.mrb[41].mxu0 }
 0x298   : > { %v5848_v38 = vadd.f32 %v5847_v2, %v5846_v8  ;;  %v5698_v51 = vadd.f32 %v5697_v40, %v5696_v50  ;;  %v5849_v59 = vsel %vm5671_vm5, %v5815_v58, 0.0  ;;  %6163 = vst.msk [vmem:[%s9849_s8 + $0xb4] sm:$0xf] %vm6123_vm6, %v6822_v31  ;;  %v5727_v19 = vadd.f32 %v5726_v5, %v10075_v41  ;;  %v7501_v32 = vpop.f32.mrb[42].mxu0 }
 0x299   : > { %v5878_v57 = vsel %vm5671_vm5, %v5813_v15, 0.0  ;;  %6161 = vst.msk [vmem:[%s9849_s8 + $0xac] sm:$0xf] %vm6123_vm6, %v6820_v23  ;;  %v7548_v55 = vadd.f32 %v7500_v4, %v7300_v35  ;;  %v7549_v13 = vadd.f32 %v5525_v16, %v2969_v49  ;;  %v7550_v30 = vadd.f32 %v7501_v32, %v7301_v21  ;;  %v5528_v52 = vpop.f32.mrb[43].mxu0 }
 0x29a   : > { %v5850_v17 = vadd.f32 %v5849_v59, %v5848_v38  ;;  %v5879_v18 = vadd.f32 %v5878_v57, %v10086_v47  ;;  %v7551_v39 = vadd.f32 %v5528_v52, %v2972_v54 }
 0x29b   : > { %v7304_v14 = vpop.f32.mrb[44].mxu1  ;;  %v5665_v20 = vsel %vm5608_vm4, %v7548_v55, 0.0  ;;  %v6825_v41 = vpack.c.bf16 %v7548_v55, %v7548_v55  ;;  %v5728_v29 = vsel %vm5671_vm5, %v7549_v13, 0.0  ;;  %v5816_v56 = vmul.f32 %v7549_v13, %v7549_v13 }
 0x29c   : > { %v2985_v6 = vpop.f32.mrb[45].mxu1  ;;  %v5699_v33 = vsel %vm5671_vm5, %v5665_v20, 0.0  ;;  %v5818_v22 = vmul.f32 %v5665_v20, %v5665_v20  ;;  %v5729_v60 = vadd.f32 %v5728_v29, %v5727_v19  ;;  %v6823_v62 = vpack.c.bf16 %v7549_v13, %v7549_v13 }
 0x29d   : > { %v7305_v24 = vpop.f32.mrb[46].mxu1  ;;  %v5700_v28 = vadd.f32 %v5699_v33, %v5698_v51  ;;  %6166 = vst.msk [vmem:[%s9849_s8 + $0xc0] sm:$0xf] %vm6123_vm6, %v6825_v41  ;;  %v5880_v47 = vsel %vm5671_vm5, %v5816_v56, 0.0  ;;  %v5730_v10 = vsel %vm5671_vm5, %v7550_v30, 0.0  ;;  %v5819_v46 = vmul.f32 %v7550_v30, %v7550_v30 }
 0x29e   : > { %v2988_v12 = vpop.f32.mrb[47].mxu1  ;;  %v5851_v44 = vsel %vm5671_vm5, %v5818_v22, 0.0  ;;  %v5881_v27 = vadd.f32 %v5880_v47, %v5879_v18  ;;  %6164 = vst.msk [vmem:[%s9849_s8 + $0xb8] sm:$0xf] %vm6123_vm6, %v6823_v62  ;;  %v5731_v11 = vadd.f32 %v5730_v10, %v5729_v60  ;;  %v6826_v35 = vpack.c.bf16 %v7550_v30, %v7550_v30  ;;  %v7504_v36 = vpop.f32.mrb[44].mxu0 }
 0x29f   : > { %v5852_v9 = vadd.f32 %v5851_v44, %v5850_v17  ;;  %v5882_v25 = vsel %vm5671_vm5, %v5819_v46, 0.0  ;;  %v5664_v1 = vsel %vm5613_vm7, %v7551_v39, 0.0  ;;  %v6824_v49 = vpack.c.bf16 %v7551_v39, %v7551_v39  ;;  %v5541_v26 = vpop.f32.mrb[45].mxu0 }
 0x2a0   : > { %v5883_v63 = vadd.f32 %v5882_v25, %v5881_v27  ;;  %6167 = vst.msk [vmem:[%s9849_s8 + $0xc4] sm:$0xf] %vm6123_vm6, %v6826_v35  ;;  %v5759_v37 = vsel %vm5671_vm5, %v5664_v1, 0.0  ;;  %v5817_v21 = vmul.f32 %v5664_v1, %v5664_v1  ;;  %v7552_v8 = vadd.f32 %v7504_v36, %v7304_v14  ;;  %v7505_v7 = vpop.f32.mrb[46].mxu0 }
 0x2a1   : > { %v5760_v45 = vadd.f32 %v5759_v37, %v10104_v61  ;;  %6165 = vst.msk [vmem:[%s9849_s8 + $0xbc] sm:$0xf] %vm6123_vm6, %v6824_v49  ;;  %v7553_v42 = vadd.f32 %v5541_v26, %v2985_v6  ;;  %v7554_v54 = vadd.f32 %v7505_v7, %v7305_v24  ;;  %v5544_v0 = vpop.f32.mrb[47].mxu0 }
 0x2a2   : > { %v5911_v43 = vsel %vm5671_vm5, %v5817_v21, 0.0  ;;  %v5732_v34 = vsel %vm5671_vm5, %v7552_v8, 0.0  ;;  %v5822_v50 = vmul.f32 %v7552_v8, %v7552_v8  ;;  %v6829_v40 = vpack.c.bf16 %v7552_v8, %v7552_v8 }
 0x2a3   : > { %v5912_v58 = vadd.f32 %v5911_v43, %v10112_v3  ;;  %v5733_v31 = vadd.f32 %v5732_v34, %v5731_v11  ;;  %v5667_v4 = vsel %vm5613_vm7, %v7553_v42, 0.0  ;;  %v6827_v2 = vpack.c.bf16 %v7553_v42, %v7553_v42 }
 0x2a4   : > { %v5884_v61 = vsel %vm5671_vm5, %v5822_v50, 0.0  ;;  %6170 = vst.msk [vmem:[%s9849_s8 + $0xd0] sm:$0xf] %vm6123_vm6, %v6829_v40  ;;  %v5761_v5 = vsel %vm5671_vm5, %v5667_v4, 0.0  ;;  %v5820_v15 = vmul.f32 %v5667_v4, %v5667_v4  ;;  %v5670_v23 = vsel %vm5613_vm7, %v7554_v54, 0.0 }
 0x2a5   : > { %v5885_v16 = vadd.f32 %v5884_v61, %v5883_v63  ;;  %v5762_v38 = vadd.f32 %v5761_v5, %v5760_v45  ;;  %6168 = vst.msk [vmem:[%s9849_s8 + $0xc8] sm:$0xf] %vm6123_vm6, %v6827_v2  ;;  %v5763_v3 = vsel %vm5671_vm5, %v5670_v23, 0.0  ;;  %v5823_v59 = vmul.f32 %v5670_v23, %v5670_v23 }
 0x2a6   : > { %v5913_v51 = vsel %vm5671_vm5, %v5820_v15, 0.0  ;;  %v6830_v19 = vpack.c.bf16 %v7554_v54, %v7554_v54  ;;  %v7555_v32 = vadd.f32 %v5544_v0, %v2988_v12  ;;  %v5766_v6 = vsel %vm5671_vm5, %v5733_v31, 0.0 }
 0x2a7   : > { %v5914_v57 = vadd.f32 %v5913_v51, %v5912_v58  ;;  %v5764_v55 = vadd.f32 %v5763_v3, %v5762_v38  ;;  %v5915_v13 = vsel %vm5671_vm5, %v5823_v59, 0.0  ;;  %v5918_v53 = vsel %vm5671_vm5, %v5885_v16, 0.0 }
 0x2a8   : > { %6171 = vst.msk [vmem:[%s9849_s8 + $0xd4] sm:$0xf] %vm6123_vm6, %v6830_v19  ;;  %v5668_v48 = vsel %vm5608_vm4, %v7555_v32, 0.0  ;;  %v6828_v30 = vpack.c.bf16 %v7555_v32, %v7555_v32 }
 0x2a9   : > { %v5916_v52 = vadd.f32 %v5915_v13, %v5914_v57  ;;  %v5701_v14 = vsel %vm5671_vm5, %v5668_v48, 0.0  ;;  %v5821_v17 = vmul.f32 %v5668_v48, %v5668_v48  ;;  %v5768_v56 = vsel %vm5671_vm5, %v5764_v55, 0.0 }
 0x2aa   : > { %v5702_v18 = vadd.f32 %v5701_v14, %v5700_v28  ;;  %6169 = vst.msk [vmem:[%s9849_s8 + $0xcc] sm:$0xf] %vm6123_vm6, %v6828_v30 }
 0x2ab   : > { %v5853_v39 = vsel %vm5671_vm5, %v5821_v17, 0.0  ;;  %v5920_v60 = vsel %vm5671_vm5, %v5916_v52, 0.0 }
 0x2ac   : > { %v5765_v20 = vsel %vm5671_vm5, %v5702_v18, 0.0  ;;  %v5854_v41 = vadd.f32 %v5853_v39, %v5852_v9 }
 0x2ad   : > { %v5767_v29 = vadd.f32 %v5766_v6, %v5765_v20 }
 0x2ae   : > { %v5917_v24 = vsel %vm5671_vm5, %v5854_v41, 0.0 }
 0x2af   : > { %v5769_v33 = vadd.f32 %v5768_v56, %v5767_v29  ;;  %v5919_v22 = vadd.f32 %v5918_v53, %v5917_v24 }
 0x2b1   : > { %v5770_v62 = vrot.slane %v5769_v33, 4  ;;  %v5921_v12 = vadd.f32 %v5920_v60, %v5919_v22 }
 0x2b3   : > { %v5771_v28 = vadd.f32 %v5770_v62, %v5769_v33  ;;  %v5922_v47 = vrot.slane %v5921_v12, 4 }
 0x2b5   : > { %v5772_v10 = vrot.slane %v5771_v28, 2  ;;  %v5923_v46 = vadd.f32 %v5922_v47, %v5921_v12 }
 0x2b7   : > { %v5773_v44 = vadd.f32 %v5772_v10, %v5771_v28  ;;  %v5924_v27 = vrot.slane %v5923_v46, 2 }
 0x2b9   : > { %v5774_v11 = vrot.slane %v5773_v44, 1  ;;  %v5925_v35 = vadd.f32 %v5924_v27, %v5923_v46 }
 0x2bb   : > { %v5775_v36 = vadd.f32 %v5774_v11, %v5773_v44  ;;  %v5926_v9 = vrot.slane %v5925_v35, 1 }
 0x2bd   : > { %v5927_v25 = vadd.f32 %v5926_v9, %v5925_v35  ;;  %5929 = vst.msk [vmem:[%s171_s10] sm:$0x1] %vm5928_vm8, %v5775_v36 }
 0x2bf   : > { %5930 = vst.msk [vmem:[%s171_s10 + $0x1] sm:$0x1] %vm5928_vm8, %v5927_v25 }
 0x2c0   : > { %8194 = shalt.err (!%p8191_p3)
}
 0x2c1   : > { %s8195_s28 = scalar_lea.hbm %s10185_s20, 32  ;;  %s8199_s5 = scalar_lea.hbm %s10230_s3, 64 }
 0x2c2   : > { %p8196_p4 = scmp.ne.s32.totalorder %s10185_s20, %s8195_s28  ;;  %p8200_p9 = scmp.lt.u32.totalorder %s10185_s20, %s10230_s3 }
 0x2c3   : > { %p8201_p10 = scmp.lt.u32.totalorder %s8199_s5, %s8195_s28  ;;  %p8203_p12 = scmp.lt.u32.totalorder %s8195_s28, %s10185_s20 }
 0x2c4   : > { %p8197_p7 = pnand %p8196_p4, %p8304_p5 }
 0x2c5   : > { %p8202_p11 = por %p8201_p10, %p8200_p9 }
 0x2c6   : > { %p8198_p8 = pneg %p8197_p7 }
 0x2c7   : > { %p8204_p13 = por %p8203_p12, %p8202_p11 }
 0x2c9   : > { %p8205_p0 = pnand %p8204_p13, %p8198_p8 }
 0x2cb   : > { %8208 = shalt.err (!%p8205_p0)
}
 0x2cc   : > { %7903 = dma.vmem_to_hbm [thread:$0]  (%p8304_p5), %s10187_s11, 32, %s10185_s20, %s6178_s24  }
 0x2cd PF: > { %p7909_p1 = scmp.ge.s32.totalorder %s8243_s15, 2  ;;  %s6214_s30 = sand.u32 1, %s8231_s12  }
 0x2ce   : > { %s6215_s6 = scalar_lea.sflag [#allocation3], %s6214_s30 }
 0x2cf   : > { %p7906_p2 = pnand %p7909_p1, %p8308_p6 }
 0x2d1   : > { %8226 = dma.done.wait (!%p7906_p2), %s6215_s6, 32  }
 0x2d2   : > { %8228 = vsyncadd (!%p7906_p2), %s6215_s6, 4294967264  ;;  %p14_p3 = scmp.ge.s32.totalorder %s8291_s18, 4   ;;  %s10331_s12 = smov %s8235_s13 }
 0x2d3   : > { %s10332_s13 = smov %s8239_s14  ;;  %s10333_s14 = smov %s8302_s21 }
 0x2d4   : > { %s10334_s15 = smov %s8291_s18  ;;  %16 = sbr.rel (!%p14_p3) target bundleno = 3 (0x3), region = 83 }
 0x2db   :  { %6220 = vsyncpa [#allocation3], 1 }
 0x2dc   :  { %6222 = vsyncpa [#allocation3 + $0x1], 1 }

</bundles_post_ra>
